<compile_context>
chip_gen: v7x
topology: tpu7x:2x2x1
jax: 0.10.0
libtpu: 0.0.40
codegen_flags: <defaults>
</compile_context>

<pallas_src>
import math
import functools

import jax
import jax.numpy as jnp
from jax.experimental import pallas as pl
from jax.experimental.pallas import tpu as pltpu

# ---------------- small synthetic model config ----------------
PATCH = 16
F_STRIDE = 16           # no patch overlap (default fstride=16)
T_STRIDE = 16           # no patch overlap (default tstride=16)
INPUT_FDIM = 32         # frequency bins  (module default 80; small here)
INPUT_TDIM = 48         # time frames     (module default 301; small here)
F_DIM = (INPUT_FDIM - PATCH) // F_STRIDE + 1      # 2
T_DIM = (INPUT_TDIM - PATCH) // T_STRIDE + 1      # 3
NUM_PATCHES = F_DIM * T_DIM                       # 6
SEQ = NUM_PATCHES + 2                             # 8  (cls + dist + patches)
EMBED_DIM = 64          # "tiny224" is 192; small here
NUM_HEADS = 2
HEAD_DIM = EMBED_DIM // NUM_HEADS                 # 32
MLP_DIM = 4 * EMBED_DIM                           # 256
DEPTH = 2               # tiny224 has 12 blocks; 2 here
LABEL_DIM = 10
HEAD_PAD = 128          # lane-dense padded logits width (sliced to LABEL_DIM outside)
LN_EPS = 1e-6           # timm ViT LayerNorm eps
HEAD_LN_EPS = 1e-5      # nn.LayerNorm default eps in self.head
BATCH = 2


def _ln(z, g, b, eps):
    mu = jnp.mean(z, axis=-1, keepdims=True)
    var = jnp.mean(jnp.square(z - mu), axis=-1, keepdims=True)
    return (z - mu) * jax.lax.rsqrt(var + eps) * g + b


def _bf16_dot(a, w_bf16):
    # bf16 operands, f32 accumulate on the MXU.
    return jnp.dot(a.astype(jnp.bfloat16), w_bf16, preferred_element_type=jnp.float32)


def _qkv_idx(d, i, h):       # leading index into the (DEPTH*3*H, D, Hd) qkv weight stack
    return (d * 3 + i) * NUM_HEADS + h


def _head_idx(d, h):         # leading index into the (DEPTH*H, Hd, D) proj weight stack
    return d * NUM_HEADS + h


# ---------------- the single fused Pallas kernel ----------------
def ast_fused_kernel(patches_ref, pe_w_ref, tbl_ref,
                     ln1g_ref, ln1b_ref, qkvw_ref, qkvb_ref, attnw_ref, attnb_ref,
                     ln2g_ref, ln2b_ref, fc1w_ref, fc1b_ref, fc2w_ref, fc2b_ref,
                     normg_ref, normb_ref, hlng_ref, hlnb_ref, hw_ref, hb_ref,
                     o_ref, *, batch):
    m = batch * SEQ

    # ---- patch embedding: Conv2d(1, D, 16, stride 16) == patch-matrix @ W ----
    # cls/dist rows of `patches` are zero; the conv bias + positional embedding + cls/dist
    # tokens are all carried by the precomputed (SEQ, D) table, so token assembly is one
    # sublane-aligned broadcast add (no concats / row shuffles).
    tok = _bf16_dot(patches_ref[...], pe_w_ref[...])                       # (B*SEQ, D)
    x = (tok.reshape(batch, SEQ, EMBED_DIM) + tbl_ref[...]).reshape(m, EMBED_DIM)

    scale = 1.0 / math.sqrt(HEAD_DIM)
    for d in range(DEPTH):                       # statically unrolled block loop
        # --- multi-head self-attention (timm 0.4.5 ViT block) ---
        h = _ln(x, ln1g_ref[d], ln1b_ref[d], LN_EPS)
        hb = h.astype(jnp.bfloat16)
        ao = None
        for head in range(NUM_HEADS):            # NUM_HEADS=2 -> unrolled
            # per-head q/k/v via statically-indexed weight slices (no lane slicing)
            qh = (jnp.dot(hb, qkvw_ref[_qkv_idx(d, 0, head)],
                          preferred_element_type=jnp.float32)
                  + qkvb_ref[_qkv_idx(d, 0, head)]).reshape(batch, SEQ, HEAD_DIM)
            kh = (jnp.dot(hb, qkvw_ref[_qkv_idx(d, 1, head)],
                          preferred_element_type=jnp.float32)
                  + qkvb_ref[_qkv_idx(d, 1, head)]).reshape(batch, SEQ, HEAD_DIM)
            vh = (jnp.dot(hb, qkvw_ref[_qkv_idx(d, 2, head)],
                          preferred_element_type=jnp.float32)
                  + qkvb_ref[_qkv_idx(d, 2, head)]).reshape(batch, SEQ, HEAD_DIM)
            att = jnp.einsum("bqd,bkd->bqk", qh.astype(jnp.bfloat16),
                             kh.astype(jnp.bfloat16),
                             preferred_element_type=jnp.float32) * scale
            att = att - jnp.max(att, axis=-1, keepdims=True)
            e = jnp.exp(att)
            p = e * pl.reciprocal(jnp.sum(e, axis=-1, keepdims=True), approx=True)
            oh = jnp.einsum("bqk,bkd->bqd", p.astype(jnp.bfloat16),
                            vh.astype(jnp.bfloat16),
                            preferred_element_type=jnp.float32)
            # accumulate straight into the output projection (no head concat)
            contrib = jnp.dot(oh.reshape(m, HEAD_DIM).astype(jnp.bfloat16),
                              attnw_ref[_head_idx(d, head)],
                              preferred_element_type=jnp.float32)
            ao = contrib if ao is None else ao + contrib
        x = x + ao + attnb_ref[d]

        # --- MLP (exact erf GELU, matches PyTorch) ---
        h = _ln(x, ln2g_ref[d], ln2b_ref[d], LN_EPS)
        h = _bf16_dot(h, fc1w_ref[d]) + fc1b_ref[d]
        h = 0.5 * h * (1.0 + jax.lax.erf(h * (1.0 / math.sqrt(2.0))))
        h = _bf16_dot(h, fc2w_ref[d]) + fc2b_ref[d]
        x = x + h

    # ---- final norm, (cls + dist)/2 pooling, head (LayerNorm + Linear) ----
    xn = _ln(x, normg_ref[...], normb_ref[...], LN_EPS)                    # (B*SEQ, D)
    x3 = xn.reshape(batch, SEQ, EMBED_DIM)                                 # aligned split
    pooled = (x3[:, 0, :] + x3[:, 1, :]) * 0.5                             # (B, D)
    pn = _ln(pooled, hlng_ref[...], hlnb_ref[...], HEAD_LN_EPS)
    o_ref[...] = _bf16_dot(pn, hw_ref[...]) + hb_ref[...]                  # (B, HEAD_PAD)


# ---------------- parameter packing (per-head repack, bf16 weights, pad head) ----------------
_PACKED_KEYS = ("pe_w", "tbl",
                "ln1_g", "ln1_b", "qkv_w", "qkv_b", "attn_w", "attn_b",
                "ln2_g", "ln2_b", "fc1_w", "fc1_b", "fc2_w", "fc2_b",
                "norm_g", "norm_b", "head_ln_g", "head_ln_b", "head_w", "head_b")


def pack_params(params):
    D = EMBED_DIM

    def stack(key):
        return jnp.stack([blk[key] for blk in params["blocks"]], axis=0)

    # Token/positional table: row0 = cls + pos[0], row1 = dist + pos[1],
    # rows 2: = pos[2:] + conv bias.  The cls/dist rows of the zero-padded patch matrix
    # produce 0 from the GEMM, so the conv bias must NOT reach them -> it is folded into
    # the patch rows here and the in-kernel patch-embed matmul carries no bias.
    cls = params["cls_token"].reshape(1, D)
    dist = params["dist_token"].reshape(1, D)
    pos = params["pos_embed"].reshape(SEQ, D)
    pe_b = params["proj_b"]                                             # (1, D)
    tbl = jnp.concatenate([cls + pos[0:1], dist + pos[1:2], pos[2:] + pe_b], axis=0)

    # Per-(q/k/v, head) repack of the fused qkv weight/bias and per-head split of the
    # attention output projection, so the kernel only uses statically-indexed
    # leading-axis ref slices (no lane-offset slices, no concats).
    def qkv_w_split(w):      # (D, 3D) -> (3*H, D, Hd), column order is [3][heads][hd]
        return (w.reshape(D, 3, NUM_HEADS, HEAD_DIM)
                 .transpose(1, 2, 0, 3)
                 .reshape(3 * NUM_HEADS, D, HEAD_DIM))

    def qkv_b_split(b):      # (1, 3D) -> (3*H, 1, Hd)
        return b.reshape(3 * NUM_HEADS, 1, HEAD_DIM)

    def proj_w_split(w):     # (D, D) -> (H, Hd, D), input rows grouped per head
        return w.reshape(NUM_HEADS, HEAD_DIM, D)

    qkv_w = jnp.concatenate([qkv_w_split(blk["qkv_w"]) for blk in params["blocks"]], 0)
    qkv_b = jnp.concatenate([qkv_b_split(blk["qkv_b"]) for blk in params["blocks"]], 0)
    attn_w = jnp.concatenate([proj_w_split(blk["proj_w"]) for blk in params["blocks"]], 0)

    head_w = jnp.zeros((D, HEAD_PAD), jnp.float32).at[:, :LABEL_DIM].set(params["head_w"])
    head_b = jnp.zeros((1, HEAD_PAD), jnp.float32).at[:, :LABEL_DIM].set(params["head_b"])

    return {
        "pe_w": params["proj_w"].astype(jnp.bfloat16),
        "tbl": tbl,
        "ln1_g": stack("ln1_g"), "ln1_b": stack("ln1_b"),
        "qkv_w": qkv_w.astype(jnp.bfloat16), "qkv_b": qkv_b,
        "attn_w": attn_w.astype(jnp.bfloat16), "attn_b": stack("proj_b"),
        "ln2_g": stack("ln2_g"), "ln2_b": stack("ln2_b"),
        "fc1_w": stack("fc1_w").astype(jnp.bfloat16), "fc1_b": stack("fc1_b"),
        "fc2_w": stack("fc2_w").astype(jnp.bfloat16), "fc2_b": stack("fc2_b"),
        "norm_g": params["norm_g"], "norm_b": params["norm_b"],
        "head_ln_g": params["head_ln_g"], "head_ln_b": params["head_ln_b"],
        "head_w": head_w.astype(jnp.bfloat16), "head_b": head_b,
    }


def _cost_estimate(batch, packed):
    m = batch * SEQ
    flops = 2 * m * (PATCH * PATCH) * EMBED_DIM                           # patch embed
    per_block = (2 * m * EMBED_DIM * 3 * EMBED_DIM                        # q,k,v GEMMs
                 + 2 * 2 * batch * NUM_HEADS * SEQ * SEQ * HEAD_DIM       # qk^T + p@v
                 + 2 * m * EMBED_DIM * EMBED_DIM                          # output proj
                 + 2 * 2 * m * EMBED_DIM * MLP_DIM)                       # MLP fc1+fc2
    flops += DEPTH * per_block + 2 * batch * EMBED_DIM * HEAD_PAD         # head
    transcendentals = DEPTH * (batch * NUM_HEADS * SEQ * SEQ + m * MLP_DIM)
    bytes_accessed = m * PATCH * PATCH * 4 + batch * HEAD_PAD * 4
    bytes_accessed += sum(int(v.size) * v.dtype.itemsize for v in packed.values())
    return pl.CostEstimate(flops=int(flops), transcendentals=int(transcendentals),
                           bytes_accessed=int(bytes_accessed))


# ---------------- full forward: one pallas_call ----------------
def ast_forward(x_spec, packed):
    b = x_spec.shape[0]
    # Patch extraction (stride == kernel, so Conv2d == reshape + matmul).  Pure layout
    # plumbing on a tiny tensor, kept in the wrapper.  Patch vector order is kh*16 + kw,
    # patch order fi*T_DIM + ti, matching the Conv2d weight flattening and
    # .flatten(2).transpose(1, 2).
    patches = x_spec[:, 0, :F_DIM * PATCH, :T_DIM * PATCH]
    patches = patches.reshape(b, F_DIM, PATCH, T_DIM, PATCH)
    patches = patches.transpose(0, 1, 3, 2, 4).reshape(b, NUM_PATCHES, PATCH * PATCH)
    # Two zero rows per batch element = cls/dist token slots -> in-kernel token assembly
    # becomes a single aligned broadcast add, and the patch-embed GEMM M = B*SEQ = 16.
    patches = jnp.pad(patches, ((0, 0), (2, 0), (0, 0))).reshape(b * SEQ, PATCH * PATCH)

    kernel = functools.partial(ast_fused_kernel, batch=b)
    args = (patches,) + tuple(packed[k] for k in _PACKED_KEYS)
    vmem = pl.BlockSpec(memory_space=pltpu.MemorySpace.VMEM)
    logits_pad = pl.pallas_call(
        kernel,
        out_shape=jax.ShapeDtypeStruct((b, HEAD_PAD), jnp.float32),
        in_specs=[vmem] * len(args),
        out_specs=vmem,
        cost_estimate=_cost_estimate(b, packed),
    )(*args)
    return logits_pad[:, :LABEL_DIM]


# ---------------- deterministic parameter init (PyTorch-layout params) ----------------
def init_params(key):
    def nrm(k, shape, std=0.02):
        return std * jax.random.normal(k, shape, dtype=jnp.float32)

    ks = iter(jax.random.split(key, 8 + 8 * DEPTH))
    params = {
        "proj_w": nrm(next(ks), (PATCH * PATCH, EMBED_DIM)),   # Conv2d(1,D,16,16) weight, flattened
        "proj_b": nrm(next(ks), (1, EMBED_DIM)),
        "cls_token": nrm(next(ks), (1, 1, EMBED_DIM)),
        "dist_token": nrm(next(ks), (1, 1, EMBED_DIM)),
        "pos_embed": nrm(next(ks), (1, SEQ, EMBED_DIM)),
        "norm_g": jnp.ones((1, EMBED_DIM), jnp.float32),
        "norm_b": jnp.zeros((1, EMBED_DIM), jnp.float32),
        "head_ln_g": jnp.ones((1, EMBED_DIM), jnp.float32),
        "head_ln_b": jnp.zeros((1, EMBED_DIM), jnp.float32),
        "head_w": nrm(next(ks), (EMBED_DIM, LABEL_DIM)),
        "head_b": nrm(next(ks), (1, LABEL_DIM)),
        "blocks": [],
    }
    for _ in range(DEPTH):
        params["blocks"].append({
            "ln1_g": jnp.ones((1, EMBED_DIM), jnp.float32),
            "ln1_b": jnp.zeros((1, EMBED_DIM), jnp.float32),
            "qkv_w": nrm(next(ks), (EMBED_DIM, 3 * EMBED_DIM)),
            "qkv_b": nrm(next(ks), (1, 3 * EMBED_DIM)),
            "proj_w": nrm(next(ks), (EMBED_DIM, EMBED_DIM)),
            "proj_b": nrm(next(ks), (1, EMBED_DIM)),
            "ln2_g": jnp.ones((1, EMBED_DIM), jnp.float32),
            "ln2_b": jnp.zeros((1, EMBED_DIM), jnp.float32),
            "fc1_w": nrm(next(ks), (EMBED_DIM, MLP_DIM)),
            "fc1_b": nrm(next(ks), (1, MLP_DIM)),
            "fc2_w": nrm(next(ks), (MLP_DIM, EMBED_DIM)),
            "fc2_b": nrm(next(ks), (1, EMBED_DIM)),
        })
    return params


if __name__ == "__main__":
    key = jax.random.PRNGKey(0)
    pkey, xkey = jax.random.split(key)
    params = init_params(pkey)
    packed = pack_params(params)
    # input spectrogram, NCHW: (batch, 1, freq_bins, time_frames)
    x = jax.random.normal(xkey, (BATCH, 1, INPUT_FDIM, INPUT_TDIM), dtype=jnp.float32)

    out = jax.jit(ast_forward)(x, packed)
    out = jax.block_until_ready(out)
    assert out.shape == (BATCH, LABEL_DIM)
    assert jnp.all(jnp.isfinite(out))
    print("KERNEL_OK")
</pallas_src>

<mosaic_0001>
module attributes {stable_mosaic.version = 11 : i64} {
  func.func @ast_fused_kernel(%arg0: memref<16x256xf32, #tpu.memory_space<vmem>>, %arg1: memref<256x64xbf16, #tpu.memory_space<vmem>>, %arg2: memref<8x64xf32, #tpu.memory_space<vmem>>, %arg3: memref<2x1x64xf32, #tpu.memory_space<vmem>>, %arg4: memref<2x1x64xf32, #tpu.memory_space<vmem>>, %arg5: memref<12x64x32xbf16, #tpu.memory_space<vmem>>, %arg6: memref<12x1x32xf32, #tpu.memory_space<vmem>>, %arg7: memref<4x32x64xbf16, #tpu.memory_space<vmem>>, %arg8: memref<2x1x64xf32, #tpu.memory_space<vmem>>, %arg9: memref<2x1x64xf32, #tpu.memory_space<vmem>>, %arg10: memref<2x1x64xf32, #tpu.memory_space<vmem>>, %arg11: memref<2x64x256xbf16, #tpu.memory_space<vmem>>, %arg12: memref<2x1x256xf32, #tpu.memory_space<vmem>>, %arg13: memref<2x256x64xbf16, #tpu.memory_space<vmem>>, %arg14: memref<2x1x64xf32, #tpu.memory_space<vmem>>, %arg15: memref<1x64xf32, #tpu.memory_space<vmem>>, %arg16: memref<1x64xf32, #tpu.memory_space<vmem>>, %arg17: memref<1x64xf32, #tpu.memory_space<vmem>>, %arg18: memref<1x64xf32, #tpu.memory_space<vmem>>, %arg19: memref<64x128xbf16, #tpu.memory_space<vmem>>, %arg20: memref<1x128xf32, #tpu.memory_space<vmem>>, %arg21: memref<2x128xf32, #tpu.memory_space<vmem>>) attributes {dimension_semantics = [], scalar_prefetch = 0 : i64, scratch_operands = 0 : i64, tpu.core_type = #tpu.core_type<tc>} {
    %c0 = arith.constant 0 : index
    %c0_0 = arith.constant 0 : index
    %0 = vector.load %arg0[%c0, %c0_0] : memref<16x256xf32, #tpu.memory_space<vmem>>, vector<16x256xf32>
    %c0_1 = arith.constant 0 : index
    %c0_2 = arith.constant 0 : index
    %1 = vector.load %arg1[%c0_1, %c0_2] : memref<256x64xbf16, #tpu.memory_space<vmem>>, vector<256x64xbf16>
    %2 = arith.truncf %0 : vector<16x256xf32> to vector<16x256xbf16>
    %cst = arith.constant dense<0.000000e+00> : vector<16x64xf32>
    %3 = tpu.matmul %2, %1, %cst {dimension_numbers = #tpu.dot_dimension_numbers<[1], [0], [0], [1], [0, 0, 1, 1], [], []>} : vector<16x256xbf16>, vector<256x64xbf16>, vector<16x64xf32> -> vector<16x64xf32>
    %4 = vector.shape_cast %3 : vector<16x64xf32> to vector<2x8x64xf32>
    %c0_3 = arith.constant 0 : index
    %c0_4 = arith.constant 0 : index
    %5 = vector.load %arg2[%c0_3, %c0_4] : memref<8x64xf32, #tpu.memory_space<vmem>>, vector<8x64xf32>
    %6 = vector.shape_cast %5 : vector<8x64xf32> to vector<1x8x64xf32>
    %7 = vector.broadcast %6 : vector<1x8x64xf32> to vector<2x8x64xf32>
    %8 = arith.addf %4, %7 : vector<2x8x64xf32>
    %9 = vector.shape_cast %8 : vector<2x8x64xf32> to vector<16x64xf32>
    %c0_5 = arith.constant 0 : index
    %c0_6 = arith.constant 0 : index
    %c0_7 = arith.constant 0 : index
    %10 = vector.load %arg3[%c0_5, %c0_6, %c0_7] : memref<2x1x64xf32, #tpu.memory_space<vmem>>, vector<1x1x64xf32>
    %11 = vector.shape_cast %10 : vector<1x1x64xf32> to vector<1x64xf32>
    %c0_8 = arith.constant 0 : index
    %c0_9 = arith.constant 0 : index
    %c0_10 = arith.constant 0 : index
    %12 = vector.load %arg4[%c0_8, %c0_9, %c0_10] : memref<2x1x64xf32, #tpu.memory_space<vmem>>, vector<1x1x64xf32>
    %13 = vector.shape_cast %12 : vector<1x1x64xf32> to vector<1x64xf32>
    %cst_11 = arith.constant dense<0.000000e+00> : vector<16xf32>
    %14 = vector.multi_reduction <add>, %9, %cst_11 [1] : vector<16x64xf32> to vector<16xf32>
    %15 = vector.shape_cast %14 : vector<16xf32> to vector<16x1xf32>
    %cst_12 = arith.constant 6.400000e+01 : f32
    %16 = vector.broadcast %cst_12 : f32 to vector<16x1xf32>
    %17 = arith.divf %15, %16 : vector<16x1xf32>
    %18 = vector.broadcast %17 : vector<16x1xf32> to vector<16x64xf32>
    %19 = arith.subf %9, %18 : vector<16x64xf32>
    %20 = arith.mulf %19, %19 : vector<16x64xf32>
    %cst_13 = arith.constant dense<0.000000e+00> : vector<16xf32>
    %21 = vector.multi_reduction <add>, %20, %cst_13 [1] : vector<16x64xf32> to vector<16xf32>
    %22 = vector.shape_cast %21 : vector<16xf32> to vector<16x1xf32>
    %cst_14 = arith.constant 6.400000e+01 : f32
    %23 = vector.broadcast %cst_14 : f32 to vector<16x1xf32>
    %24 = arith.divf %22, %23 : vector<16x1xf32>
    %25 = vector.broadcast %17 : vector<16x1xf32> to vector<16x64xf32>
    %26 = arith.subf %9, %25 : vector<16x64xf32>
    %cst_15 = arith.constant 9.99999997E-7 : f32
    %27 = vector.broadcast %cst_15 : f32 to vector<16x1xf32>
    %28 = arith.addf %24, %27 : vector<16x1xf32>
    %29 = math.rsqrt %28 : vector<16x1xf32>
    %30 = vector.broadcast %29 : vector<16x1xf32> to vector<16x64xf32>
    %31 = arith.mulf %26, %30 : vector<16x64xf32>
    %32 = vector.broadcast %11 : vector<1x64xf32> to vector<16x64xf32>
    %33 = arith.mulf %31, %32 : vector<16x64xf32>
    %34 = vector.broadcast %13 : vector<1x64xf32> to vector<16x64xf32>
    %35 = arith.addf %33, %34 : vector<16x64xf32>
    %36 = arith.truncf %35 : vector<16x64xf32> to vector<16x64xbf16>
    %c0_16 = arith.constant 0 : index
    %c0_17 = arith.constant 0 : index
    %c0_18 = arith.constant 0 : index
    %37 = vector.load %arg5[%c0_16, %c0_17, %c0_18] : memref<12x64x32xbf16, #tpu.memory_space<vmem>>, vector<1x64x32xbf16>
    %38 = vector.shape_cast %37 : vector<1x64x32xbf16> to vector<64x32xbf16>
    %cst_19 = arith.constant dense<0.000000e+00> : vector<16x32xf32>
    %39 = tpu.matmul %36, %38, %cst_19 {dimension_numbers = #tpu.dot_dimension_numbers<[1], [0], [0], [1], [0, 0, 1, 1], [], []>} : vector<16x64xbf16>, vector<64x32xbf16>, vector<16x32xf32> -> vector<16x32xf32>
    %c0_20 = arith.constant 0 : index
    %c0_21 = arith.constant 0 : index
    %c0_22 = arith.constant 0 : index
    %40 = vector.load %arg6[%c0_20, %c0_21, %c0_22] : memref<12x1x32xf32, #tpu.memory_space<vmem>>, vector<1x1x32xf32>
    %41 = vector.shape_cast %40 : vector<1x1x32xf32> to vector<1x32xf32>
    %42 = vector.broadcast %41 : vector<1x32xf32> to vector<16x32xf32>
    %43 = arith.addf %39, %42 : vector<16x32xf32>
    %44 = vector.shape_cast %43 : vector<16x32xf32> to vector<2x8x32xf32>
    %c2 = arith.constant 2 : index
    %c0_23 = arith.constant 0 : index
    %c0_24 = arith.constant 0 : index
    %45 = vector.load %arg5[%c2, %c0_23, %c0_24] : memref<12x64x32xbf16, #tpu.memory_space<vmem>>, vector<1x64x32xbf16>
    %46 = vector.shape_cast %45 : vector<1x64x32xbf16> to vector<64x32xbf16>
    %cst_25 = arith.constant dense<0.000000e+00> : vector<16x32xf32>
    %47 = tpu.matmul %36, %46, %cst_25 {dimension_numbers = #tpu.dot_dimension_numbers<[1], [0], [0], [1], [0, 0, 1, 1], [], []>} : vector<16x64xbf16>, vector<64x32xbf16>, vector<16x32xf32> -> vector<16x32xf32>
    %c2_26 = arith.constant 2 : index
    %c0_27 = arith.constant 0 : index
    %c0_28 = arith.constant 0 : index
    %48 = vector.load %arg6[%c2_26, %c0_27, %c0_28] : memref<12x1x32xf32, #tpu.memory_space<vmem>>, vector<1x1x32xf32>
    %49 = vector.shape_cast %48 : vector<1x1x32xf32> to vector<1x32xf32>
    %50 = vector.broadcast %49 : vector<1x32xf32> to vector<16x32xf32>
    %51 = arith.addf %47, %50 : vector<16x32xf32>
    %52 = vector.shape_cast %51 : vector<16x32xf32> to vector<2x8x32xf32>
    %c4 = arith.constant 4 : index
    %c0_29 = arith.constant 0 : index
    %c0_30 = arith.constant 0 : index
    %53 = vector.load %arg5[%c4, %c0_29, %c0_30] : memref<12x64x32xbf16, #tpu.memory_space<vmem>>, vector<1x64x32xbf16>
    %54 = vector.shape_cast %53 : vector<1x64x32xbf16> to vector<64x32xbf16>
    %cst_31 = arith.constant dense<0.000000e+00> : vector<16x32xf32>
    %55 = tpu.matmul %36, %54, %cst_31 {dimension_numbers = #tpu.dot_dimension_numbers<[1], [0], [0], [1], [0, 0, 1, 1], [], []>} : vector<16x64xbf16>, vector<64x32xbf16>, vector<16x32xf32> -> vector<16x32xf32>
    %c4_32 = arith.constant 4 : index
    %c0_33 = arith.constant 0 : index
    %c0_34 = arith.constant 0 : index
    %56 = vector.load %arg6[%c4_32, %c0_33, %c0_34] : memref<12x1x32xf32, #tpu.memory_space<vmem>>, vector<1x1x32xf32>
    %57 = vector.shape_cast %56 : vector<1x1x32xf32> to vector<1x32xf32>
    %58 = vector.broadcast %57 : vector<1x32xf32> to vector<16x32xf32>
    %59 = arith.addf %55, %58 : vector<16x32xf32>
    %60 = vector.shape_cast %59 : vector<16x32xf32> to vector<2x8x32xf32>
    %61 = arith.truncf %44 : vector<2x8x32xf32> to vector<2x8x32xbf16>
    %62 = arith.truncf %52 : vector<2x8x32xf32> to vector<2x8x32xbf16>
    "tpu.trace_start"() <{level = 10 : i32, message = "bqd,bkd->bqk"}> : () -> ()
    %cst_35 = arith.constant dense<0.000000e+00> : vector<2x8x8xf32>
    %63 = tpu.matmul %61, %62, %cst_35 {dimension_numbers = #tpu.dot_dimension_numbers<[2], [2], [1], [1], [0, 0, 0, 1, 1, 1], [0], [0]>} : vector<2x8x32xbf16>, vector<2x8x32xbf16>, vector<2x8x8xf32> -> vector<2x8x8xf32>
    "tpu.trace_stop"() : () -> ()
    %cst_36 = arith.constant 0.176776692 : f32
    %64 = vector.broadcast %cst_36 : f32 to vector<2x8x8xf32>
    %65 = arith.mulf %63, %64 : vector<2x8x8xf32>
    %cst_37 = arith.constant dense<0xFF800000> : vector<2x8xf32>
    %66 = vector.multi_reduction <maximumf>, %65, %cst_37 [2] : vector<2x8x8xf32> to vector<2x8xf32>
    %67 = vector.shape_cast %66 : vector<2x8xf32> to vector<2x8x1xf32>
    %68 = vector.broadcast %67 : vector<2x8x1xf32> to vector<2x8x8xf32>
    %69 = arith.subf %65, %68 : vector<2x8x8xf32>
    %70 = math.exp %69 : vector<2x8x8xf32>
    %cst_38 = arith.constant dense<0.000000e+00> : vector<2x8xf32>
    %71 = vector.multi_reduction <add>, %70, %cst_38 [2] : vector<2x8x8xf32> to vector<2x8xf32>
    %72 = vector.shape_cast %71 : vector<2x8xf32> to vector<2x8x1xf32>
    %73 = tpu.reciprocal %72 {approx = true} : vector<2x8x1xf32> -> vector<2x8x1xf32>
    %74 = vector.broadcast %73 : vector<2x8x1xf32> to vector<2x8x8xf32>
    %75 = arith.mulf %70, %74 : vector<2x8x8xf32>
    %76 = arith.truncf %75 : vector<2x8x8xf32> to vector<2x8x8xbf16>
    %77 = arith.truncf %60 : vector<2x8x32xf32> to vector<2x8x32xbf16>
    "tpu.trace_start"() <{level = 10 : i32, message = "bqk,bkd->bqd"}> : () -> ()
    %cst_39 = arith.constant dense<0.000000e+00> : vector<2x8x32xf32>
    %78 = tpu.matmul %76, %77, %cst_39 {dimension_numbers = #tpu.dot_dimension_numbers<[2], [1], [1], [2], [0, 0, 0, 1, 1, 2], [0], [0]>} : vector<2x8x8xbf16>, vector<2x8x32xbf16>, vector<2x8x32xf32> -> vector<2x8x32xf32>
    "tpu.trace_stop"() : () -> ()
    %79 = vector.shape_cast %78 : vector<2x8x32xf32> to vector<16x32xf32>
    %80 = arith.truncf %79 : vector<16x32xf32> to vector<16x32xbf16>
    %c0_40 = arith.constant 0 : index
    %c0_41 = arith.constant 0 : index
    %c0_42 = arith.constant 0 : index
    %81 = vector.load %arg7[%c0_40, %c0_41, %c0_42] : memref<4x32x64xbf16, #tpu.memory_space<vmem>>, vector<1x32x64xbf16>
    %82 = vector.shape_cast %81 : vector<1x32x64xbf16> to vector<32x64xbf16>
    %cst_43 = arith.constant dense<0.000000e+00> : vector<16x64xf32>
    %83 = tpu.matmul %80, %82, %cst_43 {dimension_numbers = #tpu.dot_dimension_numbers<[1], [0], [0], [1], [0, 0, 1, 1], [], []>} : vector<16x32xbf16>, vector<32x64xbf16>, vector<16x64xf32> -> vector<16x64xf32>
    %c1 = arith.constant 1 : index
    %c0_44 = arith.constant 0 : index
    %c0_45 = arith.constant 0 : index
    %84 = vector.load %arg5[%c1, %c0_44, %c0_45] : memref<12x64x32xbf16, #tpu.memory_space<vmem>>, vector<1x64x32xbf16>
    %85 = vector.shape_cast %84 : vector<1x64x32xbf16> to vector<64x32xbf16>
    %cst_46 = arith.constant dense<0.000000e+00> : vector<16x32xf32>
    %86 = tpu.matmul %36, %85, %cst_46 {dimension_numbers = #tpu.dot_dimension_numbers<[1], [0], [0], [1], [0, 0, 1, 1], [], []>} : vector<16x64xbf16>, vector<64x32xbf16>, vector<16x32xf32> -> vector<16x32xf32>
    %c1_47 = arith.constant 1 : index
    %c0_48 = arith.constant 0 : index
    %c0_49 = arith.constant 0 : index
    %87 = vector.load %arg6[%c1_47, %c0_48, %c0_49] : memref<12x1x32xf32, #tpu.memory_space<vmem>>, vector<1x1x32xf32>
    %88 = vector.shape_cast %87 : vector<1x1x32xf32> to vector<1x32xf32>
    %89 = vector.broadcast %88 : vector<1x32xf32> to vector<16x32xf32>
    %90 = arith.addf %86, %89 : vector<16x32xf32>
    %91 = vector.shape_cast %90 : vector<16x32xf32> to vector<2x8x32xf32>
    %c3 = arith.constant 3 : index
    %c0_50 = arith.constant 0 : index
    %c0_51 = arith.constant 0 : index
    %92 = vector.load %arg5[%c3, %c0_50, %c0_51] : memref<12x64x32xbf16, #tpu.memory_space<vmem>>, vector<1x64x32xbf16>
    %93 = vector.shape_cast %92 : vector<1x64x32xbf16> to vector<64x32xbf16>
    %cst_52 = arith.constant dense<0.000000e+00> : vector<16x32xf32>
    %94 = tpu.matmul %36, %93, %cst_52 {dimension_numbers = #tpu.dot_dimension_numbers<[1], [0], [0], [1], [0, 0, 1, 1], [], []>} : vector<16x64xbf16>, vector<64x32xbf16>, vector<16x32xf32> -> vector<16x32xf32>
    %c3_53 = arith.constant 3 : index
    %c0_54 = arith.constant 0 : index
    %c0_55 = arith.constant 0 : index
    %95 = vector.load %arg6[%c3_53, %c0_54, %c0_55] : memref<12x1x32xf32, #tpu.memory_space<vmem>>, vector<1x1x32xf32>
    %96 = vector.shape_cast %95 : vector<1x1x32xf32> to vector<1x32xf32>
    %97 = vector.broadcast %96 : vector<1x32xf32> to vector<16x32xf32>
    %98 = arith.addf %94, %97 : vector<16x32xf32>
    %99 = vector.shape_cast %98 : vector<16x32xf32> to vector<2x8x32xf32>
    %c5 = arith.constant 5 : index
    %c0_56 = arith.constant 0 : index
    %c0_57 = arith.constant 0 : index
    %100 = vector.load %arg5[%c5, %c0_56, %c0_57] : memref<12x64x32xbf16, #tpu.memory_space<vmem>>, vector<1x64x32xbf16>
    %101 = vector.shape_cast %100 : vector<1x64x32xbf16> to vector<64x32xbf16>
    %cst_58 = arith.constant dense<0.000000e+00> : vector<16x32xf32>
    %102 = tpu.matmul %36, %101, %cst_58 {dimension_numbers = #tpu.dot_dimension_numbers<[1], [0], [0], [1], [0, 0, 1, 1], [], []>} : vector<16x64xbf16>, vector<64x32xbf16>, vector<16x32xf32> -> vector<16x32xf32>
    %c5_59 = arith.constant 5 : index
    %c0_60 = arith.constant 0 : index
    %c0_61 = arith.constant 0 : index
    %103 = vector.load %arg6[%c5_59, %c0_60, %c0_61] : memref<12x1x32xf32, #tpu.memory_space<vmem>>, vector<1x1x32xf32>
    %104 = vector.shape_cast %103 : vector<1x1x32xf32> to vector<1x32xf32>
    %105 = vector.broadcast %104 : vector<1x32xf32> to vector<16x32xf32>
    %106 = arith.addf %102, %105 : vector<16x32xf32>
    %107 = vector.shape_cast %106 : vector<16x32xf32> to vector<2x8x32xf32>
    %108 = arith.truncf %91 : vector<2x8x32xf32> to vector<2x8x32xbf16>
    %109 = arith.truncf %99 : vector<2x8x32xf32> to vector<2x8x32xbf16>
    "tpu.trace_start"() <{level = 10 : i32, message = "bqd,bkd->bqk"}> : () -> ()
    %cst_62 = arith.constant dense<0.000000e+00> : vector<2x8x8xf32>
    %110 = tpu.matmul %108, %109, %cst_62 {dimension_numbers = #tpu.dot_dimension_numbers<[2], [2], [1], [1], [0, 0, 0, 1, 1, 1], [0], [0]>} : vector<2x8x32xbf16>, vector<2x8x32xbf16>, vector<2x8x8xf32> -> vector<2x8x8xf32>
    "tpu.trace_stop"() : () -> ()
    %cst_63 = arith.constant 0.176776692 : f32
    %111 = vector.broadcast %cst_63 : f32 to vector<2x8x8xf32>
    %112 = arith.mulf %110, %111 : vector<2x8x8xf32>
    %cst_64 = arith.constant dense<0xFF800000> : vector<2x8xf32>
    %113 = vector.multi_reduction <maximumf>, %112, %cst_64 [2] : vector<2x8x8xf32> to vector<2x8xf32>
    %114 = vector.shape_cast %113 : vector<2x8xf32> to vector<2x8x1xf32>
    %115 = vector.broadcast %114 : vector<2x8x1xf32> to vector<2x8x8xf32>
    %116 = arith.subf %112, %115 : vector<2x8x8xf32>
    %117 = math.exp %116 : vector<2x8x8xf32>
    %cst_65 = arith.constant dense<0.000000e+00> : vector<2x8xf32>
    %118 = vector.multi_reduction <add>, %117, %cst_65 [2] : vector<2x8x8xf32> to vector<2x8xf32>
    %119 = vector.shape_cast %118 : vector<2x8xf32> to vector<2x8x1xf32>
    %120 = tpu.reciprocal %119 {approx = true} : vector<2x8x1xf32> -> vector<2x8x1xf32>
    %121 = vector.broadcast %120 : vector<2x8x1xf32> to vector<2x8x8xf32>
    %122 = arith.mulf %117, %121 : vector<2x8x8xf32>
    %123 = arith.truncf %122 : vector<2x8x8xf32> to vector<2x8x8xbf16>
    %124 = arith.truncf %107 : vector<2x8x32xf32> to vector<2x8x32xbf16>
    "tpu.trace_start"() <{level = 10 : i32, message = "bqk,bkd->bqd"}> : () -> ()
    %cst_66 = arith.constant dense<0.000000e+00> : vector<2x8x32xf32>
    %125 = tpu.matmul %123, %124, %cst_66 {dimension_numbers = #tpu.dot_dimension_numbers<[2], [1], [1], [2], [0, 0, 0, 1, 1, 2], [0], [0]>} : vector<2x8x8xbf16>, vector<2x8x32xbf16>, vector<2x8x32xf32> -> vector<2x8x32xf32>
    "tpu.trace_stop"() : () -> ()
    %126 = vector.shape_cast %125 : vector<2x8x32xf32> to vector<16x32xf32>
    %127 = arith.truncf %126 : vector<16x32xf32> to vector<16x32xbf16>
    %c1_67 = arith.constant 1 : index
    %c0_68 = arith.constant 0 : index
    %c0_69 = arith.constant 0 : index
    %128 = vector.load %arg7[%c1_67, %c0_68, %c0_69] : memref<4x32x64xbf16, #tpu.memory_space<vmem>>, vector<1x32x64xbf16>
    %129 = vector.shape_cast %128 : vector<1x32x64xbf16> to vector<32x64xbf16>
    %cst_70 = arith.constant dense<0.000000e+00> : vector<16x64xf32>
    %130 = tpu.matmul %127, %129, %cst_70 {dimension_numbers = #tpu.dot_dimension_numbers<[1], [0], [0], [1], [0, 0, 1, 1], [], []>} : vector<16x32xbf16>, vector<32x64xbf16>, vector<16x64xf32> -> vector<16x64xf32>
    %131 = arith.addf %83, %130 : vector<16x64xf32>
    %132 = arith.addf %9, %131 : vector<16x64xf32>
    %c0_71 = arith.constant 0 : index
    %c0_72 = arith.constant 0 : index
    %c0_73 = arith.constant 0 : index
    %133 = vector.load %arg8[%c0_71, %c0_72, %c0_73] : memref<2x1x64xf32, #tpu.memory_space<vmem>>, vector<1x1x64xf32>
    %134 = vector.shape_cast %133 : vector<1x1x64xf32> to vector<1x64xf32>
    %135 = vector.broadcast %134 : vector<1x64xf32> to vector<16x64xf32>
    %136 = arith.addf %132, %135 : vector<16x64xf32>
    %c0_74 = arith.constant 0 : index
    %c0_75 = arith.constant 0 : index
    %c0_76 = arith.constant 0 : index
    %137 = vector.load %arg9[%c0_74, %c0_75, %c0_76] : memref<2x1x64xf32, #tpu.memory_space<vmem>>, vector<1x1x64xf32>
    %138 = vector.shape_cast %137 : vector<1x1x64xf32> to vector<1x64xf32>
    %c0_77 = arith.constant 0 : index
    %c0_78 = arith.constant 0 : index
    %c0_79 = arith.constant 0 : index
    %139 = vector.load %arg10[%c0_77, %c0_78, %c0_79] : memref<2x1x64xf32, #tpu.memory_space<vmem>>, vector<1x1x64xf32>
    %140 = vector.shape_cast %139 : vector<1x1x64xf32> to vector<1x64xf32>
    %cst_80 = arith.constant dense<0.000000e+00> : vector<16xf32>
    %141 = vector.multi_reduction <add>, %136, %cst_80 [1] : vector<16x64xf32> to vector<16xf32>
    %142 = vector.shape_cast %141 : vector<16xf32> to vector<16x1xf32>
    %cst_81 = arith.constant 6.400000e+01 : f32
    %143 = vector.broadcast %cst_81 : f32 to vector<16x1xf32>
    %144 = arith.divf %142, %143 : vector<16x1xf32>
    %145 = vector.broadcast %144 : vector<16x1xf32> to vector<16x64xf32>
    %146 = arith.subf %136, %145 : vector<16x64xf32>
    %147 = arith.mulf %146, %146 : vector<16x64xf32>
    %cst_82 = arith.constant dense<0.000000e+00> : vector<16xf32>
    %148 = vector.multi_reduction <add>, %147, %cst_82 [1] : vector<16x64xf32> to vector<16xf32>
    %149 = vector.shape_cast %148 : vector<16xf32> to vector<16x1xf32>
    %cst_83 = arith.constant 6.400000e+01 : f32
    %150 = vector.broadcast %cst_83 : f32 to vector<16x1xf32>
    %151 = arith.divf %149, %150 : vector<16x1xf32>
    %152 = vector.broadcast %144 : vector<16x1xf32> to vector<16x64xf32>
    %153 = arith.subf %136, %152 : vector<16x64xf32>
    %cst_84 = arith.constant 9.99999997E-7 : f32
    %154 = vector.broadcast %cst_84 : f32 to vector<16x1xf32>
    %155 = arith.addf %151, %154 : vector<16x1xf32>
    %156 = math.rsqrt %155 : vector<16x1xf32>
    %157 = vector.broadcast %156 : vector<16x1xf32> to vector<16x64xf32>
    %158 = arith.mulf %153, %157 : vector<16x64xf32>
    %159 = vector.broadcast %138 : vector<1x64xf32> to vector<16x64xf32>
    %160 = arith.mulf %158, %159 : vector<16x64xf32>
    %161 = vector.broadcast %140 : vector<1x64xf32> to vector<16x64xf32>
    %162 = arith.addf %160, %161 : vector<16x64xf32>
    %c0_85 = arith.constant 0 : index
    %c0_86 = arith.constant 0 : index
    %c0_87 = arith.constant 0 : index
    %163 = vector.load %arg11[%c0_85, %c0_86, %c0_87] : memref<2x64x256xbf16, #tpu.memory_space<vmem>>, vector<1x64x256xbf16>
    %164 = vector.shape_cast %163 : vector<1x64x256xbf16> to vector<64x256xbf16>
    %165 = arith.truncf %162 : vector<16x64xf32> to vector<16x64xbf16>
    %cst_88 = arith.constant dense<0.000000e+00> : vector<16x256xf32>
    %166 = tpu.matmul %165, %164, %cst_88 {dimension_numbers = #tpu.dot_dimension_numbers<[1], [0], [0], [1], [0, 0, 1, 1], [], []>} : vector<16x64xbf16>, vector<64x256xbf16>, vector<16x256xf32> -> vector<16x256xf32>
    %c0_89 = arith.constant 0 : index
    %c0_90 = arith.constant 0 : index
    %c0_91 = arith.constant 0 : index
    %167 = vector.load %arg12[%c0_89, %c0_90, %c0_91] : memref<2x1x256xf32, #tpu.memory_space<vmem>>, vector<1x1x256xf32>
    %168 = vector.shape_cast %167 : vector<1x1x256xf32> to vector<1x256xf32>
    %169 = vector.broadcast %168 : vector<1x256xf32> to vector<16x256xf32>
    %170 = arith.addf %166, %169 : vector<16x256xf32>
    %cst_92 = arith.constant 5.000000e-01 : f32
    %171 = vector.broadcast %cst_92 : f32 to vector<16x256xf32>
    %172 = arith.mulf %171, %170 : vector<16x256xf32>
    %cst_93 = arith.constant 0.707106769 : f32
    %173 = vector.broadcast %cst_93 : f32 to vector<16x256xf32>
    %174 = arith.mulf %170, %173 : vector<16x256xf32>
    %175 = math.erf %174 : vector<16x256xf32>
    %cst_94 = arith.constant 1.000000e+00 : f32
    %176 = vector.broadcast %cst_94 : f32 to vector<16x256xf32>
    %177 = arith.addf %176, %175 : vector<16x256xf32>
    %178 = arith.mulf %172, %177 : vector<16x256xf32>
    %c0_95 = arith.constant 0 : index
    %c0_96 = arith.constant 0 : index
    %c0_97 = arith.constant 0 : index
    %179 = vector.load %arg13[%c0_95, %c0_96, %c0_97] : memref<2x256x64xbf16, #tpu.memory_space<vmem>>, vector<1x256x64xbf16>
    %180 = vector.shape_cast %179 : vector<1x256x64xbf16> to vector<256x64xbf16>
    %181 = arith.truncf %178 : vector<16x256xf32> to vector<16x256xbf16>
    %cst_98 = arith.constant dense<0.000000e+00> : vector<16x64xf32>
    %182 = tpu.matmul %181, %180, %cst_98 {dimension_numbers = #tpu.dot_dimension_numbers<[1], [0], [0], [1], [0, 0, 1, 1], [], []>} : vector<16x256xbf16>, vector<256x64xbf16>, vector<16x64xf32> -> vector<16x64xf32>
    %c0_99 = arith.constant 0 : index
    %c0_100 = arith.constant 0 : index
    %c0_101 = arith.constant 0 : index
    %183 = vector.load %arg14[%c0_99, %c0_100, %c0_101] : memref<2x1x64xf32, #tpu.memory_space<vmem>>, vector<1x1x64xf32>
    %184 = vector.shape_cast %183 : vector<1x1x64xf32> to vector<1x64xf32>
    %185 = vector.broadcast %184 : vector<1x64xf32> to vector<16x64xf32>
    %186 = arith.addf %182, %185 : vector<16x64xf32>
    %187 = arith.addf %136, %186 : vector<16x64xf32>
    %c1_102 = arith.constant 1 : index
    %c0_103 = arith.constant 0 : index
    %c0_104 = arith.constant 0 : index
    %188 = vector.load %arg3[%c1_102, %c0_103, %c0_104] : memref<2x1x64xf32, #tpu.memory_space<vmem>>, vector<1x1x64xf32>
    %189 = vector.shape_cast %188 : vector<1x1x64xf32> to vector<1x64xf32>
    %c1_105 = arith.constant 1 : index
    %c0_106 = arith.constant 0 : index
    %c0_107 = arith.constant 0 : index
    %190 = vector.load %arg4[%c1_105, %c0_106, %c0_107] : memref<2x1x64xf32, #tpu.memory_space<vmem>>, vector<1x1x64xf32>
    %191 = vector.shape_cast %190 : vector<1x1x64xf32> to vector<1x64xf32>
    %cst_108 = arith.constant dense<0.000000e+00> : vector<16xf32>
    %192 = vector.multi_reduction <add>, %187, %cst_108 [1] : vector<16x64xf32> to vector<16xf32>
    %193 = vector.shape_cast %192 : vector<16xf32> to vector<16x1xf32>
    %cst_109 = arith.constant 6.400000e+01 : f32
    %194 = vector.broadcast %cst_109 : f32 to vector<16x1xf32>
    %195 = arith.divf %193, %194 : vector<16x1xf32>
    %196 = vector.broadcast %195 : vector<16x1xf32> to vector<16x64xf32>
    %197 = arith.subf %187, %196 : vector<16x64xf32>
    %198 = arith.mulf %197, %197 : vector<16x64xf32>
    %cst_110 = arith.constant dense<0.000000e+00> : vector<16xf32>
    %199 = vector.multi_reduction <add>, %198, %cst_110 [1] : vector<16x64xf32> to vector<16xf32>
    %200 = vector.shape_cast %199 : vector<16xf32> to vector<16x1xf32>
    %cst_111 = arith.constant 6.400000e+01 : f32
    %201 = vector.broadcast %cst_111 : f32 to vector<16x1xf32>
    %202 = arith.divf %200, %201 : vector<16x1xf32>
    %203 = vector.broadcast %195 : vector<16x1xf32> to vector<16x64xf32>
    %204 = arith.subf %187, %203 : vector<16x64xf32>
    %cst_112 = arith.constant 9.99999997E-7 : f32
    %205 = vector.broadcast %cst_112 : f32 to vector<16x1xf32>
    %206 = arith.addf %202, %205 : vector<16x1xf32>
    %207 = math.rsqrt %206 : vector<16x1xf32>
    %208 = vector.broadcast %207 : vector<16x1xf32> to vector<16x64xf32>
    %209 = arith.mulf %204, %208 : vector<16x64xf32>
    %210 = vector.broadcast %189 : vector<1x64xf32> to vector<16x64xf32>
    %211 = arith.mulf %209, %210 : vector<16x64xf32>
    %212 = vector.broadcast %191 : vector<1x64xf32> to vector<16x64xf32>
    %213 = arith.addf %211, %212 : vector<16x64xf32>
    %214 = arith.truncf %213 : vector<16x64xf32> to vector<16x64xbf16>
    %c6 = arith.constant 6 : index
    %c0_113 = arith.constant 0 : index
    %c0_114 = arith.constant 0 : index
    %215 = vector.load %arg5[%c6, %c0_113, %c0_114] : memref<12x64x32xbf16, #tpu.memory_space<vmem>>, vector<1x64x32xbf16>
    %216 = vector.shape_cast %215 : vector<1x64x32xbf16> to vector<64x32xbf16>
    %cst_115 = arith.constant dense<0.000000e+00> : vector<16x32xf32>
    %217 = tpu.matmul %214, %216, %cst_115 {dimension_numbers = #tpu.dot_dimension_numbers<[1], [0], [0], [1], [0, 0, 1, 1], [], []>} : vector<16x64xbf16>, vector<64x32xbf16>, vector<16x32xf32> -> vector<16x32xf32>
    %c6_116 = arith.constant 6 : index
    %c0_117 = arith.constant 0 : index
    %c0_118 = arith.constant 0 : index
    %218 = vector.load %arg6[%c6_116, %c0_117, %c0_118] : memref<12x1x32xf32, #tpu.memory_space<vmem>>, vector<1x1x32xf32>
    %219 = vector.shape_cast %218 : vector<1x1x32xf32> to vector<1x32xf32>
    %220 = vector.broadcast %219 : vector<1x32xf32> to vector<16x32xf32>
    %221 = arith.addf %217, %220 : vector<16x32xf32>
    %222 = vector.shape_cast %221 : vector<16x32xf32> to vector<2x8x32xf32>
    %c8 = arith.constant 8 : index
    %c0_119 = arith.constant 0 : index
    %c0_120 = arith.constant 0 : index
    %223 = vector.load %arg5[%c8, %c0_119, %c0_120] : memref<12x64x32xbf16, #tpu.memory_space<vmem>>, vector<1x64x32xbf16>
    %224 = vector.shape_cast %223 : vector<1x64x32xbf16> to vector<64x32xbf16>
    %cst_121 = arith.constant dense<0.000000e+00> : vector<16x32xf32>
    %225 = tpu.matmul %214, %224, %cst_121 {dimension_numbers = #tpu.dot_dimension_numbers<[1], [0], [0], [1], [0, 0, 1, 1], [], []>} : vector<16x64xbf16>, vector<64x32xbf16>, vector<16x32xf32> -> vector<16x32xf32>
    %c8_122 = arith.constant 8 : index
    %c0_123 = arith.constant 0 : index
    %c0_124 = arith.constant 0 : index
    %226 = vector.load %arg6[%c8_122, %c0_123, %c0_124] : memref<12x1x32xf32, #tpu.memory_space<vmem>>, vector<1x1x32xf32>
    %227 = vector.shape_cast %226 : vector<1x1x32xf32> to vector<1x32xf32>
    %228 = vector.broadcast %227 : vector<1x32xf32> to vector<16x32xf32>
    %229 = arith.addf %225, %228 : vector<16x32xf32>
    %230 = vector.shape_cast %229 : vector<16x32xf32> to vector<2x8x32xf32>
    %c10 = arith.constant 10 : index
    %c0_125 = arith.constant 0 : index
    %c0_126 = arith.constant 0 : index
    %231 = vector.load %arg5[%c10, %c0_125, %c0_126] : memref<12x64x32xbf16, #tpu.memory_space<vmem>>, vector<1x64x32xbf16>
    %232 = vector.shape_cast %231 : vector<1x64x32xbf16> to vector<64x32xbf16>
    %cst_127 = arith.constant dense<0.000000e+00> : vector<16x32xf32>
    %233 = tpu.matmul %214, %232, %cst_127 {dimension_numbers = #tpu.dot_dimension_numbers<[1], [0], [0], [1], [0, 0, 1, 1], [], []>} : vector<16x64xbf16>, vector<64x32xbf16>, vector<16x32xf32> -> vector<16x32xf32>
    %c10_128 = arith.constant 10 : index
    %c0_129 = arith.constant 0 : index
    %c0_130 = arith.constant 0 : index
    %234 = vector.load %arg6[%c10_128, %c0_129, %c0_130] : memref<12x1x32xf32, #tpu.memory_space<vmem>>, vector<1x1x32xf32>
    %235 = vector.shape_cast %234 : vector<1x1x32xf32> to vector<1x32xf32>
    %236 = vector.broadcast %235 : vector<1x32xf32> to vector<16x32xf32>
    %237 = arith.addf %233, %236 : vector<16x32xf32>
    %238 = vector.shape_cast %237 : vector<16x32xf32> to vector<2x8x32xf32>
    %239 = arith.truncf %222 : vector<2x8x32xf32> to vector<2x8x32xbf16>
    %240 = arith.truncf %230 : vector<2x8x32xf32> to vector<2x8x32xbf16>
    "tpu.trace_start"() <{level = 10 : i32, message = "bqd,bkd->bqk"}> : () -> ()
    %cst_131 = arith.constant dense<0.000000e+00> : vector<2x8x8xf32>
    %241 = tpu.matmul %239, %240, %cst_131 {dimension_numbers = #tpu.dot_dimension_numbers<[2], [2], [1], [1], [0, 0, 0, 1, 1, 1], [0], [0]>} : vector<2x8x32xbf16>, vector<2x8x32xbf16>, vector<2x8x8xf32> -> vector<2x8x8xf32>
    "tpu.trace_stop"() : () -> ()
    %cst_132 = arith.constant 0.176776692 : f32
    %242 = vector.broadcast %cst_132 : f32 to vector<2x8x8xf32>
    %243 = arith.mulf %241, %242 : vector<2x8x8xf32>
    %cst_133 = arith.constant dense<0xFF800000> : vector<2x8xf32>
    %244 = vector.multi_reduction <maximumf>, %243, %cst_133 [2] : vector<2x8x8xf32> to vector<2x8xf32>
    %245 = vector.shape_cast %244 : vector<2x8xf32> to vector<2x8x1xf32>
    %246 = vector.broadcast %245 : vector<2x8x1xf32> to vector<2x8x8xf32>
    %247 = arith.subf %243, %246 : vector<2x8x8xf32>
    %248 = math.exp %247 : vector<2x8x8xf32>
    %cst_134 = arith.constant dense<0.000000e+00> : vector<2x8xf32>
    %249 = vector.multi_reduction <add>, %248, %cst_134 [2] : vector<2x8x8xf32> to vector<2x8xf32>
    %250 = vector.shape_cast %249 : vector<2x8xf32> to vector<2x8x1xf32>
    %251 = tpu.reciprocal %250 {approx = true} : vector<2x8x1xf32> -> vector<2x8x1xf32>
    %252 = vector.broadcast %251 : vector<2x8x1xf32> to vector<2x8x8xf32>
    %253 = arith.mulf %248, %252 : vector<2x8x8xf32>
    %254 = arith.truncf %253 : vector<2x8x8xf32> to vector<2x8x8xbf16>
    %255 = arith.truncf %238 : vector<2x8x32xf32> to vector<2x8x32xbf16>
    "tpu.trace_start"() <{level = 10 : i32, message = "bqk,bkd->bqd"}> : () -> ()
    %cst_135 = arith.constant dense<0.000000e+00> : vector<2x8x32xf32>
    %256 = tpu.matmul %254, %255, %cst_135 {dimension_numbers = #tpu.dot_dimension_numbers<[2], [1], [1], [2], [0, 0, 0, 1, 1, 2], [0], [0]>} : vector<2x8x8xbf16>, vector<2x8x32xbf16>, vector<2x8x32xf32> -> vector<2x8x32xf32>
    "tpu.trace_stop"() : () -> ()
    %257 = vector.shape_cast %256 : vector<2x8x32xf32> to vector<16x32xf32>
    %258 = arith.truncf %257 : vector<16x32xf32> to vector<16x32xbf16>
    %c2_136 = arith.constant 2 : index
    %c0_137 = arith.constant 0 : index
    %c0_138 = arith.constant 0 : index
    %259 = vector.load %arg7[%c2_136, %c0_137, %c0_138] : memref<4x32x64xbf16, #tpu.memory_space<vmem>>, vector<1x32x64xbf16>
    %260 = vector.shape_cast %259 : vector<1x32x64xbf16> to vector<32x64xbf16>
    %cst_139 = arith.constant dense<0.000000e+00> : vector<16x64xf32>
    %261 = tpu.matmul %258, %260, %cst_139 {dimension_numbers = #tpu.dot_dimension_numbers<[1], [0], [0], [1], [0, 0, 1, 1], [], []>} : vector<16x32xbf16>, vector<32x64xbf16>, vector<16x64xf32> -> vector<16x64xf32>
    %c7 = arith.constant 7 : index
    %c0_140 = arith.constant 0 : index
    %c0_141 = arith.constant 0 : index
    %262 = vector.load %arg5[%c7, %c0_140, %c0_141] : memref<12x64x32xbf16, #tpu.memory_space<vmem>>, vector<1x64x32xbf16>
    %263 = vector.shape_cast %262 : vector<1x64x32xbf16> to vector<64x32xbf16>
    %cst_142 = arith.constant dense<0.000000e+00> : vector<16x32xf32>
    %264 = tpu.matmul %214, %263, %cst_142 {dimension_numbers = #tpu.dot_dimension_numbers<[1], [0], [0], [1], [0, 0, 1, 1], [], []>} : vector<16x64xbf16>, vector<64x32xbf16>, vector<16x32xf32> -> vector<16x32xf32>
    %c7_143 = arith.constant 7 : index
    %c0_144 = arith.constant 0 : index
    %c0_145 = arith.constant 0 : index
    %265 = vector.load %arg6[%c7_143, %c0_144, %c0_145] : memref<12x1x32xf32, #tpu.memory_space<vmem>>, vector<1x1x32xf32>
    %266 = vector.shape_cast %265 : vector<1x1x32xf32> to vector<1x32xf32>
    %267 = vector.broadcast %266 : vector<1x32xf32> to vector<16x32xf32>
    %268 = arith.addf %264, %267 : vector<16x32xf32>
    %269 = vector.shape_cast %268 : vector<16x32xf32> to vector<2x8x32xf32>
    %c9 = arith.constant 9 : index
    %c0_146 = arith.constant 0 : index
    %c0_147 = arith.constant 0 : index
    %270 = vector.load %arg5[%c9, %c0_146, %c0_147] : memref<12x64x32xbf16, #tpu.memory_space<vmem>>, vector<1x64x32xbf16>
    %271 = vector.shape_cast %270 : vector<1x64x32xbf16> to vector<64x32xbf16>
    %cst_148 = arith.constant dense<0.000000e+00> : vector<16x32xf32>
    %272 = tpu.matmul %214, %271, %cst_148 {dimension_numbers = #tpu.dot_dimension_numbers<[1], [0], [0], [1], [0, 0, 1, 1], [], []>} : vector<16x64xbf16>, vector<64x32xbf16>, vector<16x32xf32> -> vector<16x32xf32>
    %c9_149 = arith.constant 9 : index
    %c0_150 = arith.constant 0 : index
    %c0_151 = arith.constant 0 : index
    %273 = vector.load %arg6[%c9_149, %c0_150, %c0_151] : memref<12x1x32xf32, #tpu.memory_space<vmem>>, vector<1x1x32xf32>
    %274 = vector.shape_cast %273 : vector<1x1x32xf32> to vector<1x32xf32>
    %275 = vector.broadcast %274 : vector<1x32xf32> to vector<16x32xf32>
    %276 = arith.addf %272, %275 : vector<16x32xf32>
    %277 = vector.shape_cast %276 : vector<16x32xf32> to vector<2x8x32xf32>
    %c11 = arith.constant 11 : index
    %c0_152 = arith.constant 0 : index
    %c0_153 = arith.constant 0 : index
    %278 = vector.load %arg5[%c11, %c0_152, %c0_153] : memref<12x64x32xbf16, #tpu.memory_space<vmem>>, vector<1x64x32xbf16>
    %279 = vector.shape_cast %278 : vector<1x64x32xbf16> to vector<64x32xbf16>
    %cst_154 = arith.constant dense<0.000000e+00> : vector<16x32xf32>
    %280 = tpu.matmul %214, %279, %cst_154 {dimension_numbers = #tpu.dot_dimension_numbers<[1], [0], [0], [1], [0, 0, 1, 1], [], []>} : vector<16x64xbf16>, vector<64x32xbf16>, vector<16x32xf32> -> vector<16x32xf32>
    %c11_155 = arith.constant 11 : index
    %c0_156 = arith.constant 0 : index
    %c0_157 = arith.constant 0 : index
    %281 = vector.load %arg6[%c11_155, %c0_156, %c0_157] : memref<12x1x32xf32, #tpu.memory_space<vmem>>, vector<1x1x32xf32>
    %282 = vector.shape_cast %281 : vector<1x1x32xf32> to vector<1x32xf32>
    %283 = vector.broadcast %282 : vector<1x32xf32> to vector<16x32xf32>
    %284 = arith.addf %280, %283 : vector<16x32xf32>
    %285 = vector.shape_cast %284 : vector<16x32xf32> to vector<2x8x32xf32>
    %286 = arith.truncf %269 : vector<2x8x32xf32> to vector<2x8x32xbf16>
    %287 = arith.truncf %277 : vector<2x8x32xf32> to vector<2x8x32xbf16>
    "tpu.trace_start"() <{level = 10 : i32, message = "bqd,bkd->bqk"}> : () -> ()
    %cst_158 = arith.constant dense<0.000000e+00> : vector<2x8x8xf32>
    %288 = tpu.matmul %286, %287, %cst_158 {dimension_numbers = #tpu.dot_dimension_numbers<[2], [2], [1], [1], [0, 0, 0, 1, 1, 1], [0], [0]>} : vector<2x8x32xbf16>, vector<2x8x32xbf16>, vector<2x8x8xf32> -> vector<2x8x8xf32>
    "tpu.trace_stop"() : () -> ()
    %cst_159 = arith.constant 0.176776692 : f32
    %289 = vector.broadcast %cst_159 : f32 to vector<2x8x8xf32>
    %290 = arith.mulf %288, %289 : vector<2x8x8xf32>
    %cst_160 = arith.constant dense<0xFF800000> : vector<2x8xf32>
    %291 = vector.multi_reduction <maximumf>, %290, %cst_160 [2] : vector<2x8x8xf32> to vector<2x8xf32>
    %292 = vector.shape_cast %291 : vector<2x8xf32> to vector<2x8x1xf32>
    %293 = vector.broadcast %292 : vector<2x8x1xf32> to vector<2x8x8xf32>
    %294 = arith.subf %290, %293 : vector<2x8x8xf32>
    %295 = math.exp %294 : vector<2x8x8xf32>
    %cst_161 = arith.constant dense<0.000000e+00> : vector<2x8xf32>
    %296 = vector.multi_reduction <add>, %295, %cst_161 [2] : vector<2x8x8xf32> to vector<2x8xf32>
    %297 = vector.shape_cast %296 : vector<2x8xf32> to vector<2x8x1xf32>
    %298 = tpu.reciprocal %297 {approx = true} : vector<2x8x1xf32> -> vector<2x8x1xf32>
    %299 = vector.broadcast %298 : vector<2x8x1xf32> to vector<2x8x8xf32>
    %300 = arith.mulf %295, %299 : vector<2x8x8xf32>
    %301 = arith.truncf %300 : vector<2x8x8xf32> to vector<2x8x8xbf16>
    %302 = arith.truncf %285 : vector<2x8x32xf32> to vector<2x8x32xbf16>
    "tpu.trace_start"() <{level = 10 : i32, message = "bqk,bkd->bqd"}> : () -> ()
    %cst_162 = arith.constant dense<0.000000e+00> : vector<2x8x32xf32>
    %303 = tpu.matmul %301, %302, %cst_162 {dimension_numbers = #tpu.dot_dimension_numbers<[2], [1], [1], [2], [0, 0, 0, 1, 1, 2], [0], [0]>} : vector<2x8x8xbf16>, vector<2x8x32xbf16>, vector<2x8x32xf32> -> vector<2x8x32xf32>
    "tpu.trace_stop"() : () -> ()
    %304 = vector.shape_cast %303 : vector<2x8x32xf32> to vector<16x32xf32>
    %305 = arith.truncf %304 : vector<16x32xf32> to vector<16x32xbf16>
    %c3_163 = arith.constant 3 : index
    %c0_164 = arith.constant 0 : index
    %c0_165 = arith.constant 0 : index
    %306 = vector.load %arg7[%c3_163, %c0_164, %c0_165] : memref<4x32x64xbf16, #tpu.memory_space<vmem>>, vector<1x32x64xbf16>
    %307 = vector.shape_cast %306 : vector<1x32x64xbf16> to vector<32x64xbf16>
    %cst_166 = arith.constant dense<0.000000e+00> : vector<16x64xf32>
    %308 = tpu.matmul %305, %307, %cst_166 {dimension_numbers = #tpu.dot_dimension_numbers<[1], [0], [0], [1], [0, 0, 1, 1], [], []>} : vector<16x32xbf16>, vector<32x64xbf16>, vector<16x64xf32> -> vector<16x64xf32>
    %309 = arith.addf %261, %308 : vector<16x64xf32>
    %310 = arith.addf %187, %309 : vector<16x64xf32>
    %c1_167 = arith.constant 1 : index
    %c0_168 = arith.constant 0 : index
    %c0_169 = arith.constant 0 : index
    %311 = vector.load %arg8[%c1_167, %c0_168, %c0_169] : memref<2x1x64xf32, #tpu.memory_space<vmem>>, vector<1x1x64xf32>
    %312 = vector.shape_cast %311 : vector<1x1x64xf32> to vector<1x64xf32>
    %313 = vector.broadcast %312 : vector<1x64xf32> to vector<16x64xf32>
    %314 = arith.addf %310, %313 : vector<16x64xf32>
    %c1_170 = arith.constant 1 : index
    %c0_171 = arith.constant 0 : index
    %c0_172 = arith.constant 0 : index
    %315 = vector.load %arg9[%c1_170, %c0_171, %c0_172] : memref<2x1x64xf32, #tpu.memory_space<vmem>>, vector<1x1x64xf32>
    %316 = vector.shape_cast %315 : vector<1x1x64xf32> to vector<1x64xf32>
    %c1_173 = arith.constant 1 : index
    %c0_174 = arith.constant 0 : index
    %c0_175 = arith.constant 0 : index
    %317 = vector.load %arg10[%c1_173, %c0_174, %c0_175] : memref<2x1x64xf32, #tpu.memory_space<vmem>>, vector<1x1x64xf32>
    %318 = vector.shape_cast %317 : vector<1x1x64xf32> to vector<1x64xf32>
    %cst_176 = arith.constant dense<0.000000e+00> : vector<16xf32>
    %319 = vector.multi_reduction <add>, %314, %cst_176 [1] : vector<16x64xf32> to vector<16xf32>
    %320 = vector.shape_cast %319 : vector<16xf32> to vector<16x1xf32>
    %cst_177 = arith.constant 6.400000e+01 : f32
    %321 = vector.broadcast %cst_177 : f32 to vector<16x1xf32>
    %322 = arith.divf %320, %321 : vector<16x1xf32>
    %323 = vector.broadcast %322 : vector<16x1xf32> to vector<16x64xf32>
    %324 = arith.subf %314, %323 : vector<16x64xf32>
    %325 = arith.mulf %324, %324 : vector<16x64xf32>
    %cst_178 = arith.constant dense<0.000000e+00> : vector<16xf32>
    %326 = vector.multi_reduction <add>, %325, %cst_178 [1] : vector<16x64xf32> to vector<16xf32>
    %327 = vector.shape_cast %326 : vector<16xf32> to vector<16x1xf32>
    %cst_179 = arith.constant 6.400000e+01 : f32
    %328 = vector.broadcast %cst_179 : f32 to vector<16x1xf32>
    %329 = arith.divf %327, %328 : vector<16x1xf32>
    %330 = vector.broadcast %322 : vector<16x1xf32> to vector<16x64xf32>
    %331 = arith.subf %314, %330 : vector<16x64xf32>
    %cst_180 = arith.constant 9.99999997E-7 : f32
    %332 = vector.broadcast %cst_180 : f32 to vector<16x1xf32>
    %333 = arith.addf %329, %332 : vector<16x1xf32>
    %334 = math.rsqrt %333 : vector<16x1xf32>
    %335 = vector.broadcast %334 : vector<16x1xf32> to vector<16x64xf32>
    %336 = arith.mulf %331, %335 : vector<16x64xf32>
    %337 = vector.broadcast %316 : vector<1x64xf32> to vector<16x64xf32>
    %338 = arith.mulf %336, %337 : vector<16x64xf32>
    %339 = vector.broadcast %318 : vector<1x64xf32> to vector<16x64xf32>
    %340 = arith.addf %338, %339 : vector<16x64xf32>
    %c1_181 = arith.constant 1 : index
    %c0_182 = arith.constant 0 : index
    %c0_183 = arith.constant 0 : index
    %341 = vector.load %arg11[%c1_181, %c0_182, %c0_183] : memref<2x64x256xbf16, #tpu.memory_space<vmem>>, vector<1x64x256xbf16>
    %342 = vector.shape_cast %341 : vector<1x64x256xbf16> to vector<64x256xbf16>
    %343 = arith.truncf %340 : vector<16x64xf32> to vector<16x64xbf16>
    %cst_184 = arith.constant dense<0.000000e+00> : vector<16x256xf32>
    %344 = tpu.matmul %343, %342, %cst_184 {dimension_numbers = #tpu.dot_dimension_numbers<[1], [0], [0], [1], [0, 0, 1, 1], [], []>} : vector<16x64xbf16>, vector<64x256xbf16>, vector<16x256xf32> -> vector<16x256xf32>
    %c1_185 = arith.constant 1 : index
    %c0_186 = arith.constant 0 : index
    %c0_187 = arith.constant 0 : index
    %345 = vector.load %arg12[%c1_185, %c0_186, %c0_187] : memref<2x1x256xf32, #tpu.memory_space<vmem>>, vector<1x1x256xf32>
    %346 = vector.shape_cast %345 : vector<1x1x256xf32> to vector<1x256xf32>
    %347 = vector.broadcast %346 : vector<1x256xf32> to vector<16x256xf32>
    %348 = arith.addf %344, %347 : vector<16x256xf32>
    %cst_188 = arith.constant 5.000000e-01 : f32
    %349 = vector.broadcast %cst_188 : f32 to vector<16x256xf32>
    %350 = arith.mulf %349, %348 : vector<16x256xf32>
    %cst_189 = arith.constant 0.707106769 : f32
    %351 = vector.broadcast %cst_189 : f32 to vector<16x256xf32>
    %352 = arith.mulf %348, %351 : vector<16x256xf32>
    %353 = math.erf %352 : vector<16x256xf32>
    %cst_190 = arith.constant 1.000000e+00 : f32
    %354 = vector.broadcast %cst_190 : f32 to vector<16x256xf32>
    %355 = arith.addf %354, %353 : vector<16x256xf32>
    %356 = arith.mulf %350, %355 : vector<16x256xf32>
    %c1_191 = arith.constant 1 : index
    %c0_192 = arith.constant 0 : index
    %c0_193 = arith.constant 0 : index
    %357 = vector.load %arg13[%c1_191, %c0_192, %c0_193] : memref<2x256x64xbf16, #tpu.memory_space<vmem>>, vector<1x256x64xbf16>
    %358 = vector.shape_cast %357 : vector<1x256x64xbf16> to vector<256x64xbf16>
    %359 = arith.truncf %356 : vector<16x256xf32> to vector<16x256xbf16>
    %cst_194 = arith.constant dense<0.000000e+00> : vector<16x64xf32>
    %360 = tpu.matmul %359, %358, %cst_194 {dimension_numbers = #tpu.dot_dimension_numbers<[1], [0], [0], [1], [0, 0, 1, 1], [], []>} : vector<16x256xbf16>, vector<256x64xbf16>, vector<16x64xf32> -> vector<16x64xf32>
    %c1_195 = arith.constant 1 : index
    %c0_196 = arith.constant 0 : index
    %c0_197 = arith.constant 0 : index
    %361 = vector.load %arg14[%c1_195, %c0_196, %c0_197] : memref<2x1x64xf32, #tpu.memory_space<vmem>>, vector<1x1x64xf32>
    %362 = vector.shape_cast %361 : vector<1x1x64xf32> to vector<1x64xf32>
    %363 = vector.broadcast %362 : vector<1x64xf32> to vector<16x64xf32>
    %364 = arith.addf %360, %363 : vector<16x64xf32>
    %365 = arith.addf %314, %364 : vector<16x64xf32>
    %c0_198 = arith.constant 0 : index
    %c0_199 = arith.constant 0 : index
    %366 = vector.load %arg15[%c0_198, %c0_199] : memref<1x64xf32, #tpu.memory_space<vmem>>, vector<1x64xf32>
    %c0_200 = arith.constant 0 : index
    %c0_201 = arith.constant 0 : index
    %367 = vector.load %arg16[%c0_200, %c0_201] : memref<1x64xf32, #tpu.memory_space<vmem>>, vector<1x64xf32>
    %cst_202 = arith.constant dense<0.000000e+00> : vector<16xf32>
    %368 = vector.multi_reduction <add>, %365, %cst_202 [1] : vector<16x64xf32> to vector<16xf32>
    %369 = vector.shape_cast %368 : vector<16xf32> to vector<16x1xf32>
    %cst_203 = arith.constant 6.400000e+01 : f32
    %370 = vector.broadcast %cst_203 : f32 to vector<16x1xf32>
    %371 = arith.divf %369, %370 : vector<16x1xf32>
    %372 = vector.broadcast %371 : vector<16x1xf32> to vector<16x64xf32>
    %373 = arith.subf %365, %372 : vector<16x64xf32>
    %374 = arith.mulf %373, %373 : vector<16x64xf32>
    %cst_204 = arith.constant dense<0.000000e+00> : vector<16xf32>
    %375 = vector.multi_reduction <add>, %374, %cst_204 [1] : vector<16x64xf32> to vector<16xf32>
    %376 = vector.shape_cast %375 : vector<16xf32> to vector<16x1xf32>
    %cst_205 = arith.constant 6.400000e+01 : f32
    %377 = vector.broadcast %cst_205 : f32 to vector<16x1xf32>
    %378 = arith.divf %376, %377 : vector<16x1xf32>
    %379 = vector.broadcast %371 : vector<16x1xf32> to vector<16x64xf32>
    %380 = arith.subf %365, %379 : vector<16x64xf32>
    %cst_206 = arith.constant 9.99999997E-7 : f32
    %381 = vector.broadcast %cst_206 : f32 to vector<16x1xf32>
    %382 = arith.addf %378, %381 : vector<16x1xf32>
    %383 = math.rsqrt %382 : vector<16x1xf32>
    %384 = vector.broadcast %383 : vector<16x1xf32> to vector<16x64xf32>
    %385 = arith.mulf %380, %384 : vector<16x64xf32>
    %386 = vector.broadcast %366 : vector<1x64xf32> to vector<16x64xf32>
    %387 = arith.mulf %385, %386 : vector<16x64xf32>
    %388 = vector.broadcast %367 : vector<1x64xf32> to vector<16x64xf32>
    %389 = arith.addf %387, %388 : vector<16x64xf32>
    %390 = vector.shape_cast %389 : vector<16x64xf32> to vector<2x8x64xf32>
    %391 = vector.extract_strided_slice %390 {offsets = [0, 0, 0], sizes = [2, 1, 64], strides = [1, 1, 1]} : vector<2x8x64xf32> to vector<2x1x64xf32>
    %392 = vector.shape_cast %391 : vector<2x1x64xf32> to vector<2x64xf32>
    %393 = vector.extract_strided_slice %390 {offsets = [0, 1, 0], sizes = [2, 1, 64], strides = [1, 1, 1]} : vector<2x8x64xf32> to vector<2x1x64xf32>
    %394 = vector.shape_cast %393 : vector<2x1x64xf32> to vector<2x64xf32>
    %395 = arith.addf %392, %394 : vector<2x64xf32>
    %cst_207 = arith.constant 5.000000e-01 : f32
    %396 = vector.broadcast %cst_207 : f32 to vector<2x64xf32>
    %397 = arith.mulf %395, %396 : vector<2x64xf32>
    %c0_208 = arith.constant 0 : index
    %c0_209 = arith.constant 0 : index
    %398 = vector.load %arg17[%c0_208, %c0_209] : memref<1x64xf32, #tpu.memory_space<vmem>>, vector<1x64xf32>
    %c0_210 = arith.constant 0 : index
    %c0_211 = arith.constant 0 : index
    %399 = vector.load %arg18[%c0_210, %c0_211] : memref<1x64xf32, #tpu.memory_space<vmem>>, vector<1x64xf32>
    %cst_212 = arith.constant dense<0.000000e+00> : vector<2xf32>
    %400 = vector.multi_reduction <add>, %397, %cst_212 [1] : vector<2x64xf32> to vector<2xf32>
    %401 = vector.shape_cast %400 : vector<2xf32> to vector<2x1xf32>
    %cst_213 = arith.constant 6.400000e+01 : f32
    %402 = vector.broadcast %cst_213 : f32 to vector<2x1xf32>
    %403 = arith.divf %401, %402 : vector<2x1xf32>
    %404 = vector.broadcast %403 : vector<2x1xf32> to vector<2x64xf32>
    %405 = arith.subf %397, %404 : vector<2x64xf32>
    %406 = arith.mulf %405, %405 : vector<2x64xf32>
    %cst_214 = arith.constant dense<0.000000e+00> : vector<2xf32>
    %407 = vector.multi_reduction <add>, %406, %cst_214 [1] : vector<2x64xf32> to vector<2xf32>
    %408 = vector.shape_cast %407 : vector<2xf32> to vector<2x1xf32>
    %cst_215 = arith.constant 6.400000e+01 : f32
    %409 = vector.broadcast %cst_215 : f32 to vector<2x1xf32>
    %410 = arith.divf %408, %409 : vector<2x1xf32>
    %411 = vector.broadcast %403 : vector<2x1xf32> to vector<2x64xf32>
    %412 = arith.subf %397, %411 : vector<2x64xf32>
    %cst_216 = arith.constant 9.99999974E-6 : f32
    %413 = vector.broadcast %cst_216 : f32 to vector<2x1xf32>
    %414 = arith.addf %410, %413 : vector<2x1xf32>
    %415 = math.rsqrt %414 : vector<2x1xf32>
    %416 = vector.broadcast %415 : vector<2x1xf32> to vector<2x64xf32>
    %417 = arith.mulf %412, %416 : vector<2x64xf32>
    %418 = vector.broadcast %398 : vector<1x64xf32> to vector<2x64xf32>
    %419 = arith.mulf %417, %418 : vector<2x64xf32>
    %420 = vector.broadcast %399 : vector<1x64xf32> to vector<2x64xf32>
    %421 = arith.addf %419, %420 : vector<2x64xf32>
    %c0_217 = arith.constant 0 : index
    %c0_218 = arith.constant 0 : index
    %422 = vector.load %arg19[%c0_217, %c0_218] : memref<64x128xbf16, #tpu.memory_space<vmem>>, vector<64x128xbf16>
    %423 = arith.truncf %421 : vector<2x64xf32> to vector<2x64xbf16>
    %cst_219 = arith.constant dense<0.000000e+00> : vector<2x128xf32>
    %424 = tpu.matmul %423, %422, %cst_219 {dimension_numbers = #tpu.dot_dimension_numbers<[1], [0], [0], [1], [0, 0, 1, 1], [], []>} : vector<2x64xbf16>, vector<64x128xbf16>, vector<2x128xf32> -> vector<2x128xf32>
    %c0_220 = arith.constant 0 : index
    %c0_221 = arith.constant 0 : index
    %425 = vector.load %arg20[%c0_220, %c0_221] : memref<1x128xf32, #tpu.memory_space<vmem>>, vector<1x128xf32>
    %426 = vector.broadcast %425 : vector<1x128xf32> to vector<2x128xf32>
    %427 = arith.addf %424, %426 : vector<2x128xf32>
    %c0_222 = arith.constant 0 : index
    %c0_223 = arith.constant 0 : index
    %428 = vector.load %arg21[%c0_222, %c0_223] : memref<2x128xf32, #tpu.memory_space<vmem>>, vector<2x128xf32>
    tpu.vector_store %arg21[%c0_222, %c0_223], %427 {strides = array<i32>} : memref<2x128xf32, #tpu.memory_space<vmem>>, vector<2x128xf32>,
    return
  }
}

</mosaic_0001>

<bundles_post_ra>
// kernel: squeeze.1
= control target key start
LH: loop header
LB: loop body
LE: loop exit
PB: predicated region body
PF: predicated region fallthrough
CT: control target
= control target key end

     0   :  { %vm3_vm0 = vcmask 130048   ;;  %s977_s12 = smov 112   ;;  %s1372_s0 = inlined_call_operand.vmem [shape: f32[2,1,32,48], index: 0, kind: input, shape index: {}]   ;;  %s1373_s1 = inlined_call_operand.vmem [shape: f32[2,2,16,3,16], index: 1, kind: output, shape index: {}]  }
   0x1   :  { %v871_v0 = vld [vmem:[%s1372_s0 + $0x10] sm:$0xff]   ;;  %v83_v1 = vld [vmem:[%s1372_s0] sm:$0xff]   ;;  %v872_v2 = vld [vmem:[%s1372_s0 + $0x18] sm:$0xff]  }
   0x2   :  { %102 = vrot.lane.b32.xlu1 %v871_v0, %s977_s12  ;;  %84 = vrot.lane.b32.xlu0 %v83_v1, %s977_s12  ;;  %v870_v3 = vld [vmem:[%s1372_s0 + $0x8] sm:$0xff]   ;;  %17 = vst.msk [vmem:[#allocation0 + $0x80] ss:$8 sm:$0xf] %vm3_vm0, %v871_v0   ;;  %v873_v5 = vld [vmem:[%s1372_s0 + $0x20] sm:$0xff]  }
   0x3   :  { %v874_v4 = vld [vmem:[%s1372_s0 + $0x28] sm:$0xff]   ;;  %19 = vst.msk [vmem:[#allocation0 + $0x80] ss:$8 sm:$0xf0] %vm3_vm0, %v871_v0   ;;  %v876_v6 = vld [vmem:[%s1372_s0 + $0x38] sm:$0xff]   ;;  %v875_v7 = vld [vmem:[%s1372_s0 + $0x30] sm:$0xff]  }
   0x4   :  { %4 = vst.msk [vmem:[#allocation0] ss:$8 sm:$0xf] %vm3_vm0, %v83_v1   ;;  %5 = vst.msk [vmem:[#allocation0] ss:$8 sm:$0xf0] %vm3_vm0, %v83_v1  }
   0x5   :  { %24 = vst.msk [vmem:[#allocation0 + $0xc0] ss:$8 sm:$0xf] %vm3_vm0, %v872_v2   ;;  %26 = vst.msk [vmem:[#allocation0 + $0xc0] ss:$8 sm:$0xf0] %vm3_vm0, %v872_v2  }
   0x6   :  { %10 = vst.msk [vmem:[#allocation0 + $0x40] ss:$8 sm:$0xf] %vm3_vm0, %v870_v3   ;;  %12 = vst.msk [vmem:[#allocation0 + $0x40] ss:$8 sm:$0xf0] %vm3_vm0, %v870_v3   ;;  %111 = vrot.lane.b32.xlu1 %v872_v2, %s977_s12  ;;  %93 = vrot.lane.b32.xlu0 %v870_v3, %s977_s12 }
   0x7   :  { %38 = vst.msk [vmem:[#allocation0 + $0x140] ss:$8 sm:$0xf] %vm3_vm0, %v874_v4   ;;  %40 = vst.msk [vmem:[#allocation0 + $0x140] ss:$8 sm:$0xf0] %vm3_vm0, %v874_v4  }
   0x8   :  { %v878_v8 = vld [vmem:[%s1372_s0 + $0x48] sm:$0xff]   ;;  %v877_v9 = vld [vmem:[%s1372_s0 + $0x40] sm:$0xff]   ;;  %v880_v10 = vld [vmem:[%s1372_s0 + $0x58] sm:$0xff]   ;;  %31 = vst.msk [vmem:[#allocation0 + $0x100] ss:$8 sm:$0xf] %vm3_vm0, %v873_v5  }
   0x9   :  { %33 = vst.msk [vmem:[#allocation0 + $0x100] ss:$8 sm:$0xf0] %vm3_vm0, %v873_v5   ;;  %52 = vst.msk [vmem:[#allocation0 + $0x1c0] ss:$8 sm:$0xf] %vm3_vm0, %v876_v6  }
   0xa   :  { %54 = vst.msk [vmem:[#allocation0 + $0x1c0] ss:$8 sm:$0xf0] %vm3_vm0, %v876_v6   ;;  %45 = vst.msk [vmem:[#allocation0 + $0x180] ss:$8 sm:$0xf] %vm3_vm0, %v875_v7   ;;  %129 = vrot.lane.b32.xlu1 %v874_v4, %s977_s12  ;;  %120 = vrot.lane.b32.xlu0 %v873_v5, %s977_s12 }
   0xb   :  { %47 = vst.msk [vmem:[#allocation0 + $0x180] ss:$8 sm:$0xf0] %vm3_vm0, %v875_v7   ;;  %v879_v11 = vld [vmem:[%s1372_s0 + $0x50] sm:$0xff]  }
   0xc   :  { %66 = vst.msk [vmem:[#allocation0 + $0x240] ss:$8 sm:$0xf] %vm3_vm0, %v878_v8   ;;  %68 = vst.msk [vmem:[#allocation0 + $0x240] ss:$8 sm:$0xf0] %vm3_vm0, %v878_v8  }
   0xd   :  { %59 = vst.msk [vmem:[#allocation0 + $0x200] ss:$8 sm:$0xf] %vm3_vm0, %v877_v9   ;;  %61 = vst.msk [vmem:[#allocation0 + $0x200] ss:$8 sm:$0xf0] %vm3_vm0, %v877_v9  }
   0xe   :  { %80 = vst.msk [vmem:[#allocation0 + $0x2c0] ss:$8 sm:$0xf] %vm3_vm0, %v880_v10   ;;  %82 = vst.msk [vmem:[#allocation0 + $0x2c0] ss:$8 sm:$0xf0] %vm3_vm0, %v880_v10   ;;  %147 = vrot.lane.b32.xlu1 %v876_v6, %s977_s12  ;;  %138 = vrot.lane.b32.xlu0 %v875_v7, %s977_s12 }
   0xf   :  { %73 = vst.msk [vmem:[#allocation0 + $0x280] ss:$8 sm:$0xf] %vm3_vm0, %v879_v11   ;;  %75 = vst.msk [vmem:[#allocation0 + $0x280] ss:$8 sm:$0xf0] %vm3_vm0, %v879_v11  }
  0x12   :  { %165 = vrot.lane.b32.xlu1 %v878_v8, %s977_s12  ;;  %156 = vrot.lane.b32.xlu0 %v877_v9, %s977_s12 }
  0x16   :  { %183 = vrot.lane.b32.xlu1 %v880_v10, %s977_s12  ;;  %174 = vrot.lane.b32.xlu0 %v879_v11, %s977_s12 }
  0x74   :  { %v103_v12 = vpop.permute.xlu1 %102   ;;  %v85_v13 = vpop.permute.xlu0 %84  }
  0x75   :  { %106 = vst.msk [vmem:[#allocation0 + $0x81] ss:$8 sm:$0xf] %vm3_vm0, %v103_v12   ;;  %108 = vst.msk [vmem:[#allocation0 + $0x81] ss:$8 sm:$0xf0] %vm3_vm0, %v103_v12  }
  0x76   :  { %88 = vst.msk [vmem:[#allocation0 + $0x1] ss:$8 sm:$0xf] %vm3_vm0, %v85_v13   ;;  %90 = vst.msk [vmem:[#allocation0 + $0x1] ss:$8 sm:$0xf0] %vm3_vm0, %v85_v13  }
  0x78   :  { %v112_v14 = vpop.permute.xlu1 %111   ;;  %v94_v15 = vpop.permute.xlu0 %93  }
  0x79   :  { %115 = vst.msk [vmem:[#allocation0 + $0xc1] ss:$8 sm:$0xf] %vm3_vm0, %v112_v14   ;;  %117 = vst.msk [vmem:[#allocation0 + $0xc1] ss:$8 sm:$0xf0] %vm3_vm0, %v112_v14  }
  0x7a   :  { %97 = vst.msk [vmem:[#allocation0 + $0x41] ss:$8 sm:$0xf] %vm3_vm0, %v94_v15   ;;  %99 = vst.msk [vmem:[#allocation0 + $0x41] ss:$8 sm:$0xf0] %vm3_vm0, %v94_v15  }
  0x7c   :  { %v286_v16 = vld [vmem:[#allocation0 + $0x80] sm:$0x3]  ;;  %v292_v17 = vld [vmem:[#allocation0 + $0x88] sm:$0x3]  ;;  %v298_v18 = vld [vmem:[#allocation0 + $0x90] sm:$0x3]  ;;  %v130_v19 = vpop.permute.xlu1 %129   ;;  %v121_v20 = vpop.permute.xlu0 %120  }
  0x7d   :  { %896 = vst [vmem:[%s1373_s1 + $0x20] sm:$0x3] %v286_v16  ;;  %897 = vst [vmem:[%s1373_s1 + $0x22] sm:$0x3] %v292_v17  ;;  %v304_v21 = vld [vmem:[#allocation0 + $0x98] sm:$0x3] }
  0x7e   :  { %898 = vst [vmem:[%s1373_s1 + $0x24] sm:$0x3] %v298_v18  ;;  %v310_v22 = vld [vmem:[#allocation0 + $0xa0] sm:$0x3]  ;;  %v316_v23 = vld [vmem:[#allocation0 + $0xa8] sm:$0x3] }
  0x7f   :  { %133 = vst.msk [vmem:[#allocation0 + $0x141] ss:$8 sm:$0xf] %vm3_vm0, %v130_v19   ;;  %135 = vst.msk [vmem:[#allocation0 + $0x141] ss:$8 sm:$0xf0] %vm3_vm0, %v130_v19  }
  0x80   :  { %124 = vst.msk [vmem:[#allocation0 + $0x101] ss:$8 sm:$0xf] %vm3_vm0, %v121_v20   ;;  %126 = vst.msk [vmem:[#allocation0 + $0x101] ss:$8 sm:$0xf0] %vm3_vm0, %v121_v20   ;;  %v148_v33 = vpop.permute.xlu1 %147   ;;  %v139_v34 = vpop.permute.xlu0 %138  }
  0x81   :  { %899 = vst [vmem:[%s1373_s1 + $0x26] sm:$0x3] %v304_v21  ;;  %900 = vst [vmem:[%s1373_s1 + $0x28] sm:$0x3] %v310_v22  ;;  %v322_v24 = vld [vmem:[#allocation0 + $0xb0] sm:$0x3] }
  0x82   :  { %901 = vst [vmem:[%s1373_s1 + $0x2a] sm:$0x3] %v316_v23  ;;  %v328_v25 = vld [vmem:[#allocation0 + $0xb8] sm:$0x3]  ;;  %v193_v26 = vld [vmem:[#allocation0] sm:$0x3] }
  0x83   :  { %902 = vst [vmem:[%s1373_s1 + $0x2c] sm:$0x3] %v322_v24  ;;  %903 = vst [vmem:[%s1373_s1 + $0x2e] sm:$0x3] %v328_v25  ;;  %v197_v27 = vld [vmem:[#allocation0 + $0x8] sm:$0x3] }
  0x84   :  { %195 = vst [vmem:[%s1373_s1] sm:$0x3] %v193_v26  ;;  %v202_v28 = vld [vmem:[#allocation0 + $0x10] sm:$0x3]  ;;  %v208_v29 = vld [vmem:[#allocation0 + $0x18] sm:$0x3]  ;;  %v166_v47 = vpop.permute.xlu1 %165   ;;  %v157_v48 = vpop.permute.xlu0 %156  }
  0x85   :  { %881 = vst [vmem:[%s1373_s1 + $0x2] sm:$0x3] %v197_v27  ;;  %882 = vst [vmem:[%s1373_s1 + $0x4] sm:$0x3] %v202_v28  ;;  %v214_v30 = vld [vmem:[#allocation0 + $0x20] sm:$0x3] }
  0x86   :  { %883 = vst [vmem:[%s1373_s1 + $0x6] sm:$0x3] %v208_v29  ;;  %v220_v31 = vld [vmem:[#allocation0 + $0x28] sm:$0x3]  ;;  %v226_v32 = vld [vmem:[#allocation0 + $0x30] sm:$0x3] }
  0x87   :  { %884 = vst [vmem:[%s1373_s1 + $0x8] sm:$0x3] %v214_v30  ;;  %885 = vst [vmem:[%s1373_s1 + $0xa] sm:$0x3] %v220_v31  ;;  %v232_v35 = vld [vmem:[#allocation0 + $0x38] sm:$0x3] }
  0x88   :  { %886 = vst [vmem:[%s1373_s1 + $0xc] sm:$0x3] %v226_v32  ;;  %v334_v36 = vld [vmem:[#allocation0 + $0xc0] sm:$0x3]  ;;  %v340_v37 = vld [vmem:[#allocation0 + $0xc8] sm:$0x3]  ;;  %v184_v61 = vpop.permute.xlu1 %183   ;;  %v175_v62 = vpop.permute.xlu0 %174  }
  0x89   :  { %151 = vst.msk [vmem:[#allocation0 + $0x1c1] ss:$8 sm:$0xf] %vm3_vm0, %v148_v33   ;;  %153 = vst.msk [vmem:[#allocation0 + $0x1c1] ss:$8 sm:$0xf0] %vm3_vm0, %v148_v33  }
  0x8a   :  { %142 = vst.msk [vmem:[#allocation0 + $0x181] ss:$8 sm:$0xf] %vm3_vm0, %v139_v34   ;;  %144 = vst.msk [vmem:[#allocation0 + $0x181] ss:$8 sm:$0xf0] %vm3_vm0, %v139_v34  }
  0x8b   :  { %887 = vst [vmem:[%s1373_s1 + $0xe] sm:$0x3] %v232_v35  ;;  %904 = vst [vmem:[%s1373_s1 + $0x30] sm:$0x3] %v334_v36  ;;  %v346_v38 = vld [vmem:[#allocation0 + $0xd0] sm:$0x3] }
  0x8c   :  { %905 = vst [vmem:[%s1373_s1 + $0x32] sm:$0x3] %v340_v37  ;;  %v352_v39 = vld [vmem:[#allocation0 + $0xd8] sm:$0x3]  ;;  %v358_v40 = vld [vmem:[#allocation0 + $0xe0] sm:$0x3] }
  0x8d   :  { %906 = vst [vmem:[%s1373_s1 + $0x34] sm:$0x3] %v346_v38  ;;  %907 = vst [vmem:[%s1373_s1 + $0x36] sm:$0x3] %v352_v39  ;;  %v364_v41 = vld [vmem:[#allocation0 + $0xe8] sm:$0x3] }
  0x8e   :  { %908 = vst [vmem:[%s1373_s1 + $0x38] sm:$0x3] %v358_v40  ;;  %v370_v42 = vld [vmem:[#allocation0 + $0xf0] sm:$0x3]  ;;  %v376_v43 = vld [vmem:[#allocation0 + $0xf8] sm:$0x3] }
  0x8f   :  { %909 = vst [vmem:[%s1373_s1 + $0x3a] sm:$0x3] %v364_v41  ;;  %910 = vst [vmem:[%s1373_s1 + $0x3c] sm:$0x3] %v370_v42  ;;  %v238_v44 = vld [vmem:[#allocation0 + $0x40] sm:$0x3] }
  0x90   :  { %911 = vst [vmem:[%s1373_s1 + $0x3e] sm:$0x3] %v376_v43  ;;  %v244_v45 = vld [vmem:[#allocation0 + $0x48] sm:$0x3]  ;;  %v250_v46 = vld [vmem:[#allocation0 + $0x50] sm:$0x3] }
  0x91   :  { %888 = vst [vmem:[%s1373_s1 + $0x10] sm:$0x3] %v238_v44  ;;  %889 = vst [vmem:[%s1373_s1 + $0x12] sm:$0x3] %v244_v45  ;;  %v256_v49 = vld [vmem:[#allocation0 + $0x58] sm:$0x3] }
  0x92   :  { %890 = vst [vmem:[%s1373_s1 + $0x14] sm:$0x3] %v250_v46  ;;  %v262_v50 = vld [vmem:[#allocation0 + $0x60] sm:$0x3]  ;;  %v268_v51 = vld [vmem:[#allocation0 + $0x68] sm:$0x3] }
  0x93   :  { %169 = vst.msk [vmem:[#allocation0 + $0x241] ss:$8 sm:$0xf] %vm3_vm0, %v166_v47   ;;  %171 = vst.msk [vmem:[#allocation0 + $0x241] ss:$8 sm:$0xf0] %vm3_vm0, %v166_v47  }
  0x94   :  { %160 = vst.msk [vmem:[#allocation0 + $0x201] ss:$8 sm:$0xf] %vm3_vm0, %v157_v48   ;;  %162 = vst.msk [vmem:[#allocation0 + $0x201] ss:$8 sm:$0xf0] %vm3_vm0, %v157_v48  }
  0x95   :  { %891 = vst [vmem:[%s1373_s1 + $0x16] sm:$0x3] %v256_v49  ;;  %892 = vst [vmem:[%s1373_s1 + $0x18] sm:$0x3] %v262_v50  ;;  %v274_v52 = vld [vmem:[#allocation0 + $0x70] sm:$0x3] }
  0x96   :  { %893 = vst [vmem:[%s1373_s1 + $0x1a] sm:$0x3] %v268_v51  ;;  %v280_v53 = vld [vmem:[#allocation0 + $0x78] sm:$0x3]  ;;  %v430_v54 = vld [vmem:[#allocation0 + $0x140] sm:$0x3] }
  0x97   :  { %894 = vst [vmem:[%s1373_s1 + $0x1c] sm:$0x3] %v274_v52  ;;  %895 = vst [vmem:[%s1373_s1 + $0x1e] sm:$0x3] %v280_v53  ;;  %v436_v55 = vld [vmem:[#allocation0 + $0x148] sm:$0x3] }
  0x98   :  { %920 = vst [vmem:[%s1373_s1 + $0x50] sm:$0x3] %v430_v54  ;;  %v442_v56 = vld [vmem:[#allocation0 + $0x150] sm:$0x3]  ;;  %v448_v57 = vld [vmem:[#allocation0 + $0x158] sm:$0x3] }
  0x99   :  { %921 = vst [vmem:[%s1373_s1 + $0x52] sm:$0x3] %v436_v55  ;;  %922 = vst [vmem:[%s1373_s1 + $0x54] sm:$0x3] %v442_v56  ;;  %v454_v58 = vld [vmem:[#allocation0 + $0x160] sm:$0x3] }
  0x9a   :  { %923 = vst [vmem:[%s1373_s1 + $0x56] sm:$0x3] %v448_v57  ;;  %v460_v59 = vld [vmem:[#allocation0 + $0x168] sm:$0x3]  ;;  %v466_v60 = vld [vmem:[#allocation0 + $0x170] sm:$0x3] }
  0x9b   :  { %924 = vst [vmem:[%s1373_s1 + $0x58] sm:$0x3] %v454_v58  ;;  %925 = vst [vmem:[%s1373_s1 + $0x5a] sm:$0x3] %v460_v59  ;;  %v472_v63 = vld [vmem:[#allocation0 + $0x178] sm:$0x3] }
  0x9c   :  { %926 = vst [vmem:[%s1373_s1 + $0x5c] sm:$0x3] %v466_v60  ;;  %v382_v0 = vld [vmem:[#allocation0 + $0x100] sm:$0x3]  ;;  %v388_v1 = vld [vmem:[#allocation0 + $0x108] sm:$0x3] }
  0x9d   :  { %187 = vst.msk [vmem:[#allocation0 + $0x2c1] ss:$8 sm:$0xf] %vm3_vm0, %v184_v61   ;;  %189 = vst.msk [vmem:[#allocation0 + $0x2c1] ss:$8 sm:$0xf0] %vm3_vm0, %v184_v61  }
  0x9e   :  { %178 = vst.msk [vmem:[#allocation0 + $0x281] ss:$8 sm:$0xf] %vm3_vm0, %v175_v62   ;;  %180 = vst.msk [vmem:[#allocation0 + $0x281] ss:$8 sm:$0xf0] %vm3_vm0, %v175_v62  }
  0x9f   :  { %927 = vst [vmem:[%s1373_s1 + $0x5e] sm:$0x3] %v472_v63  ;;  %912 = vst [vmem:[%s1373_s1 + $0x40] sm:$0x3] %v382_v0  ;;  %v394_v2 = vld [vmem:[#allocation0 + $0x110] sm:$0x3] }
  0xa0   :  { %913 = vst [vmem:[%s1373_s1 + $0x42] sm:$0x3] %v388_v1  ;;  %v400_v3 = vld [vmem:[#allocation0 + $0x118] sm:$0x3]  ;;  %v406_v4 = vld [vmem:[#allocation0 + $0x120] sm:$0x3] }
  0xa1   :  { %914 = vst [vmem:[%s1373_s1 + $0x44] sm:$0x3] %v394_v2  ;;  %915 = vst [vmem:[%s1373_s1 + $0x46] sm:$0x3] %v400_v3  ;;  %v412_v5 = vld [vmem:[#allocation0 + $0x128] sm:$0x3] }
  0xa2   :  { %916 = vst [vmem:[%s1373_s1 + $0x48] sm:$0x3] %v406_v4  ;;  %v418_v6 = vld [vmem:[#allocation0 + $0x130] sm:$0x3]  ;;  %v424_v7 = vld [vmem:[#allocation0 + $0x138] sm:$0x3] }
  0xa3   :  { %917 = vst [vmem:[%s1373_s1 + $0x4a] sm:$0x3] %v412_v5  ;;  %918 = vst [vmem:[%s1373_s1 + $0x4c] sm:$0x3] %v418_v6  ;;  %v526_v8 = vld [vmem:[#allocation0 + $0x1c0] sm:$0x3] }
  0xa4   :  { %919 = vst [vmem:[%s1373_s1 + $0x4e] sm:$0x3] %v424_v7  ;;  %v532_v9 = vld [vmem:[#allocation0 + $0x1c8] sm:$0x3]  ;;  %v538_v10 = vld [vmem:[#allocation0 + $0x1d0] sm:$0x3] }
  0xa5   :  { %936 = vst [vmem:[%s1373_s1 + $0x70] sm:$0x3] %v526_v8  ;;  %937 = vst [vmem:[%s1373_s1 + $0x72] sm:$0x3] %v532_v9  ;;  %v544_v11 = vld [vmem:[#allocation0 + $0x1d8] sm:$0x3] }
  0xa6   :  { %938 = vst [vmem:[%s1373_s1 + $0x74] sm:$0x3] %v538_v10  ;;  %v550_v12 = vld [vmem:[#allocation0 + $0x1e0] sm:$0x3]  ;;  %v556_v13 = vld [vmem:[#allocation0 + $0x1e8] sm:$0x3] }
  0xa7   :  { %939 = vst [vmem:[%s1373_s1 + $0x76] sm:$0x3] %v544_v11  ;;  %940 = vst [vmem:[%s1373_s1 + $0x78] sm:$0x3] %v550_v12  ;;  %v562_v14 = vld [vmem:[#allocation0 + $0x1f0] sm:$0x3] }
  0xa8   :  { %941 = vst [vmem:[%s1373_s1 + $0x7a] sm:$0x3] %v556_v13  ;;  %v568_v15 = vld [vmem:[#allocation0 + $0x1f8] sm:$0x3]  ;;  %v478_v16 = vld [vmem:[#allocation0 + $0x180] sm:$0x3] }
  0xa9   :  { %942 = vst [vmem:[%s1373_s1 + $0x7c] sm:$0x3] %v562_v14  ;;  %943 = vst [vmem:[%s1373_s1 + $0x7e] sm:$0x3] %v568_v15  ;;  %v484_v17 = vld [vmem:[#allocation0 + $0x188] sm:$0x3] }
  0xaa   :  { %928 = vst [vmem:[%s1373_s1 + $0x60] sm:$0x3] %v478_v16  ;;  %v490_v18 = vld [vmem:[#allocation0 + $0x190] sm:$0x3]  ;;  %v496_v19 = vld [vmem:[#allocation0 + $0x198] sm:$0x3] }
  0xab   :  { %929 = vst [vmem:[%s1373_s1 + $0x62] sm:$0x3] %v484_v17  ;;  %930 = vst [vmem:[%s1373_s1 + $0x64] sm:$0x3] %v490_v18  ;;  %v502_v20 = vld [vmem:[#allocation0 + $0x1a0] sm:$0x3] }
  0xac   :  { %931 = vst [vmem:[%s1373_s1 + $0x66] sm:$0x3] %v496_v19  ;;  %v508_v21 = vld [vmem:[#allocation0 + $0x1a8] sm:$0x3]  ;;  %v514_v22 = vld [vmem:[#allocation0 + $0x1b0] sm:$0x3] }
  0xad   :  { %932 = vst [vmem:[%s1373_s1 + $0x68] sm:$0x3] %v502_v20  ;;  %933 = vst [vmem:[%s1373_s1 + $0x6a] sm:$0x3] %v508_v21  ;;  %v520_v23 = vld [vmem:[#allocation0 + $0x1b8] sm:$0x3] }
  0xae   :  { %934 = vst [vmem:[%s1373_s1 + $0x6c] sm:$0x3] %v514_v22  ;;  %v622_v24 = vld [vmem:[#allocation0 + $0x240] sm:$0x3]  ;;  %v628_v25 = vld [vmem:[#allocation0 + $0x248] sm:$0x3] }
  0xaf   :  { %935 = vst [vmem:[%s1373_s1 + $0x6e] sm:$0x3] %v520_v23  ;;  %952 = vst [vmem:[%s1373_s1 + $0x90] sm:$0x3] %v622_v24  ;;  %v634_v26 = vld [vmem:[#allocation0 + $0x250] sm:$0x3] }
  0xb0   :  { %953 = vst [vmem:[%s1373_s1 + $0x92] sm:$0x3] %v628_v25  ;;  %v640_v27 = vld [vmem:[#allocation0 + $0x258] sm:$0x3]  ;;  %v646_v28 = vld [vmem:[#allocation0 + $0x260] sm:$0x3] }
  0xb1   :  { %954 = vst [vmem:[%s1373_s1 + $0x94] sm:$0x3] %v634_v26  ;;  %955 = vst [vmem:[%s1373_s1 + $0x96] sm:$0x3] %v640_v27  ;;  %v652_v29 = vld [vmem:[#allocation0 + $0x268] sm:$0x3] }
  0xb2   :  { %956 = vst [vmem:[%s1373_s1 + $0x98] sm:$0x3] %v646_v28  ;;  %v658_v30 = vld [vmem:[#allocation0 + $0x270] sm:$0x3]  ;;  %v664_v31 = vld [vmem:[#allocation0 + $0x278] sm:$0x3] }
  0xb3   :  { %957 = vst [vmem:[%s1373_s1 + $0x9a] sm:$0x3] %v652_v29  ;;  %958 = vst [vmem:[%s1373_s1 + $0x9c] sm:$0x3] %v658_v30  ;;  %v574_v32 = vld [vmem:[#allocation0 + $0x200] sm:$0x3] }
  0xb4   :  { %959 = vst [vmem:[%s1373_s1 + $0x9e] sm:$0x3] %v664_v31  ;;  %v580_v33 = vld [vmem:[#allocation0 + $0x208] sm:$0x3]  ;;  %v586_v34 = vld [vmem:[#allocation0 + $0x210] sm:$0x3] }
  0xb5   :  { %944 = vst [vmem:[%s1373_s1 + $0x80] sm:$0x3] %v574_v32  ;;  %945 = vst [vmem:[%s1373_s1 + $0x82] sm:$0x3] %v580_v33  ;;  %v592_v35 = vld [vmem:[#allocation0 + $0x218] sm:$0x3] }
  0xb6   :  { %946 = vst [vmem:[%s1373_s1 + $0x84] sm:$0x3] %v586_v34  ;;  %v598_v36 = vld [vmem:[#allocation0 + $0x220] sm:$0x3]  ;;  %v604_v37 = vld [vmem:[#allocation0 + $0x228] sm:$0x3] }
  0xb7   :  { %947 = vst [vmem:[%s1373_s1 + $0x86] sm:$0x3] %v592_v35  ;;  %948 = vst [vmem:[%s1373_s1 + $0x88] sm:$0x3] %v598_v36  ;;  %v610_v38 = vld [vmem:[#allocation0 + $0x230] sm:$0x3] }
  0xb8   :  { %949 = vst [vmem:[%s1373_s1 + $0x8a] sm:$0x3] %v604_v37  ;;  %v616_v39 = vld [vmem:[#allocation0 + $0x238] sm:$0x3]  ;;  %v718_v40 = vld [vmem:[#allocation0 + $0x2c0] sm:$0x3] }
  0xb9   :  { %950 = vst [vmem:[%s1373_s1 + $0x8c] sm:$0x3] %v610_v38  ;;  %951 = vst [vmem:[%s1373_s1 + $0x8e] sm:$0x3] %v616_v39  ;;  %v724_v41 = vld [vmem:[#allocation0 + $0x2c8] sm:$0x3] }
  0xba   :  { %968 = vst [vmem:[%s1373_s1 + $0xb0] sm:$0x3] %v718_v40  ;;  %v730_v42 = vld [vmem:[#allocation0 + $0x2d0] sm:$0x3]  ;;  %v736_v43 = vld [vmem:[#allocation0 + $0x2d8] sm:$0x3] }
  0xbb   :  { %969 = vst [vmem:[%s1373_s1 + $0xb2] sm:$0x3] %v724_v41  ;;  %970 = vst [vmem:[%s1373_s1 + $0xb4] sm:$0x3] %v730_v42  ;;  %v742_v44 = vld [vmem:[#allocation0 + $0x2e0] sm:$0x3] }
  0xbc   :  { %971 = vst [vmem:[%s1373_s1 + $0xb6] sm:$0x3] %v736_v43  ;;  %v748_v45 = vld [vmem:[#allocation0 + $0x2e8] sm:$0x3]  ;;  %v754_v46 = vld [vmem:[#allocation0 + $0x2f0] sm:$0x3] }
  0xbd   :  { %972 = vst [vmem:[%s1373_s1 + $0xb8] sm:$0x3] %v742_v44  ;;  %973 = vst [vmem:[%s1373_s1 + $0xba] sm:$0x3] %v748_v45  ;;  %v760_v47 = vld [vmem:[#allocation0 + $0x2f8] sm:$0x3] }
  0xbe   :  { %974 = vst [vmem:[%s1373_s1 + $0xbc] sm:$0x3] %v754_v46  ;;  %v670_v48 = vld [vmem:[#allocation0 + $0x280] sm:$0x3]  ;;  %v676_v49 = vld [vmem:[#allocation0 + $0x288] sm:$0x3] }
  0xbf   :  { %975 = vst [vmem:[%s1373_s1 + $0xbe] sm:$0x3] %v760_v47  ;;  %960 = vst [vmem:[%s1373_s1 + $0xa0] sm:$0x3] %v670_v48  ;;  %v682_v50 = vld [vmem:[#allocation0 + $0x290] sm:$0x3] }
  0xc0   :  { %961 = vst [vmem:[%s1373_s1 + $0xa2] sm:$0x3] %v676_v49  ;;  %v688_v51 = vld [vmem:[#allocation0 + $0x298] sm:$0x3]  ;;  %v694_v52 = vld [vmem:[#allocation0 + $0x2a0] sm:$0x3] }
  0xc1   :  { %962 = vst [vmem:[%s1373_s1 + $0xa4] sm:$0x3] %v682_v50  ;;  %963 = vst [vmem:[%s1373_s1 + $0xa6] sm:$0x3] %v688_v51  ;;  %v700_v53 = vld [vmem:[#allocation0 + $0x2a8] sm:$0x3] }
  0xc2   :  { %964 = vst [vmem:[%s1373_s1 + $0xa8] sm:$0x3] %v694_v52  ;;  %v706_v54 = vld [vmem:[#allocation0 + $0x2b0] sm:$0x3]  ;;  %v712_v55 = vld [vmem:[#allocation0 + $0x2b8] sm:$0x3] }
  0xc3   :  { %965 = vst [vmem:[%s1373_s1 + $0xaa] sm:$0x3] %v700_v53  ;;  %966 = vst [vmem:[%s1373_s1 + $0xac] sm:$0x3] %v706_v54 }
  0xc4   :  { %967 = vst [vmem:[%s1373_s1 + $0xae] sm:$0x3] %v712_v55 }

// kernel: ast_forward.1
= control target key start
LH: loop header
LB: loop body
LE: loop exit
PB: predicated region body
PF: predicated region fallthrough
CT: control target
= control target key end

     0   :  { %s5350_s0 = inlined_call_operand.vmem [shape: f32[16,256], index: 0, kind: input, shape index: {}]   ;;  %s5351_s1 = inlined_call_operand.vmem [shape: bf16[256,64], index: 1, kind: input, shape index: {}]   ;;  %s5352_s2 = inlined_call_operand.vmem [shape: f32[8,64], index: 2, kind: input, shape index: {}]   ;;  %s5353_s3 = inlined_call_operand.vmem [shape: f32[2,1,64], index: 3, kind: input, shape index: {}]   ;;  %s5354_s4 = inlined_call_operand.vmem [shape: f32[2,1,64], index: 4, kind: input, shape index: {}]   ;;  %s5355_s5 = inlined_call_operand.vmem [shape: bf16[12,64,32], index: 5, kind: input, shape index: {}]   ;;  %s5356_s6 = inlined_call_operand.vmem [shape: f32[12,1,32], index: 6, kind: input, shape index: {}]   ;;  %s5357_s7 = inlined_call_operand.vmem [shape: bf16[4,32,64], index: 7, kind: input, shape index: {}]   ;;  %s5358_s8 = inlined_call_operand.vmem [shape: f32[2,1,64], index: 8, kind: input, shape index: {}]   ;;  %s5359_s9 = inlined_call_operand.vmem [shape: f32[2,1,64], index: 9, kind: input, shape index: {}]   ;;  %s5360_s10 = inlined_call_operand.vmem [shape: f32[2,1,64], index: 10, kind: input, shape index: {}]   ;;  %s5361_s11 = inlined_call_operand.vmem [shape: bf16[2,64,256], index: 11, kind: input, shape index: {}]   ;;  %s5362_s12 = inlined_call_operand.vmem [shape: f32[2,1,256], index: 12, kind: input, shape index: {}]   ;;  %s5363_s13 = inlined_call_operand.vmem [shape: bf16[2,256,64], index: 13, kind: input, shape index: {}]   ;;  %s5364_s14 = inlined_call_operand.vmem [shape: f32[2,1,64], index: 14, kind: input, shape index: {}]   ;;  %s5365_s15 = inlined_call_operand.vmem [shape: f32[1,64], index: 15, kind: input, shape index: {}]   ;;  %s5366_s16 = inlined_call_operand.vmem [shape: f32[1,64], index: 16, kind: input, shape index: {}]   ;;  %s5367_s17 = inlined_call_operand.vmem [shape: f32[1,64], index: 17, kind: input, shape index: {}]   ;;  %s5368_s18 = inlined_call_operand.vmem [shape: f32[1,64], index: 18, kind: input, shape index: {}]   ;;  %s5369_s19 = inlined_call_operand.vmem [shape: bf16[64,128], index: 19, kind: input, shape index: {}]   ;;  %s5370_s20 = inlined_call_operand.vmem [shape: f32[1,128], index: 20, kind: input, shape index: {}]   ;;  %s5371_s21 = inlined_call_operand.hbm [shape: f32[2,128], index: 21, kind: output, shape index: {}]  }
   0x1   :  { %5377 = sst [smem:[#allocation5_spill]] %s5350_s0 }
   0x2   :  { %5378 = sst [smem:[#allocation6_spill]] %s5351_s1 }
   0x3   :  { %5379 = sst [smem:[#allocation7_spill]] %s5352_s2 }
   0x4   :  { %5380 = sst [smem:[#allocation8_spill]] %s5353_s3 }
   0x5   :  { %5381 = sst [smem:[#allocation9_spill]] %s5354_s4 }
   0x6   :  { %5382 = sst [smem:[#allocation10_spill]] %s5355_s5 }
   0x7   :  { %s5383_s26 = sld [smem:[#allocation6_spill]]  ;;  %s5384_s22 = sld [smem:[#allocation5_spill]] }
   0xd   :  { %v4198_v0 = vld [vmem:[%s5383_s26 + $0x40] sm:$0xff]   ;;  %v4200_v2 = vld [vmem:[%s5383_s26 + $0x48] sm:$0xff]   ;;  %v4202_v4 = vld [vmem:[%s5383_s26 + $0x50] sm:$0xff]  }
   0xe   :  { %v4199_v1 = vld [vmem:[%s5383_s26] sm:$0xff]   ;;  %3735 = vmatprep.subr.bf16.mxu0 %v4198_v0  ;;  %v4201_v3 = vld [vmem:[%s5383_s26 + $0x8] sm:$0xff]   ;;  %v4203_v5 = vld [vmem:[%s5383_s26 + $0x10] sm:$0xff]  }
   0xf   :  { %3736 = vmatpush3.bf16.msra.mxu0 %v4199_v1  ;;  %v4204_v6 = vld [vmem:[%s5383_s26 + $0x58] sm:$0xff]   ;;  %v4206_v8 = vld [vmem:[%s5383_s26 + $0x60] sm:$0xff]   ;;  %v4208_v10 = vld [vmem:[%s5383_s26 + $0x68] sm:$0xff]  }
  0x10   :  { %3737 = vmatprep.subr.bf16.mxu0 %v4200_v2  ;;  %v4205_v7 = vld [vmem:[%s5383_s26 + $0x18] sm:$0xff]   ;;  %v4207_v9 = vld [vmem:[%s5383_s26 + $0x20] sm:$0xff]   ;;  %v71_v11 = vld [vmem:[%s5384_s22 + $0x8] sm:$0xff] }
  0x11   :  { %v73_v12 = vld [vmem:[%s5384_s22 + $0x18] sm:$0xff]  ;;  %v4209_v13 = vld [vmem:[%s5383_s26 + $0x28] sm:$0xff]   ;;  %v4210_v15 = vld [vmem:[%s5383_s26 + $0x70] sm:$0xff]  }
  0x12   :  { %v107_v14 = vpack.c.bf16 %v73_v12, %v71_v11  ;;  %v4211_v16 = vld [vmem:[%s5383_s26 + $0x30] sm:$0xff]   ;;  %v4212_v17 = vld [vmem:[%s5383_s26 + $0x78] sm:$0xff]   ;;  %v70_v19 = vld [vmem:[%s5384_s22] sm:$0xff] }
  0x13   :  { %3738 = vmatpush3.bf16.msra.mxu0 %v4201_v3  ;;  %v4213_v18 = vld [vmem:[%s5383_s26 + $0x38] sm:$0xff]   ;;  %v72_v20 = vld [vmem:[%s5384_s22 + $0x10] sm:$0xff] }
  0x14   :  { %3739 = vmatprep.subr.bf16.mxu0 %v4202_v4  ;;  %236 = vmatprep.mubr.bf16.mxu0 %v107_v14  ;;  %v106_v21 = vpack.c.bf16 %v72_v20, %v70_v19 }
  0x17   :  { %3740 = vmatpush3.bf16.msra.mxu0 %v4203_v5 }
  0x18   :  { %3741 = vmatprep.subr.bf16.mxu0 %v4204_v6 }
  0x1b   :  { %3742 = vmatpush3.bf16.msra.mxu0 %v4205_v7 }
  0x1c   :  { %3743 = vmatprep.subr.bf16.mxu0 %v4206_v8 }
  0x1f   :  { %3744 = vmatpush3.bf16.msra.mxu0 %v4207_v9 }
  0x20   :  { %3745 = vmatprep.subr.bf16.mxu0 %v4208_v10 }
  0x23   :  { %3746 = vmatpush3.bf16.msra.mxu0 %v4209_v13 }
  0x24   :  { %3747 = vmatprep.subr.bf16.mxu0 %v4210_v15 }
  0x27   :  { %3748 = vmatpush3.bf16.msra.mxu0 %v4211_v16 }
  0x28   :  { %3749 = vmatprep.subr.bf16.mxu0 %v4212_v17 }
  0x2b   :  { %3750 = vmatpush3.bf16.msra.mxu0 %v4213_v18 }
  0x2e   :  { %237 = vmatmul.mubr.bf16.vlgmr.msra.gmra.mrb[0].mxu0 %v106_v21 }
  0x2f   :  { %26 = vsyncpa [#allocation3], 0  ;;  %s5385_s27 = sld [smem:[#allocation7_spill]]  ;;  %vm250_vm0 = vcmask 523264   ;;  %s5386_s3 = sld [smem:[#allocation10_spill]]  ;;  %v4424_v44 = vmov 0.0  }
  0x30   :  { %3910 = vmatprep.subr.bf16.mxu1 %v4424_v44  ;;  %3934 = vmatprep.subr.bf16.mxu0 %v4424_v44  ;;  %vm4425_vm1 = vmmov 0   ;;  %s5387_s0 = sld [smem:[#allocation8_spill]]  ;;  %s5388_s5 = sld [smem:[#allocation9_spill]]  ;;  %v3437_v9 = vld [vmem:[%s5356_s6 + $0x4] ss:$0 sm:$0xff]  ;;  %vm671_vm2 = vcmask 1043456  }
  0x31   :  { %3918 = vmatprep.mubr.msk.bf16.mxu1 %vm4425_vm1, %v4424_v44  ;;  %3942 = vmatprep.mubr.msk.bf16.mxu0 %vm4425_vm1, %v4424_v44  ;;  %v3422_v21 = vld [vmem:[%s5356_s6 + $0x2] ss:$0 sm:$0xff]  ;;  %vm546_vm3 = vcmask 261120   ;;  %vm641_vm4 = vcmask 64512   ;;  %vm3234_vm5 = vcmask 1041409   ;;  %vm3237_vm6 = vcmask 517120  }
  0x35   :  { %v245_v24 = vld [vmem:[%s5385_s27] sm:$0xff]  ;;  %v4216_v46 = vld [vmem:[%s5386_s3 + $0x8] sm:$0xff]   ;;  %v4218_v48 = vld [vmem:[%s5386_s3 + $0x10] sm:$0xff]  }
  0x36   :  { %v4214_v43 = vld [vmem:[%s5386_s3] sm:$0xff]   ;;  %v4217_v47 = vld [vmem:[%s5386_s3 + $0x88] sm:$0xff]   ;;  %v4219_v49 = vld [vmem:[%s5386_s3 + $0x90] sm:$0xff]  }
  0x37   :  { %v4215_v45 = vld [vmem:[%s5386_s3 + $0x80] sm:$0xff]   ;;  %3911 = vmatpush3.bf16.msra.mxu1 %v4214_v43  ;;  %v4220_v50 = vld [vmem:[%s5386_s3 + $0x18] sm:$0xff]   ;;  %v4223_v6 = vld [vmem:[%s5386_s3 + $0x48] sm:$0xff]  }
  0x38   :  { %3935 = vmatpush3.bf16.msra.mxu0 %v4215_v45  ;;  %3912 = vmatprep.subr.bf16.mxu1 %v4424_v44  ;;  %v4221_v51 = vld [vmem:[%s5386_s3 + $0x98] sm:$0xff]   ;;  %v3405_v60 = vld [vmem:[%s5387_s0] ss:$0 sm:$0xff]  ;;  %v4224_v7 = vld [vmem:[%s5386_s3 + $0x50] sm:$0xff]  }
  0x39   :  { %3936 = vmatprep.subr.bf16.mxu0 %v4424_v44  ;;  %v3406_v0 = vld [vmem:[%s5388_s5] ss:$0 sm:$0xff]  ;;  %v4225_v8 = vld [vmem:[%s5386_s3 + $0x58] sm:$0xff]  }
  0x3a   :  { %v4222_v4 = vld [vmem:[%s5386_s3 + $0x40] sm:$0xff]  }
  0x3b   :  { %3913 = vmatpush3.bf16.msra.mxu1 %v4216_v46 }
  0x3c   :  { %3937 = vmatpush3.bf16.msra.mxu0 %v4217_v47  ;;  %3914 = vmatprep.subr.bf16.mxu1 %v4424_v44 }
  0x3d   :  { %3938 = vmatprep.subr.bf16.mxu0 %v4424_v44 }
  0x3f   :  { %3915 = vmatpush3.bf16.msra.mxu1 %v4218_v48 }
  0x40   :  { %3939 = vmatpush3.bf16.msra.mxu0 %v4219_v49  ;;  %3916 = vmatprep.subr.bf16.mxu1 %v4424_v44 }
  0x41   :  { %3940 = vmatprep.subr.bf16.mxu0 %v4424_v44 }
  0x43   :  { %3917 = vmatpush3.bf16.msra.mxu1 %v4220_v50 }
  0x44   :  { %3941 = vmatpush3.bf16.msra.mxu0 %v4221_v51  ;;  %3922 = vmatprep.subr.bf16.mxu1 %v4424_v44 }
  0x45   :  { %3958 = vmatprep.subr.bf16.mxu0 %v4424_v44 }
 0x101   :  { %v3751_v22 = vpop.f32.mrb[0].mxu0 }
 0x102   :  { %v3752_v23 = vpop.f32.mrb[1].mxu0 }
 0x103   :  { %v3753_v25 = vadd.f32 %v3752_v23, %v3751_v22  ;;  %v3754_v26 = vpop.f32.mrb[2].mxu0 }
 0x104   :  { %v3755_v27 = vpop.f32.mrb[3].mxu0 }
 0x105   :  { %v4601_v28 = vadd.f32 %v3753_v25, %v245_v24  ;;  %v3756_v29 = vadd.f32 %v3755_v27, %v3754_v26 }
 0x107   :  { %v4603_v30 = vadd.f32 %v3756_v29, %v245_v24  ;;  %v251_v31 = vsel %vm250_vm0, %v4601_v28, 0.0  ;;  %v3407_v29 = vld [vmem:[%s5356_s6] ss:$0 sm:$0xff] }
 0x108   :  { %252 = vadd.xlane.f32.xlu0 %v251_v31 }
 0x109   :  { %v254_v32 = vsel %vm250_vm0, %v4603_v30, 0.0 }
 0x10c   :  { %255 = vadd.xlane.f32.xlu0 %v254_v32 }
 0x195   :  { %v253_v33 = vpop.xlane.xlu0 %252 }
 0x196   :  { %v258_v34 = vmul.f32 0.015625, %v253_v33 }
 0x198   :  { %v260_v35 = vsub.f32 %v4601_v28, %v258_v34 }
 0x199   :  { %v256_v36 = vpop.xlane.xlu0 %255 }
 0x19a   :  { %v259_v37 = vmul.f32 0.015625, %v256_v36  ;;  %v262_v38 = vmul.f32 %v260_v35, %v260_v35 }
 0x19c   :  { %v261_v39 = vsub.f32 %v4603_v30, %v259_v37  ;;  %v264_v40 = vsel %vm250_vm0, %v262_v38, 0.0 }
 0x19d   :  { %265 = vadd.xlane.f32.xlu1 %v264_v40 }
 0x19e   :  { %v263_v41 = vmul.f32 %v261_v39, %v261_v39 }
 0x1a0   :  { %v267_v42 = vsel %vm250_vm0, %v263_v41, 0.0 }
 0x1a1   :  { %268 = vadd.xlane.f32.xlu1 %v267_v42 }
 0x22a   :  { %v266_v52 = vpop.xlane.xlu1 %265 }
 0x22b   :  { %v270_v53 = vmul.f32 0.015625, %v266_v52 }
 0x22d   :  { %v272_v54 = vadd.f32 1e-06, %v270_v53 }
 0x22e   :  { %v269_v55 = vpop.xlane.xlu1 %268 }
 0x22f   :  { %4330 = vrsqrt.f32 %v272_v54  ;;  %v271_v56 = vmul.f32 0.015625, %v269_v55 }
 0x231   :  { %v273_v57 = vadd.f32 1e-06, %v271_v56 }
 0x233   :  { %4332 = vrsqrt.f32 %v273_v57 }
 0x239   :  { %v4331_v58 = vpop.eup %4330 }
 0x23a   :  { %v276_v59 = vmul.f32 %v4331_v58, %v260_v35 }
 0x23c   :  { %v284_v62 = vmul.f32 %v3405_v60, %v276_v59 }
 0x23d   :  { %v4333_v61 = vpop.eup %4332 }
 0x23e   :  { %v277_v63 = vmul.f32 %v4333_v61, %v261_v39  ;;  %v292_v2 = vadd.f32 %v3406_v0, %v284_v62 }
 0x240   :  { %v285_v1 = vmul.f32 %v3405_v60, %v277_v63 }
 0x242   :  { %v293_v3 = vadd.f32 %v3406_v0, %v285_v1 }
 0x244   :  { %v4660_v5 = vpack.c.bf16 %v293_v3, %v292_v2 }
 0x246   :  { %3919 = vmatmul.mubr.msk.bf16.vlgmr.msra.gmra.mrb[0].mxu1 %vm250_vm0, %v4660_v5  ;;  %3943 = vmatmul.mubr.msk.bf16.vlgmr.msra.gmra.mrb[4].mxu0 %vm250_vm0, %v4660_v5 }
 0x247   :  { %3923 = vmatpush3.bf16.msra.mxu1 %v4222_v4  ;;  %3930 = vmatprep.mubr.msk.bf16.mxu1 %vm4425_vm1, %v4424_v44 }
 0x248   :  { %3924 = vmatprep.subr.bf16.mxu1 %v4424_v44  ;;  %3960 = vmatprep.mubr.msk.bf16.mxu0 %vm4425_vm1, %v4424_v44 }
 0x24b   :  { %3925 = vmatpush3.bf16.msra.mxu1 %v4223_v6  ;;  %v4226_v6 = vld [vmem:[%s5386_s3 + $0x20] sm:$0xff]  }
 0x24c   :  { %3926 = vmatprep.subr.bf16.mxu1 %v4424_v44 }
 0x24f   :  { %3927 = vmatpush3.bf16.msra.mxu1 %v4224_v7 }
 0x250   :  { %3928 = vmatprep.subr.bf16.mxu1 %v4424_v44 }
 0x253   :  { %3929 = vmatpush3.bf16.msra.mxu1 %v4225_v8  ;;  %v4227_v8 = vld [vmem:[%s5386_s3 + $0x28] sm:$0xff]  }
 0x254   :  { %3946 = vmatprep.subr.bf16.mxu1 %v4424_v44 }
 0x256   :  { %3931 = vmatmul.mubr.msk.bf16.vlgmr.msra.gmra.mrb[4].mxu1 %vm250_vm0, %v4660_v5 }
 0x257   :  { %3948 = vmatprep.mubr.msk.bf16.mxu1 %vm4425_vm1, %v4424_v44 }
 0x319   :  { %v371_v10 = vpop.f32.mrb[0].mxu1  ;;  %v535_v11 = vpop.f32.mrb[4].mxu0 }
 0x31a   :  { %v536_v12 = vadd.f32 %v3437_v9, %v535_v11  ;;  %v3920_v13 = vpop.f32.mrb[1].mxu1  ;;  %v3944_v14 = vpop.f32.mrb[5].mxu0  ;;  %v372_v33 = vadd.f32 %v3407_v29, %v371_v10  ;;  %v4228_v11 = vld [vmem:[%s5386_s3 + $0x30] sm:$0xff]  }
 0x31b   :  { %v374_v15 = vpop.f32.mrb[2].mxu1  ;;  %v538_v16 = vpop.f32.mrb[6].mxu0  ;;  %v4230_v14 = vld [vmem:[%s5386_s3 + $0x38] sm:$0xff]  }
 0x31c   :  { %v666_v17 = vpack.c.bf16 %v536_v12, %v536_v12  ;;  %v3921_v18 = vpop.f32.mrb[3].mxu1  ;;  %v3945_v19 = vpop.f32.mrb[7].mxu0  ;;  %v542_v35 = vpack.c.bf16 %v372_v33, %v372_v33  ;;  %v539_v36 = vadd.f32 %v3437_v9, %v538_v16  ;;  %v375_v38 = vadd.f32 %v3407_v29, %v374_v15  ;;  %v4229_v12 = vld [vmem:[%s5386_s3 + $0x60] sm:$0xff]   ;;  %v4231_v15 = vld [vmem:[%s5386_s3 + $0x68] sm:$0xff]   ;;  %v4232_v16 = vld [vmem:[%s5386_s3 + $0x70] sm:$0xff]  }
 0x31d   :  { %v4234_v18 = vld [vmem:[%s5386_s3 + $0x78] sm:$0xff]   ;;  %v4235_v19 = vld [vmem:[%s5386_s3 + $0xa8] sm:$0xff]  }
 0x31e   :  { %v673_v20 = vsel %vm671_vm2, %v666_v17, 0  ;;  %v667_v39 = vpack.c.bf16 %v539_v36, %v539_v36  ;;  %v543_v40 = vpack.c.bf16 %v375_v38, %v375_v38  ;;  %v4233_v17 = vld [vmem:[%s5386_s3 + $0xa0] sm:$0xff]  }
 0x31f   :  { %3959 = vmatpush3.bf16.msra.mxu0 %v673_v20  ;;  %v4236_v20 = vld [vmem:[%s5386_s3 + $0xb0] sm:$0xff]   ;;  %v3471_v36 = vld [vmem:[%s5356_s6 + $0x3] ss:$0 sm:$0xff] }
 0x320   :  { %3970 = vmatprep.subr.bf16.mxu0 %v4424_v44  ;;  %v719_v41 = vsel %vm671_vm2, %v667_v39, 0 }
 0x329   :  { %v453_v22 = vpop.f32.mrb[4].mxu1 }
 0x32a   :  { %v454_v23 = vadd.f32 %v3422_v21, %v453_v22  ;;  %v3932_v24 = vpop.f32.mrb[5].mxu1 }
 0x32b   :  { %v456_v25 = vpop.f32.mrb[6].mxu1 }
 0x32c   :  { %v544_v26 = vpack.c.bf16 %v454_v23, %v454_v23  ;;  %v3933_v27 = vpop.f32.mrb[7].mxu1  ;;  %v457_v32 = vadd.f32 %v3422_v21, %v456_v25  ;;  %v4237_v21 = vld [vmem:[%s5386_s3 + $0xb8] sm:$0xff]  }
 0x32e   :  { %v551_v31 = vsel %vm546_vm3, %v544_v26, 0  ;;  %v545_v34 = vpack.c.bf16 %v457_v32, %v457_v32 }
 0x32f   :  { %3947 = vmatpush3.bf16.xpose.msra.mxu1 %v551_v31 }
 0x330   :  { %3952 = vmatprep.subr.bf16.mxu1 %v4424_v44  ;;  %v597_v37 = vsel %vm546_vm3, %v545_v34, 0 }
 0x336   :  { %3949 = vmatmul.mubr.msk.bf16.vlgmr.msra.gmra.mrb[8].mxu1 %vm546_vm3, %v542_v35 }
 0x337   :  { %3953 = vmatpush3.bf16.xpose.msra.mxu1 %v597_v37  ;;  %3954 = vmatprep.mubr.msk.bf16.mxu1 %vm4425_vm1, %v4424_v44 }
 0x338   :  { %3964 = vmatprep.subr.bf16.mxu1 %v4424_v44 }
 0x33e   :  { %3955 = vmatmul.mubr.msk.bf16.vlgmr.msra.gmra.mrb[12].mxu1 %vm546_vm3, %v543_v40 }
 0x33f   :  { %3965 = vmatpush3.bf16.msra.mxu1 %v719_v41  ;;  %3966 = vmatprep.mubr.msk.bf16.mxu1 %vm4425_vm1, %v4424_v44 }
 0x340   :  { %3982 = vmatprep.subr.bf16.mxu1 %v4424_v44 }
 0x409   :  { %v587_v42 = vpop.f32.mrb[8].mxu1 }
 0x40a   :  { %v639_v43 = vmul.f32 0.17677669, %v587_v42  ;;  %v3950_v45 = vpop.f32.mrb[9].mxu1 }
 0x40b   :  { %v590_v46 = vpop.f32.mrb[10].mxu1 }
 0x40c   :  { %v3951_v47 = vpop.f32.mrb[11].mxu1  ;;  %v642_v48 = vsel %vm641_vm4, %v639_v43, -inf }
 0x40d   :  { %643 = vmax.xlane.f32.xlu1 %v642_v48  ;;  %v3486_v47 = vld [vmem:[%s5356_s6 + $0x5] ss:$0 sm:$0xff] }
 0x411   :  { %v633_v49 = vpop.f32.mrb[12].mxu1 }
 0x412   :  { %v640_v50 = vmul.f32 0.17677669, %v633_v49  ;;  %v3956_v51 = vpop.f32.mrb[13].mxu1 }
 0x413   :  { %v636_v52 = vpop.f32.mrb[14].mxu1 }
 0x414   :  { %v3957_v53 = vpop.f32.mrb[15].mxu1  ;;  %v645_v54 = vsel %vm641_vm4, %v640_v50, -inf }
 0x415   :  { %646 = vmax.xlane.f32.xlu0 %v645_v54 }
 0x49a   :  { %v644_v55 = vpop.xlane.xlu1 %643 }
 0x49b   :  { %v648_v56 = vsub.f32 %v639_v43, %v644_v55  ;;  %v3456_v43 = vld [vmem:[%s5356_s6 + $0x1] ss:$0 sm:$0xff] }
 0x49d   :  { %v650_v57 = vmul.f32 1.442695, %v648_v56 }
 0x49f   :  { %4334 = vpow2.f32 %v650_v57 }
 0x4a2   :  { %v647_v58 = vpop.xlane.xlu0 %646 }
 0x4a3   :  { %v649_v59 = vsub.f32 %v640_v50, %v647_v58 }
 0x4a5   :  { %v652_v60 = vmul.f32 1.442695, %v649_v59 }
 0x4a7   :  { %4336 = vpow2.f32 %v652_v60 }
 0x4a9   :  { %v4335_v61 = vpop.eup %4334 }
 0x4aa   :  { %v654_v62 = vsel %vm641_vm4, %v4335_v61, 0.0 }
 0x4ab   :  { %655 = vadd.xlane.f32.xlu1 %v654_v62 }
 0x4b1   :  { %v4337_v63 = vpop.eup %4336 }
 0x4b2   :  { %v657_v0 = vsel %vm641_vm4, %v4337_v63, 0.0 }
 0x4b3   :  { %658 = vadd.xlane.f32.xlu0 %v657_v0 }
 0x538   :  { %v656_v1 = vpop.xlane.xlu1 %655 }
 0x539   :  { %4338 = vrcp.f32 %v656_v1 }
 0x540   :  { %v659_v2 = vpop.xlane.xlu0 %658 }
 0x541   :  { %4340 = vrcp.f32 %v659_v2 }
 0x543   :  { %v4339_v3 = vpop.eup %4338 }
 0x544   :  { %v662_v4 = vmul.f32 %v4339_v3, %v4335_v61 }
 0x546   :  { %v664_v7 = vpack.c.bf16 %v662_v4, %v662_v4 }
 0x548   :  { %3961 = vmatmul.mubr.msk.bf16.vlgmr.msra.gmra.mrb[8].mxu0 %vm641_vm4, %v664_v7 }
 0x549   :  { %3971 = vmatpush3.bf16.msra.mxu0 %v4226_v6  ;;  %3978 = vmatprep.mubr.msk.bf16.mxu0 %vm4425_vm1, %v4424_v44 }
 0x54a   :  { %3972 = vmatprep.subr.bf16.mxu0 %v4424_v44 }
 0x54b   :  { %v4341_v9 = vpop.eup %4340 }
 0x54c   :  { %v663_v10 = vmul.f32 %v4341_v9, %v4337_v63 }
 0x54d   :  { %3973 = vmatpush3.bf16.msra.mxu0 %v4227_v8 }
 0x54e   :  { %3974 = vmatprep.subr.bf16.mxu0 %v4424_v44  ;;  %v665_v13 = vpack.c.bf16 %v663_v10, %v663_v10 }
 0x550   :  { %3967 = vmatmul.mubr.msk.bf16.vlgmr.msra.gmra.mrb[16].mxu1 %vm641_vm4, %v665_v13 }
 0x551   :  { %3975 = vmatpush3.bf16.msra.mxu0 %v4228_v11  ;;  %3983 = vmatpush3.bf16.msra.mxu1 %v4229_v12 }
 0x552   :  { %3976 = vmatprep.subr.bf16.mxu0 %v4424_v44  ;;  %3984 = vmatprep.subr.bf16.mxu1 %v4424_v44 }
 0x553   :  { %3990 = vmatprep.mubr.msk.bf16.mxu1 %vm4425_vm1, %v4424_v44 }
 0x555   :  { %3977 = vmatpush3.bf16.msra.mxu0 %v4230_v14  ;;  %3985 = vmatpush3.bf16.msra.mxu1 %v4231_v15 }
 0x556   :  { %3986 = vmatprep.subr.bf16.mxu1 %v4424_v44  ;;  %3994 = vmatprep.subr.bf16.mxu0 %v4424_v44 }
 0x558   :  { %3979 = vmatmul.mubr.msk.bf16.vlgmr.msra.gmra.mrb[12].mxu0 %vm250_vm0, %v4660_v5 }
 0x559   :  { %3987 = vmatpush3.bf16.msra.mxu1 %v4232_v16  ;;  %3995 = vmatpush3.bf16.msra.mxu0 %v4233_v17 }
 0x55a   :  { %3988 = vmatprep.subr.bf16.mxu1 %v4424_v44  ;;  %3996 = vmatprep.subr.bf16.mxu0 %v4424_v44 }
 0x55b   :  { %4002 = vmatprep.mubr.msk.bf16.mxu0 %vm4425_vm1, %v4424_v44 }
 0x55d   :  { %3989 = vmatpush3.bf16.msra.mxu1 %v4234_v18  ;;  %3997 = vmatpush3.bf16.msra.mxu0 %v4235_v19 }
 0x55e   :  { %3998 = vmatprep.subr.bf16.mxu0 %v4424_v44  ;;  %4006 = vmatprep.subr.bf16.mxu1 %v4424_v44 }
 0x560   :  { %3991 = vmatmul.mubr.msk.bf16.vlgmr.msra.gmra.mrb[20].mxu1 %vm250_vm0, %v4660_v5 }
 0x561   :  { %3999 = vmatpush3.bf16.msra.mxu0 %v4236_v20  ;;  %4008 = vmatprep.mubr.msk.bf16.mxu1 %vm4425_vm1, %v4424_v44 }
 0x562   :  { %4000 = vmatprep.subr.bf16.mxu0 %v4424_v44 }
 0x565   :  { %4001 = vmatpush3.bf16.msra.mxu0 %v4237_v21 }
 0x566   :  { %4018 = vmatprep.subr.bf16.mxu0 %v4424_v44 }
 0x568   :  { %4003 = vmatmul.mubr.msk.bf16.vlgmr.msra.gmra.mrb[16].mxu0 %vm250_vm0, %v4660_v5 }
 0x569   :  { %4020 = vmatprep.mubr.msk.bf16.mxu0 %vm4425_vm1, %v4424_v44 }
 0x61b   :  { %v4780_v22 = vpop.f32.mrb[8].mxu0 }
 0x61c   :  { %v3962_v23 = vpop.f32.mrb[9].mxu0 }
 0x61d   :  { %v712_v24 = vpop.f32.mrb[10].mxu0 }
 0x61e   :  { %v3963_v25 = vpop.f32.mrb[11].mxu0 }
 0x623   :  { %v4782_v26 = vpop.f32.mrb[16].mxu1 }
 0x624   :  { %v761_v27 = vpack.c.bf16 %v4782_v26, %v4780_v22  ;;  %v3968_v29 = vpop.f32.mrb[17].mxu1 }
 0x625   :  { %v758_v31 = vpop.f32.mrb[18].mxu1 }
 0x626   :  { %v3969_v32 = vpop.f32.mrb[19].mxu1 }
 0x62b   :  { %v841_v33 = vpop.f32.mrb[12].mxu0 }
 0x62c   :  { %v3980_v34 = vpop.f32.mrb[13].mxu0  ;;  %v842_v48 = vadd.f32 %v3456_v43, %v841_v33 }
 0x62d   :  { %v844_v35 = vpop.f32.mrb[14].mxu0 }
 0x62e   :  { %v3981_v5 = vpop.f32.mrb[15].mxu0  ;;  %v1012_v54 = vpack.c.bf16 %v842_v48, %v842_v48  ;;  %v845_v60 = vadd.f32 %v3456_v43, %v844_v35  ;;  %v4238_v35 = vld [vmem:[%s5357_s7] sm:$0xff]  }
 0x630   :  { %v1013_v62 = vpack.c.bf16 %v845_v60, %v845_v60 }
 0x633   :  { %v923_v37 = vpop.f32.mrb[20].mxu1 }
 0x634   :  { %v924_v38 = vadd.f32 %v3471_v36, %v923_v37  ;;  %v3992_v39 = vpop.f32.mrb[21].mxu1  ;;  %v4240_v37 = vld [vmem:[%s5357_s7 + $0x10] sm:$0xff]  }
 0x635   :  { %v926_v40 = vpop.f32.mrb[22].mxu1 }
 0x636   :  { %v1014_v41 = vpack.c.bf16 %v924_v38, %v924_v38  ;;  %v3993_v42 = vpop.f32.mrb[23].mxu1  ;;  %v927_v46 = vadd.f32 %v3471_v36, %v926_v40  ;;  %v4239_v36 = vld [vmem:[%s5357_s7 + $0x8] sm:$0xff]   ;;  %v4241_v38 = vld [vmem:[%s5357_s7 + $0x18] sm:$0xff]  }
 0x638   :  { %v1020_v45 = vsel %vm546_vm3, %v1014_v41, 0  ;;  %v1015_v50 = vpack.c.bf16 %v927_v46, %v927_v46 }
 0x639   :  { %4007 = vmatpush3.bf16.xpose.msra.mxu1 %v1020_v45 }
 0x63a   :  { %4012 = vmatprep.subr.bf16.mxu1 %v4424_v44  ;;  %v1066_v57 = vsel %vm546_vm3, %v1015_v50, 0 }
 0x63b   :  { %v1005_v49 = vpop.f32.mrb[16].mxu0 }
 0x63c   :  { %v1006_v51 = vadd.f32 %v3486_v47, %v1005_v49  ;;  %v4004_v52 = vpop.f32.mrb[17].mxu0 }
 0x63d   :  { %v1008_v53 = vpop.f32.mrb[18].mxu0 }
 0x63e   :  { %v1134_v55 = vpack.c.bf16 %v1006_v51, %v1006_v51  ;;  %v4005_v56 = vpop.f32.mrb[19].mxu0  ;;  %v1009_v59 = vadd.f32 %v3486_v47, %v1008_v53  ;;  %v3506_v53 = vld [vmem:[%s5358_s8] ss:$0 sm:$0xff] }
 0x640   :  { %v1140_v58 = vsel %vm671_vm2, %v1134_v55, 0  ;;  %4009 = vmatmul.mubr.msk.bf16.vlgmr.msra.gmra.mrb[24].mxu1 %vm546_vm3, %v1012_v54  ;;  %v1135_v61 = vpack.c.bf16 %v1009_v59, %v1009_v59 }
 0x641   :  { %4013 = vmatpush3.bf16.xpose.msra.mxu1 %v1066_v57  ;;  %4019 = vmatpush3.bf16.msra.mxu0 %v1140_v58 }
 0x642   :  { %4014 = vmatprep.mubr.msk.bf16.mxu1 %vm4425_vm1, %v4424_v44  ;;  %4024 = vmatprep.subr.bf16.mxu1 %v4424_v44  ;;  %v1186_v63 = vsel %vm671_vm2, %v1135_v61, 0 }
 0x643   :  { %4030 = vmatprep.subr.bf16.mxu0 %v4424_v44 }
 0x648   :  { %4015 = vmatmul.mubr.msk.bf16.vlgmr.msra.gmra.mrb[28].mxu1 %vm546_vm3, %v1013_v62 }
 0x649   :  { %4025 = vmatpush3.bf16.msra.mxu1 %v1186_v63  ;;  %4026 = vmatprep.mubr.msk.bf16.mxu1 %vm4425_vm1, %v4424_v44 }
 0x64a   :  { %4038 = vmatprep.subr.bf16.mxu1 %v4424_v44 }
 0x713   :  { %v1056_v0 = vpop.f32.mrb[24].mxu1 }
 0x714   :  { %v1108_v1 = vmul.f32 0.17677669, %v1056_v0  ;;  %v4010_v2 = vpop.f32.mrb[25].mxu1 }
 0x715   :  { %v1059_v3 = vpop.f32.mrb[26].mxu1 }
 0x716   :  { %v4011_v4 = vpop.f32.mrb[27].mxu1  ;;  %v1110_v6 = vsel %vm641_vm4, %v1108_v1, -inf }
 0x717   :  { %1111 = vmax.xlane.f32.xlu0 %v1110_v6 }
 0x71b   :  { %v1102_v7 = vpop.f32.mrb[28].mxu1 }
 0x71c   :  { %v1109_v8 = vmul.f32 0.17677669, %v1102_v7  ;;  %v4016_v9 = vpop.f32.mrb[29].mxu1 }
 0x71d   :  { %v1105_v10 = vpop.f32.mrb[30].mxu1  ;;  %v4242_v9 = vld [vmem:[%s5361_s11] ss:$8 sps:$4 sm:$0xff]  }
 0x71e   :  { %v4017_v11 = vpop.f32.mrb[31].mxu1  ;;  %v1113_v12 = vsel %vm641_vm4, %v1109_v8, -inf  ;;  %v4247_v10 = vld [vmem:[%s5361_s11 + $0x14] ss:$8 sps:$4 sm:$0xff]  }
 0x71f   :  { %1114 = vmax.xlane.f32.xlu1 %v1113_v12  ;;  %v4245_v11 = vld [vmem:[%s5361_s11 + $0x10] ss:$8 sps:$4 sm:$0xff]   ;;  %v4250_v12 = vld [vmem:[%s5361_s11 + $0x24] ss:$8 sps:$4 sm:$0xff]  }
 0x7a4   :  { %v1112_v13 = vpop.xlane.xlu0 %1111 }
 0x7a5   :  { %v1116_v14 = vsub.f32 %v1108_v1, %v1112_v13  ;;  %v4248_v13 = vld [vmem:[%s5361_s11 + $0x20] ss:$8 sps:$4 sm:$0xff]  }
 0x7a7   :  { %v1118_v15 = vmul.f32 1.442695, %v1116_v14  ;;  %v4251_v14 = vld [vmem:[%s5361_s11 + $0x30] ss:$8 sps:$4 sm:$0xff]  }
 0x7a9   :  { %4342 = vpow2.f32 %v1118_v15  ;;  %v4253_v15 = vld [vmem:[%s5361_s11 + $0x34] ss:$8 sps:$4 sm:$0xff]  }
 0x7ac   :  { %v1115_v16 = vpop.xlane.xlu1 %1114 }
 0x7ad   :  { %v1117_v17 = vsub.f32 %v1109_v8, %v1115_v16  ;;  %v4244_v8 = vld [vmem:[%s5361_s11 + $0x4] ss:$8 sps:$4 sm:$0xff]   ;;  %v4426_v16 = vmov 0  }
 0x7af   :  { %v1120_v18 = vmul.f32 1.442695, %v1117_v17  ;;  %v4254_v17 = vld [vmem:[%s5363_s13 + $0x40] sm:$0xff]  }
 0x7b1   :  { %4344 = vpow2.f32 %v1120_v18  ;;  %v4255_v18 = vld [vmem:[%s5363_s13] sm:$0xff]  }
 0x7b3   :  { %v4343_v19 = vpop.eup %4342 }
 0x7b4   :  { %v1122_v20 = vsel %vm641_vm4, %v4343_v19, 0.0 }
 0x7b5   :  { %1123 = vadd.xlane.f32.xlu0 %v1122_v20  ;;  %v4257_v20 = vld [vmem:[%s5363_s13 + $0x8] sm:$0xff]  }
 0x7bb   :  { %v4345_v21 = vpop.eup %4344 }
 0x7bc   :  { %v1125_v23 = vsel %vm641_vm4, %v4345_v21, 0.0 }
 0x7bd   :  { %1126 = vadd.xlane.f32.xlu1 %v1125_v23 }
 0x842   :  { %v1124_v24 = vpop.xlane.xlu0 %1123 }
 0x843   :  { %4346 = vrcp.f32 %v1124_v24 }
 0x84a   :  { %v1127_v25 = vpop.xlane.xlu1 %1126 }
 0x84b   :  { %4348 = vrcp.f32 %v1127_v25 }
 0x84d   :  { %v4347_v29 = vpop.eup %4346 }
 0x84e   :  { %v1130_v31 = vmul.f32 %v4347_v29, %v4343_v19  ;;  %v4256_v19 = vld [vmem:[%s5363_s13 + $0x48] sm:$0xff]  }
 0x850   :  { %v1132_v32 = vpack.c.bf16 %v1130_v31, %v1130_v31 }
 0x852   :  { %4021 = vmatmul.mubr.msk.bf16.vlgmr.msra.gmra.mrb[20].mxu0 %vm641_vm4, %v1132_v32 }
 0x853   :  { %4034 = vmatprep.mubr.msk.bf16.mxu0 %vm4425_vm1, %v4424_v44  ;;  %4031 = vmatpush3.bf16.msra.mxu0 %v4240_v37  ;;  %v3508_v37 = vld [vmem:[%s5360_s10] ss:$0 sm:$0xff] }
 0x854   :  { %4032 = vmatprep.subr.bf16.mxu0 %v4424_v44 }
 0x855   :  { %v4349_v33 = vpop.eup %4348 }
 0x856   :  { %v1131_v34 = vmul.f32 %v4349_v33, %v4345_v21  ;;  %v3507_v33 = vld [vmem:[%s5359_s9] ss:$0 sm:$0xff] }
 0x857   :  { %4033 = vmatpush3.bf16.msra.mxu0 %v4241_v38 }
 0x858   :  { %v1133_v5 = vpack.c.bf16 %v1131_v34, %v1131_v34  ;;  %1465 = vmatprep.subr.bf16.mxu0 %v4244_v8 }
 0x85a   :  { %4027 = vmatmul.mubr.msk.bf16.vlgmr.msra.gmra.mrb[32].mxu1 %vm641_vm4, %v1133_v5 }
 0x85b   :  { %4039 = vmatpush3.bf16.msra.mxu1 %v4238_v35  ;;  %4042 = vmatprep.mubr.msk.bf16.mxu1 %vm4425_vm1, %v4424_v44 }
 0x85c   :  { %4040 = vmatprep.subr.bf16.mxu1 %v4424_v44 }
 0x85f   :  { %4041 = vmatpush3.bf16.msra.mxu1 %v4239_v36 }
 0x860   :  { %3809 = vmatprep.subr.bf16.mxu1 %v4254_v17 }
 0x862   :  { %4043 = vmatmul.mubr.msk.bf16.vlgmr.msra.gmra.mrb[36].mxu1 %vm546_vm3, %v761_v27 }
 0x863   :  { %3810 = vmatpush3.bf16.msra.mxu1 %v4255_v18 }
 0x864   :  { %3811 = vmatprep.subr.bf16.mxu1 %v4256_v19 }
 0x867   :  { %3812 = vmatpush3.bf16.msra.mxu1 %v4257_v20 }
 0x925   :  { %v1176_v39 = vpop.f32.mrb[20].mxu0 }
 0x926   :  { %v4022_v40 = vpop.f32.mrb[21].mxu0 }
 0x927   :  { %v1179_v41 = vpop.f32.mrb[22].mxu0 }
 0x928   :  { %v4023_v42 = vpop.f32.mrb[23].mxu0 }
 0x929   :  { %v4258_v42 = vld [vmem:[%s5363_s13 + $0x50] sm:$0xff]  }
 0x92a   :  { %3813 = vmatprep.subr.bf16.mxu1 %v4258_v42 }
 0x92d   :  { %v1222_v43 = vpop.f32.mrb[32].mxu1 }
 0x92e   :  { %v1228_v22 = vpack.c.bf16 %v1222_v43, %v1176_v39  ;;  %v4028_v26 = vpop.f32.mrb[33].mxu1  ;;  %v4259_v43 = vld [vmem:[%s5363_s13 + $0x10] sm:$0xff]  }
 0x92f   :  { %v1225_v27 = vpop.f32.mrb[34].mxu1  ;;  %3814 = vmatpush3.bf16.msra.mxu1 %v4259_v43  ;;  %v4261_v26 = vld [vmem:[%s5363_s13 + $0x18] sm:$0xff]  }
 0x930   :  { %v4029_v45 = vpop.f32.mrb[35].mxu1  ;;  %4035 = vmatmul.mubr.msk.bf16.vlgmr.msra.gmra.mrb[24].mxu0 %vm546_vm3, %v1228_v22  ;;  %v4260_v22 = vld [vmem:[%s5363_s13 + $0x58] sm:$0xff]   ;;  %v4262_v27 = vld [vmem:[%s5363_s13 + $0x60] sm:$0xff]  }
 0x931   :  { %1466 = vmatpush1.bf16.msra.mxu0 %v4242_v9  ;;  %1497 = vmatprep.mubr.bf16.mxu0 %v4426_v16  ;;  %v4263_v45 = vld [vmem:[%s5363_s13 + $0x20] sm:$0xff]  }
 0x932   :  { %1467 = vmatprep.subr.bf16.mxu0 %v4247_v10  ;;  %3815 = vmatprep.subr.bf16.mxu1 %v4260_v22 }
 0x933   :  { %3816 = vmatpush3.bf16.msra.mxu1 %v4261_v26 }
 0x934   :  { %3817 = vmatprep.subr.bf16.mxu1 %v4262_v27 }
 0x935   :  { %v1339_v46 = vpop.f32.mrb[36].mxu1  ;;  %1468 = vmatpush1.bf16.msra.mxu0 %v4245_v11 }
 0x936   :  { %v4044_v47 = vpop.f32.mrb[37].mxu1  ;;  %1469 = vmatprep.subr.bf16.mxu0 %v4250_v12 }
 0x937   :  { %v1342_v48 = vpop.f32.mrb[38].mxu1  ;;  %3818 = vmatpush3.bf16.msra.mxu1 %v4263_v45  ;;  %v4265_v47 = vld [vmem:[%s5363_s13 + $0x28] sm:$0xff]  }
 0x938   :  { %v4045_v49 = vpop.f32.mrb[39].mxu1 }
 0x939   :  { %1470 = vmatpush1.bf16.msra.mxu0 %v4248_v13  ;;  %v4267_v49 = vld [vmem:[%s5363_s13 + $0x30] sm:$0xff]  }
 0x93a   :  { %1471 = vmatprep.subr.bf16.mxu0 %v4253_v15 }
 0x93d   :  { %1472 = vmatpush1.bf16.msra.mxu0 %v4251_v14 }
 0x93e   :  { %4046 = vmatprep.subr.bf16.mxu0 %v4424_v44 }
 0xa03   :  { %v1283_v50 = vpop.f32.mrb[24].mxu0 }
 0xa04   :  { %v1340_v51 = vadd.f32 %v1339_v46, %v1283_v50  ;;  %v4036_v52 = vpop.f32.mrb[25].mxu0  ;;  %v4264_v46 = vld [vmem:[%s5363_s13 + $0x68] sm:$0xff]   ;;  %v4268_v50 = vld [vmem:[%s5363_s13 + $0x78] sm:$0xff]  }
 0xa05   :  { %v1286_v54 = vpop.f32.mrb[26].mxu0  ;;  %3819 = vmatprep.subr.bf16.mxu1 %v4264_v46  ;;  %v1412_v52 = vlaneseq }
 0xa06   :  { %v1346_v55 = vadd.f32 %v1340_v51, %v4601_v28  ;;  %v1343_v56 = vadd.f32 %v1342_v48, %v1286_v54  ;;  %v4037_v57 = vpop.f32.mrb[27].mxu0  ;;  %3820 = vmatpush3.bf16.msra.mxu1 %v4265_v47  ;;  %v4266_v48 = vld [vmem:[%s5363_s13 + $0x70] sm:$0xff]   ;;  %v4269_v51 = vld [vmem:[%s5363_s13 + $0x38] sm:$0xff]  }
 0xa07   :  { %3821 = vmatprep.subr.bf16.mxu1 %v4266_v48 }
 0xa08   :  { %v4842_v58 = vadd.f32 %v3506_v53, %v1346_v55  ;;  %v1347_v59 = vadd.f32 %v1343_v56, %v4603_v30  ;;  %v1410_v55 = vld [vmem:[%s5362_s12] sm:$0x3] }
 0xa0a   :  { %v4845_v60 = vadd.f32 %v3506_v53, %v1347_v59  ;;  %v1359_v61 = vsel %vm250_vm0, %v4842_v58, 0.0  ;;  %3822 = vmatpush3.bf16.msra.mxu1 %v4267_v49  ;;  %v4939_v53 = vshrl.u32 %v1412_v52, 7  ;;  %v4272_v52 = vld [vmem:[%s5386_s3 + $0xc8] sm:$0xff]  }
 0xa0b   :  { %1360 = vadd.xlane.f32.xlu0 %v1359_v61  ;;  %3823 = vmatprep.subr.bf16.mxu1 %v4268_v50  ;;  %v4270_v50 = vld [vmem:[%s5386_s3 + $0xc0] sm:$0xff]  }
 0xa0c   :  { %v1362_v62 = vsel %vm250_vm0, %v4845_v60, 0.0  ;;  %v1414_v54 = vsub.s32 0, %v4939_v53  ;;  %v1418_v56 = vsub.s32 1, %v4939_v53 }
 0xa0d   :  { %1363 = vadd.xlane.f32.xlu1 %v1362_v62 }
 0xa0e   :  { %3824 = vmatpush3.bf16.msra.mxu1 %v4269_v51  ;;  %v1415_v57 = vrot.slane %v1410_v55, %v1414_v54  ;;  %v1419_v59 = vrot.slane %v1410_v55, %v1418_v56  ;;  %v4271_v51 = vld [vmem:[%s5386_s3 + $0x140] sm:$0xff]   ;;  %v4273_v55 = vld [vmem:[%s5386_s3 + $0x148] sm:$0xff]  }
 0xa0f   :  { %4070 = vmatprep.subr.bf16.mxu1 %v4424_v44 }
 0xa98   :  { %v1361_v63 = vpop.xlane.xlu0 %1360 }
 0xa99   :  { %v1365_v0 = vmul.f32 0.015625, %v1361_v63 }
 0xa9a   :  { %v1364_v1 = vpop.xlane.xlu1 %1363 }
 0xa9b   :  { %v1367_v28 = vsub.f32 %v4842_v58, %v1365_v0  ;;  %v1366_v2 = vmul.f32 0.015625, %v1364_v1 }
 0xa9d   :  { %v1368_v3 = vsub.f32 %v4845_v60, %v1366_v2  ;;  %v1369_v4 = vmul.f32 %v1367_v28, %v1367_v28 }
 0xa9f   :  { %v1371_v30 = vsel %vm250_vm0, %v1369_v4, 0.0  ;;  %v1370_v6 = vmul.f32 %v1368_v3, %v1368_v3 }
 0xaa0   :  { %1372 = vadd.xlane.f32.xlu0 %v1371_v30 }
 0xaa1   :  { %v1374_v7 = vsel %vm250_vm0, %v1370_v6, 0.0 }
 0xaa2   :  { %1375 = vadd.xlane.f32.xlu1 %v1374_v7 }
 0xb2d   :  { %v1373_v21 = vpop.xlane.xlu0 %1372 }
 0xb2e   :  { %v1377_v23 = vmul.f32 0.015625, %v1373_v21 }
 0xb2f   :  { %v1376_v24 = vpop.xlane.xlu1 %1375 }
 0xb30   :  { %v1379_v25 = vadd.f32 1e-06, %v1377_v23  ;;  %v1378_v29 = vmul.f32 0.015625, %v1376_v24 }
 0xb32   :  { %4350 = vrsqrt.f32 %v1379_v25  ;;  %v1380_v31 = vadd.f32 1e-06, %v1378_v29 }
 0xb34   :  { %4352 = vrsqrt.f32 %v1380_v31 }
 0xb3c   :  { %v4351_v32 = vpop.eup %4350 }
 0xb3d   :  { %v1383_v34 = vmul.f32 %v4351_v32, %v1367_v28 }
 0xb3e   :  { %v4353_v35 = vpop.eup %4352 }
 0xb3f   :  { %v1391_v5 = vmul.f32 %v3507_v33, %v1383_v34  ;;  %v1384_v36 = vmul.f32 %v4353_v35, %v1368_v3 }
 0xb41   :  { %v1392_v38 = vmul.f32 %v3507_v33, %v1384_v36  ;;  %v1399_v39 = vadd.f32 %v3508_v37, %v1391_v5  ;;  %v3518_v33 = vld [vmem:[%s5364_s14] ss:$0 sm:$0xff] }
 0xb43   :  { %v1400_v40 = vadd.f32 %v3508_v37, %v1392_v38 }
 0xb45   :  { %v1409_v41 = vpack.c.bf16 %v1400_v40, %v1399_v39 }
 0xb47   :  { %3517 = vmatmul.mubr.msk.bf16.vlgmr.msra.gmra.mrb[28].mxu0 %vm250_vm0, %v1409_v41 }
 0xb48   :  { %4054 = vmatprep.mubr.msk.bf16.mxu0 %vm4425_vm1, %v4424_v44  ;;  %4047 = vmatpush3.bf16.msra.mxu0 %v4270_v50 }
 0xb49   :  { %4048 = vmatprep.subr.bf16.mxu0 %v4424_v44 }
 0xb4c   :  { %4049 = vmatpush3.bf16.msra.mxu0 %v4272_v52 }
 0xb4d   :  { %4050 = vmatprep.subr.bf16.mxu0 %v4424_v44 }
 0xc1a   :  { %v1499_v61 = vpop.f32.mrb[28].mxu0 }
 0xc1b   :  { %v1500_v62 = vadd.f32 %v1499_v61, %v1415_v57  ;;  %v1501_v63 = vpop.f32.mrb[29].mxu0  ;;  %v4276_v61 = vld [vmem:[%s5386_s3 + $0xd8] sm:$0xff]  }
 0xc1c   :  { %v1502_v0 = vadd.f32 %v1501_v63, %v1419_v59  ;;  %v1503_v1 = vpop.f32.mrb[30].mxu0 }
 0xc1d   :  { %v1512_v28 = vmul.f32 0.70710677, %v1500_v62  ;;  %v1504_v2 = vadd.f32 %v1503_v1, %v1415_v57  ;;  %v1505_v3 = vpop.f32.mrb[31].mxu0  ;;  %v1508_v14 = vmul.f32 0.5, %v1500_v62  ;;  %v4274_v57 = vld [vmem:[%s5386_s3 + $0xd0] sm:$0xff]   ;;  %v4277_v62 = vld [vmem:[%s5386_s3 + $0x158] sm:$0xff]  }
 0xc1e   :  { %v1513_v4 = vmul.f32 0.70710677, %v1502_v0  ;;  %v1506_v30 = vadd.f32 %v1505_v3, %v1419_v59  ;;  %v1509_v18 = vmul.f32 0.5, %v1502_v0  ;;  %v4275_v59 = vld [vmem:[%s5386_s3 + $0x150] sm:$0xff]   ;;  %4051 = vmatpush3.bf16.msra.mxu0 %v4274_v57 }
 0xc1f   :  { %4354 = verf.f32 %v1512_v28  ;;  %v1514_v6 = vmul.f32 0.70710677, %v1504_v2  ;;  %v1510_v15 = vmul.f32 0.5, %v1504_v2  ;;  %4052 = vmatprep.subr.bf16.mxu0 %v4424_v44 }
 0xc20   :  { %4356 = verf.f32 %v1513_v4  ;;  %v1515_v7 = vmul.f32 0.70710677, %v1506_v30  ;;  %v1511_v19 = vmul.f32 0.5, %v1506_v30  ;;  %v3537_v30 = vld [vmem:[%s5387_s0 + $0x1] ss:$0 sm:$0xff] }
 0xc21   :  { %4358 = verf.f32 %v1514_v6 }
 0xc22   :  { %4360 = verf.f32 %v1515_v7  ;;  %4053 = vmatpush3.bf16.msra.mxu0 %v4276_v61 }
 0xc23   :  { %4058 = vmatprep.subr.bf16.mxu0 %v4424_v44 }
 0xc29   :  { %v4355_v8 = vpop.eup %4354 }
 0xc2a   :  { %v4357_v9 = vpop.eup %4356  ;;  %v1520_v10 = vadd.f32 1.0, %v4355_v8 }
 0xc2b   :  { %v4359_v11 = vpop.eup %4358  ;;  %v1521_v12 = vadd.f32 1.0, %v4357_v9 }
 0xc2c   :  { %v4361_v13 = vpop.eup %4360  ;;  %v1522_v17 = vadd.f32 1.0, %v4359_v11  ;;  %v1524_v21 = vmul.f32 %v1520_v10, %v1508_v14  ;;  %v3538_v10 = vld [vmem:[%s5388_s5 + $0x1] ss:$0 sm:$0xff] }
 0xc2d   :  { %v1523_v20 = vadd.f32 1.0, %v4361_v13  ;;  %v1525_v24 = vmul.f32 %v1521_v12, %v1509_v18  ;;  %v4278_v14 = vld [vmem:[%s5386_s3 + $0x100] sm:$0xff]   ;;  %v4280_v18 = vld [vmem:[%s5386_s3 + $0x110] sm:$0xff]  }
 0xc2e   :  { %v1526_v23 = vmul.f32 %v1522_v17, %v1510_v15  ;;  %v4279_v17 = vld [vmem:[%s5386_s3 + $0x108] sm:$0xff]  }
 0xc2f   :  { %v1527_v25 = vmul.f32 %v1523_v20, %v1511_v19  ;;  %v4281_v19 = vld [vmem:[%s5386_s3 + $0x118] sm:$0xff]  }
 0xc30   :  { %v1560_v29 = vpack.c.bf16 %v1526_v23, %v1524_v21 }
 0xc31   :  { %v1561_v31 = vpack.c.bf16 %v1527_v25, %v1525_v24 }
 0xc33   :  { %1697 = vmatprep.mubr.bf16.mxu1 %v1561_v31 }
 0xc34   :  { %1698 = vmatmul.mubr.bf16.vlgmr.msra.gmra.mrb[40].mxu1 %v1560_v29 }
 0xc35   :  { %4078 = vmatprep.mubr.msk.bf16.mxu1 %vm4425_vm1, %v4424_v44  ;;  %4071 = vmatpush3.bf16.msra.mxu1 %v4271_v51 }
 0xc36   :  { %4072 = vmatprep.subr.bf16.mxu1 %v4424_v44 }
 0xc39   :  { %4073 = vmatpush3.bf16.msra.mxu1 %v4273_v55 }
 0xc3a   :  { %4074 = vmatprep.subr.bf16.mxu1 %v4424_v44 }
 0xc3d   :  { %4075 = vmatpush3.bf16.msra.mxu1 %v4275_v59 }
 0xc3e   :  { %4076 = vmatprep.subr.bf16.mxu1 %v4424_v44 }
 0xc41   :  { %4077 = vmatpush3.bf16.msra.mxu1 %v4277_v62 }
 0xc42   :  { %4088 = vmatprep.subr.bf16.mxu1 %v4424_v44 }
 0xd07   :  { %v3825_v32 = vpop.f32.mrb[40].mxu1 }
 0xd08   :  { %v3826_v34 = vpop.f32.mrb[41].mxu1 }
 0xd09   :  { %v3827_v35 = vadd.f32 %v3826_v34, %v3825_v32  ;;  %v3828_v5 = vpop.f32.mrb[42].mxu1 }
 0xd0a   :  { %v3829_v36 = vpop.f32.mrb[43].mxu1 }
 0xd0b   :  { %v1700_v37 = vadd.f32 %v3827_v35, %v3518_v33  ;;  %v3830_v38 = vadd.f32 %v3829_v36, %v3828_v5  ;;  %v3578_v36 = vld [vmem:[%s5356_s6 + $0xa] ss:$0 sm:$0xff] }
 0xd0d   :  { %v4956_v39 = vadd.f32 %v1700_v37, %v4842_v58  ;;  %v1703_v40 = vadd.f32 %v3830_v38, %v3518_v33  ;;  %v3563_v33 = vld [vmem:[%s5356_s6 + $0x8] ss:$0 sm:$0xff] }
 0xd0f   :  { %v4959_v41 = vadd.f32 %v1703_v40, %v4845_v60  ;;  %v1712_v42 = vsel %vm250_vm0, %v4956_v39, 0.0 }
 0xd10   :  { %1713 = vadd.xlane.f32.xlu0 %v1712_v42 }
 0xd11   :  { %v1715_v43 = vsel %vm250_vm0, %v4959_v41, 0.0 }
 0xd12   :  { %1716 = vadd.xlane.f32.xlu1 %v1715_v43  ;;  %v3548_v43 = vld [vmem:[%s5356_s6 + $0x6] ss:$0 sm:$0xff] }
 0xd9d   :  { %v1714_v22 = vpop.xlane.xlu0 %1713 }
 0xd9e   :  { %v1718_v26 = vmul.f32 0.015625, %v1714_v22 }
 0xd9f   :  { %v1717_v27 = vpop.xlane.xlu1 %1716 }
 0xda0   :  { %v1720_v45 = vsub.f32 %v4956_v39, %v1718_v26  ;;  %v1719_v46 = vmul.f32 0.015625, %v1717_v27 }
 0xda2   :  { %v1721_v58 = vsub.f32 %v4959_v41, %v1719_v46  ;;  %v1722_v47 = vmul.f32 %v1720_v45, %v1720_v45 }
 0xda4   :  { %v1724_v60 = vsel %vm250_vm0, %v1722_v47, 0.0  ;;  %v1723_v48 = vmul.f32 %v1721_v58, %v1721_v58 }
 0xda5   :  { %1725 = vadd.xlane.f32.xlu0 %v1724_v60 }
 0xda6   :  { %v1727_v49 = vsel %vm250_vm0, %v1723_v48, 0.0 }
 0xda7   :  { %1728 = vadd.xlane.f32.xlu1 %v1727_v49 }
 0xe32   :  { %v1726_v63 = vpop.xlane.xlu0 %1725 }
 0xe33   :  { %v1730_v0 = vmul.f32 0.015625, %v1726_v63 }
 0xe34   :  { %v1729_v1 = vpop.xlane.xlu1 %1728 }
 0xe35   :  { %v1732_v28 = vadd.f32 1e-06, %v1730_v0  ;;  %v1731_v2 = vmul.f32 0.015625, %v1729_v1 }
 0xe37   :  { %4362 = vrsqrt.f32 %v1732_v28  ;;  %v1733_v3 = vadd.f32 1e-06, %v1731_v2 }
 0xe39   :  { %4364 = vrsqrt.f32 %v1733_v3 }
 0xe41   :  { %v4363_v4 = vpop.eup %4362 }
 0xe42   :  { %v1736_v6 = vmul.f32 %v4363_v4, %v1720_v45 }
 0xe43   :  { %v4365_v7 = vpop.eup %4364 }
 0xe44   :  { %v1744_v8 = vmul.f32 %v3537_v30, %v1736_v6  ;;  %v1737_v9 = vmul.f32 %v4365_v7, %v1721_v58 }
 0xe46   :  { %v1745_v11 = vmul.f32 %v3537_v30, %v1737_v9  ;;  %v1752_v12 = vadd.f32 %v3538_v10, %v1744_v8 }
 0xe48   :  { %v1753_v13 = vadd.f32 %v3538_v10, %v1745_v11 }
 0xe4a   :  { %v5010_v15 = vpack.c.bf16 %v1753_v13, %v1752_v12 }
 0xe4c   :  { %4055 = vmatmul.mubr.msk.bf16.vlgmr.msra.gmra.mrb[32].mxu0 %vm250_vm0, %v5010_v15  ;;  %4079 = vmatmul.mubr.msk.bf16.vlgmr.msra.gmra.mrb[44].mxu1 %vm250_vm0, %v5010_v15 }
 0xe4d   :  { %4059 = vmatpush3.bf16.msra.mxu0 %v4278_v14  ;;  %4066 = vmatprep.mubr.msk.bf16.mxu0 %vm4425_vm1, %v4424_v44 }
 0xe4e   :  { %4060 = vmatprep.subr.bf16.mxu0 %v4424_v44  ;;  %4090 = vmatprep.mubr.msk.bf16.mxu1 %vm4425_vm1, %v4424_v44 }
 0xe51   :  { %4061 = vmatpush3.bf16.msra.mxu0 %v4279_v17 }
 0xe52   :  { %4062 = vmatprep.subr.bf16.mxu0 %v4424_v44 }
 0xe55   :  { %4063 = vmatpush3.bf16.msra.mxu0 %v4280_v18 }
 0xe56   :  { %4064 = vmatprep.subr.bf16.mxu0 %v4424_v44 }
 0xe59   :  { %4065 = vmatpush3.bf16.msra.mxu0 %v4281_v19 }
 0xe5a   :  { %4082 = vmatprep.subr.bf16.mxu0 %v4424_v44 }
 0xe5c   :  { %4067 = vmatmul.mubr.msk.bf16.vlgmr.msra.gmra.mrb[36].mxu0 %vm250_vm0, %v5010_v15 }
 0xe5d   :  { %4084 = vmatprep.mubr.msk.bf16.mxu0 %vm4425_vm1, %v4424_v44 }
 0xf1f   :  { %v1833_v20 = vpop.f32.mrb[32].mxu0  ;;  %v1997_v21 = vpop.f32.mrb[44].mxu1 }
 0xf20   :  { %v4056_v23 = vpop.f32.mrb[33].mxu0  ;;  %v4080_v24 = vpop.f32.mrb[45].mxu1  ;;  %v1998_v22 = vadd.f32 %v3578_v36, %v1997_v21  ;;  %v1834_v45 = vadd.f32 %v3548_v43, %v1833_v20 }
 0xf21   :  { %v1836_v25 = vpop.f32.mrb[34].mxu0  ;;  %v2000_v29 = vpop.f32.mrb[46].mxu1  ;;  %v4282_v23 = vld [vmem:[%s5386_s3 + $0xe0] sm:$0xff]  }
 0xf22   :  { %v4057_v31 = vpop.f32.mrb[35].mxu0  ;;  %v4081_v32 = vpop.f32.mrb[47].mxu1  ;;  %v2001_v46 = vadd.f32 %v3578_v36, %v2000_v29  ;;  %v2126_v47 = vpack.c.bf16 %v1998_v22, %v1998_v22  ;;  %v1837_v60 = vadd.f32 %v3548_v43, %v1836_v25  ;;  %v2004_v48 = vpack.c.bf16 %v1834_v45, %v1834_v45  ;;  %v4283_v29 = vld [vmem:[%s5386_s3 + $0x120] sm:$0xff]   ;;  %v4289_v36 = vld [vmem:[%s5386_s3 + $0x138] sm:$0xff]  }
 0xf23   :  { %v4284_v32 = vld [vmem:[%s5386_s3 + $0xe8] sm:$0xff]  }
 0xf24   :  { %v2127_v49 = vpack.c.bf16 %v2001_v46, %v2001_v46  ;;  %v2132_v50 = vsel %vm671_vm2, %v2126_v47, 0  ;;  %v2005_v51 = vpack.c.bf16 %v1837_v60, %v1837_v60 }
 0xf26   :  { %v2178_v52 = vsel %vm671_vm2, %v2127_v49, 0 }
 0xf2f   :  { %v1915_v34 = vpop.f32.mrb[36].mxu0 }
 0xf30   :  { %v1916_v35 = vadd.f32 %v3563_v33, %v1915_v34  ;;  %v4068_v5 = vpop.f32.mrb[37].mxu0  ;;  %v4286_v34 = vld [vmem:[%s5386_s3 + $0xf0] sm:$0xff]  }
 0xf31   :  { %v1918_v37 = vpop.f32.mrb[38].mxu0  ;;  %v4288_v5 = vld [vmem:[%s5386_s3 + $0xf8] sm:$0xff]  }
 0xf32   :  { %v2006_v38 = vpack.c.bf16 %v1916_v35, %v1916_v35  ;;  %v1919_v40 = vadd.f32 %v3563_v33, %v1918_v37  ;;  %v4069_v42 = vpop.f32.mrb[39].mxu0  ;;  %v4285_v33 = vld [vmem:[%s5386_s3 + $0x128] sm:$0xff]   ;;  %v4287_v35 = vld [vmem:[%s5386_s3 + $0x130] sm:$0xff]   ;;  %v4290_v37 = vld [vmem:[%s5386_s3 + $0x160] sm:$0xff]  }
 0xf33   :  { %v4293_v42 = vld [vmem:[%s5386_s3 + $0x178] sm:$0xff]  }
 0xf34   :  { %v2012_v26 = vsel %vm546_vm3, %v2006_v38, 0  ;;  %v2007_v27 = vpack.c.bf16 %v1919_v40, %v1919_v40  ;;  %v4291_v38 = vld [vmem:[%s5386_s3 + $0x168] sm:$0xff]   ;;  %v4292_v40 = vld [vmem:[%s5386_s3 + $0x170] sm:$0xff]  }
 0xf35   :  { %4083 = vmatpush3.bf16.xpose.msra.mxu0 %v2012_v26 }
 0xf36   :  { %v2058_v58 = vsel %vm546_vm3, %v2007_v27, 0  ;;  %4094 = vmatprep.subr.bf16.mxu0 %v4424_v44 }
 0xf37   :  { %4089 = vmatpush3.bf16.xpose.msra.mxu1 %v2058_v58 }
 0xf38   :  { %4100 = vmatprep.subr.bf16.mxu1 %v4424_v44 }
 0xf3c   :  { %4085 = vmatmul.mubr.msk.bf16.vlgmr.msra.gmra.mrb[40].mxu0 %vm546_vm3, %v2004_v48 }
 0xf3d   :  { %4095 = vmatpush3.bf16.msra.mxu0 %v2132_v50  ;;  %4096 = vmatprep.mubr.msk.bf16.mxu0 %vm4425_vm1, %v4424_v44 }
 0xf3e   :  { %4091 = vmatmul.mubr.msk.bf16.vlgmr.msra.gmra.mrb[48].mxu1 %vm546_vm3, %v2005_v51  ;;  %4106 = vmatprep.subr.bf16.mxu0 %v4424_v44 }
 0xf3f   :  { %4101 = vmatpush3.bf16.msra.mxu1 %v2178_v52  ;;  %4102 = vmatprep.mubr.msk.bf16.mxu1 %vm4425_vm1, %v4424_v44 }
 0xf40   :  { %4118 = vmatprep.subr.bf16.mxu1 %v4424_v44 }
0x100f   :  { %v2048_v55 = vpop.f32.mrb[40].mxu0 }
0x1010   :  { %v2100_v57 = vmul.f32 0.17677669, %v2048_v55  ;;  %v4086_v59 = vpop.f32.mrb[41].mxu0 }
0x1011   :  { %v2051_v61 = vpop.f32.mrb[42].mxu0  ;;  %v2094_v62 = vpop.f32.mrb[48].mxu1 }
0x1012   :  { %v2101_v63 = vmul.f32 0.17677669, %v2094_v62  ;;  %v4087_v0 = vpop.f32.mrb[43].mxu0  ;;  %v4092_v1 = vpop.f32.mrb[49].mxu1  ;;  %v2102_v28 = vsel %vm641_vm4, %v2100_v57, -inf }
0x1013   :  { %v2097_v2 = vpop.f32.mrb[50].mxu1  ;;  %2103 = vmax.xlane.f32.xlu1 %v2102_v28 }
0x1014   :  { %v4093_v3 = vpop.f32.mrb[51].mxu1  ;;  %v2105_v4 = vsel %vm641_vm4, %v2101_v63, -inf }
0x1015   :  { %2106 = vmax.xlane.f32.xlu0 %v2105_v4  ;;  %v3631_v4 = vld [vmem:[%s5356_s6 + $0xb] ss:$0 sm:$0xff] }
0x10a0   :  { %v2104_v30 = vpop.xlane.xlu1 %2103 }
0x10a1   :  { %v2108_v6 = vsub.f32 %v2100_v57, %v2104_v30 }
0x10a2   :  { %v2107_v7 = vpop.xlane.xlu0 %2106 }
0x10a3   :  { %v2110_v8 = vmul.f32 1.442695, %v2108_v6  ;;  %v2109_v9 = vsub.f32 %v2101_v63, %v2107_v7  ;;  %v3601_v63 = vld [vmem:[%s5356_s6 + $0x7] ss:$0 sm:$0xff] }
0x10a5   :  { %4366 = vpow2.f32 %v2110_v8  ;;  %v2112_v10 = vmul.f32 1.442695, %v2109_v9 }
0x10a7   :  { %4368 = vpow2.f32 %v2112_v10 }
0x10af   :  { %v4367_v11 = vpop.eup %4366 }
0x10b0   :  { %v2114_v12 = vsel %vm641_vm4, %v4367_v11, 0.0 }
0x10b1   :  { %v4369_v13 = vpop.eup %4368  ;;  %2115 = vadd.xlane.f32.xlu1 %v2114_v12 }
0x10b2   :  { %v2117_v14 = vsel %vm641_vm4, %v4369_v13, 0.0 }
0x10b3   :  { %2118 = vadd.xlane.f32.xlu0 %v2117_v14 }
0x113e   :  { %v2116_v17 = vpop.xlane.xlu1 %2115 }
0x113f   :  { %4370 = vrcp.f32 %v2116_v17 }
0x1140   :  { %v2119_v18 = vpop.xlane.xlu0 %2118 }
0x1141   :  { %4372 = vrcp.f32 %v2119_v18 }
0x1149   :  { %v4371_v19 = vpop.eup %4370 }
0x114a   :  { %v2122_v20 = vmul.f32 %v4371_v19, %v4367_v11 }
0x114b   :  { %v4373_v21 = vpop.eup %4372 }
0x114c   :  { %v2123_v24 = vmul.f32 %v4373_v21, %v4369_v13  ;;  %v2124_v25 = vpack.c.bf16 %v2122_v20, %v2122_v20 }
0x114e   :  { %4097 = vmatmul.mubr.msk.bf16.vlgmr.msra.gmra.mrb[44].mxu0 %vm641_vm4, %v2124_v25  ;;  %v2125_v31 = vpack.c.bf16 %v2123_v24, %v2123_v24 }
0x114f   :  { %4107 = vmatpush3.bf16.msra.mxu0 %v4282_v23  ;;  %4114 = vmatprep.mubr.msk.bf16.mxu0 %vm4425_vm1, %v4424_v44 }
0x1150   :  { %4103 = vmatmul.mubr.msk.bf16.vlgmr.msra.gmra.mrb[52].mxu1 %vm641_vm4, %v2125_v31  ;;  %4108 = vmatprep.subr.bf16.mxu0 %v4424_v44 }
0x1151   :  { %4119 = vmatpush3.bf16.msra.mxu1 %v4283_v29  ;;  %4126 = vmatprep.mubr.msk.bf16.mxu1 %vm4425_vm1, %v4424_v44 }
0x1152   :  { %4120 = vmatprep.subr.bf16.mxu1 %v4424_v44 }
0x1153   :  { %4109 = vmatpush3.bf16.msra.mxu0 %v4284_v32 }
0x1154   :  { %4110 = vmatprep.subr.bf16.mxu0 %v4424_v44 }
0x1155   :  { %4121 = vmatpush3.bf16.msra.mxu1 %v4285_v33 }
0x1156   :  { %4122 = vmatprep.subr.bf16.mxu1 %v4424_v44 }
0x1157   :  { %4111 = vmatpush3.bf16.msra.mxu0 %v4286_v34 }
0x1158   :  { %4112 = vmatprep.subr.bf16.mxu0 %v4424_v44 }
0x1159   :  { %4123 = vmatpush3.bf16.msra.mxu1 %v4287_v35 }
0x115a   :  { %4124 = vmatprep.subr.bf16.mxu1 %v4424_v44 }
0x115b   :  { %4113 = vmatpush3.bf16.msra.mxu0 %v4288_v5 }
0x115c   :  { %4130 = vmatprep.subr.bf16.mxu0 %v4424_v44 }
0x115d   :  { %4125 = vmatpush3.bf16.msra.mxu1 %v4289_v36 }
0x115e   :  { %4115 = vmatmul.mubr.msk.bf16.vlgmr.msra.gmra.mrb[48].mxu0 %vm250_vm0, %v5010_v15  ;;  %4142 = vmatprep.subr.bf16.mxu1 %v4424_v44 }
0x115f   :  { %4131 = vmatpush3.bf16.msra.mxu0 %v4290_v37  ;;  %4138 = vmatprep.mubr.msk.bf16.mxu0 %vm4425_vm1, %v4424_v44 }
0x1160   :  { %4127 = vmatmul.mubr.msk.bf16.vlgmr.msra.gmra.mrb[56].mxu1 %vm250_vm0, %v5010_v15  ;;  %4132 = vmatprep.subr.bf16.mxu0 %v4424_v44 }
0x1161   :  { %4144 = vmatprep.mubr.msk.bf16.mxu1 %vm4425_vm1, %v4424_v44 }
0x1163   :  { %4133 = vmatpush3.bf16.msra.mxu0 %v4291_v38 }
0x1164   :  { %4134 = vmatprep.subr.bf16.mxu0 %v4424_v44 }
0x1167   :  { %4135 = vmatpush3.bf16.msra.mxu0 %v4292_v40 }
0x1168   :  { %4136 = vmatprep.subr.bf16.mxu0 %v4424_v44 }
0x116b   :  { %4137 = vmatpush3.bf16.msra.mxu0 %v4293_v42 }
0x116c   :  { %4154 = vmatprep.subr.bf16.mxu0 %v4424_v44 }
0x116e   :  { %4139 = vmatmul.mubr.msk.bf16.vlgmr.msra.gmra.mrb[52].mxu0 %vm250_vm0, %v5010_v15  ;;  %v3616_v15 = vld [vmem:[%s5356_s6 + $0x9] ss:$0 sm:$0xff] }
0x116f   :  { %4156 = vmatprep.mubr.msk.bf16.mxu0 %vm4425_vm1, %v4424_v44 }
0x1221   :  { %v5130_v43 = vpop.f32.mrb[44].mxu0 }
0x1222   :  { %v4098_v22 = vpop.f32.mrb[45].mxu0 }
0x1223   :  { %v2171_v26 = vpop.f32.mrb[46].mxu0  ;;  %v5132_v27 = vpop.f32.mrb[52].mxu1 }
0x1224   :  { %v2220_v45 = vpack.c.bf16 %v5132_v27, %v5130_v43  ;;  %v4099_v46 = vpop.f32.mrb[47].mxu0  ;;  %v4104_v58 = vpop.f32.mrb[53].mxu1 }
0x1225   :  { %v2217_v47 = vpop.f32.mrb[54].mxu1 }
0x1226   :  { %v4105_v60 = vpop.f32.mrb[55].mxu1 }
0x1231   :  { %v2301_v48 = vpop.f32.mrb[48].mxu0 }
0x1232   :  { %v4116_v49 = vpop.f32.mrb[49].mxu0  ;;  %v2302_v28 = vadd.f32 %v3601_v63, %v2301_v48 }
0x1233   :  { %v2304_v50 = vpop.f32.mrb[50].mxu0  ;;  %v2383_v51 = vpop.f32.mrb[56].mxu1 }
0x1234   :  { %v2384_v52 = vadd.f32 %v3616_v15, %v2383_v51  ;;  %v4117_v55 = vpop.f32.mrb[51].mxu0  ;;  %v4128_v57 = vpop.f32.mrb[57].mxu1  ;;  %v2472_v3 = vpack.c.bf16 %v2302_v28, %v2302_v28  ;;  %v2305_v7 = vadd.f32 %v3601_v63, %v2304_v50 }
0x1235   :  { %v2386_v59 = vpop.f32.mrb[58].mxu1  ;;  %v4294_v55 = vld [vmem:[%s5357_s7 + $0x20] sm:$0xff]  }
0x1236   :  { %v2474_v61 = vpack.c.bf16 %v2384_v52, %v2384_v52  ;;  %v4129_v62 = vpop.f32.mrb[59].mxu1  ;;  %v2387_v1 = vadd.f32 %v3616_v15, %v2386_v59  ;;  %v2473_v14 = vpack.c.bf16 %v2305_v7, %v2305_v7  ;;  %v4295_v59 = vld [vmem:[%s5357_s7 + $0x28] sm:$0xff]  }
0x1237   :  { %v4297_v62 = vld [vmem:[%s5357_s7 + $0x38] sm:$0xff]  }
0x1238   :  { %v2480_v0 = vsel %vm546_vm3, %v2474_v61, 0  ;;  %v2475_v2 = vpack.c.bf16 %v2387_v1, %v2387_v1  ;;  %v4296_v61 = vld [vmem:[%s5357_s7 + $0x30] sm:$0xff]  }
0x1239   :  { %4143 = vmatpush3.bf16.xpose.msra.mxu1 %v2480_v0 }
0x123a   :  { %4148 = vmatprep.subr.bf16.mxu1 %v4424_v44  ;;  %v2526_v30 = vsel %vm546_vm3, %v2475_v2, 0 }
0x1240   :  { %4145 = vmatmul.mubr.msk.bf16.vlgmr.msra.gmra.mrb[60].mxu1 %vm546_vm3, %v2472_v3 }
0x1241   :  { %v2465_v6 = vpop.f32.mrb[52].mxu0  ;;  %4149 = vmatpush3.bf16.xpose.msra.mxu1 %v2526_v30  ;;  %4150 = vmatprep.mubr.msk.bf16.mxu1 %vm4425_vm1, %v4424_v44 }
0x1242   :  { %v2466_v8 = vadd.f32 %v3631_v4, %v2465_v6  ;;  %v4140_v9 = vpop.f32.mrb[53].mxu0  ;;  %4160 = vmatprep.subr.bf16.mxu1 %v4424_v44 }
0x1243   :  { %v2468_v10 = vpop.f32.mrb[54].mxu0 }
0x1244   :  { %v2594_v11 = vpack.c.bf16 %v2466_v8, %v2466_v8  ;;  %v2469_v12 = vadd.f32 %v3631_v4, %v2468_v10  ;;  %v4141_v13 = vpop.f32.mrb[55].mxu0 }
0x1246   :  { %v2600_v17 = vsel %vm671_vm2, %v2594_v11, 0  ;;  %v2595_v18 = vpack.c.bf16 %v2469_v12, %v2469_v12  ;;  %v3652_v11 = vld [vmem:[%s5358_s8 + $0x1] ss:$0 sm:$0xff] }
0x1247   :  { %4155 = vmatpush3.bf16.msra.mxu0 %v2600_v17 }
0x1248   :  { %v2646_v19 = vsel %vm671_vm2, %v2595_v18, 0  ;;  %4151 = vmatmul.mubr.msk.bf16.vlgmr.msra.gmra.mrb[64].mxu1 %vm546_vm3, %v2473_v14  ;;  %4166 = vmatprep.subr.bf16.mxu0 %v4424_v44 }
0x1249   :  { %4161 = vmatpush3.bf16.msra.mxu1 %v2646_v19  ;;  %4162 = vmatprep.mubr.msk.bf16.mxu1 %vm4425_vm1, %v4424_v44 }
0x124a   :  { %4174 = vmatprep.subr.bf16.mxu1 %v4424_v44 }
0x1313   :  { %v2516_v20 = vpop.f32.mrb[60].mxu1 }
0x1314   :  { %v2568_v21 = vmul.f32 0.17677669, %v2516_v20  ;;  %v4146_v23 = vpop.f32.mrb[61].mxu1 }
0x1315   :  { %v2519_v24 = vpop.f32.mrb[62].mxu1 }
0x1316   :  { %v4147_v25 = vpop.f32.mrb[63].mxu1  ;;  %v2570_v29 = vsel %vm641_vm4, %v2568_v21, -inf }
0x1317   :  { %2571 = vmax.xlane.f32.xlu0 %v2570_v29 }
0x131b   :  { %v2562_v31 = vpop.f32.mrb[64].mxu1 }
0x131c   :  { %v2569_v32 = vmul.f32 0.17677669, %v2562_v31  ;;  %v4152_v33 = vpop.f32.mrb[65].mxu1 }
0x131d   :  { %v2565_v34 = vpop.f32.mrb[66].mxu1 }
0x131e   :  { %v4153_v35 = vpop.f32.mrb[67].mxu1  ;;  %v2573_v5 = vsel %vm641_vm4, %v2569_v32, -inf }
0x131f   :  { %2574 = vmax.xlane.f32.xlu1 %v2573_v5  ;;  %v4300_v35 = vld [vmem:[%s5361_s11 + $0x44] ss:$8 sps:$4 sm:$0xff]   ;;  %v4298_v5 = vld [vmem:[%s5361_s11 + $0x40] ss:$8 sps:$4 sm:$0xff]  }
0x13a4   :  { %v2572_v36 = vpop.xlane.xlu0 %2571 }
0x13a5   :  { %v2576_v37 = vsub.f32 %v2568_v21, %v2572_v36  ;;  %v4303_v36 = vld [vmem:[%s5361_s11 + $0x54] ss:$8 sps:$4 sm:$0xff]  }
0x13a7   :  { %v2578_v38 = vmul.f32 1.442695, %v2576_v37  ;;  %v4301_v37 = vld [vmem:[%s5361_s11 + $0x50] ss:$8 sps:$4 sm:$0xff]  }
0x13a9   :  { %4374 = vpow2.f32 %v2578_v38  ;;  %v4306_v38 = vld [vmem:[%s5361_s11 + $0x64] ss:$8 sps:$4 sm:$0xff]  }
0x13ac   :  { %v2575_v40 = vpop.xlane.xlu1 %2574 }
0x13ad   :  { %v2577_v42 = vsub.f32 %v2569_v32, %v2575_v40  ;;  %v4304_v40 = vld [vmem:[%s5361_s11 + $0x60] ss:$8 sps:$4 sm:$0xff]  }
0x13af   :  { %v2580_v22 = vmul.f32 1.442695, %v2577_v42  ;;  %v4307_v42 = vld [vmem:[%s5361_s11 + $0x70] ss:$8 sps:$4 sm:$0xff]  }
0x13b1   :  { %4376 = vpow2.f32 %v2580_v22  ;;  %v4309_v22 = vld [vmem:[%s5361_s11 + $0x74] ss:$8 sps:$4 sm:$0xff]  }
0x13b3   :  { %v4375_v26 = vpop.eup %4374 }
0x13b4   :  { %v2582_v46 = vsel %vm641_vm4, %v4375_v26, 0.0 }
0x13b5   :  { %2583 = vadd.xlane.f32.xlu0 %v2582_v46  ;;  %v4311_v46 = vld [vmem:[%s5363_s13 + $0x80] sm:$0xff]  }
0x13bb   :  { %v4377_v58 = vpop.eup %4376 }
0x13bc   :  { %v2585_v47 = vsel %vm641_vm4, %v4377_v58, 0.0 }
0x13bd   :  { %2586 = vadd.xlane.f32.xlu1 %v2585_v47  ;;  %v4313_v47 = vld [vmem:[%s5363_s13 + $0x88] sm:$0xff]  }
0x1442   :  { %v2584_v60 = vpop.xlane.xlu0 %2583 }
0x1443   :  { %4378 = vrcp.f32 %v2584_v60 }
0x144a   :  { %v2587_v48 = vpop.xlane.xlu1 %2586 }
0x144b   :  { %4380 = vrcp.f32 %v2587_v48 }
0x144d   :  { %v4379_v15 = vpop.eup %4378 }
0x144e   :  { %v2590_v49 = vmul.f32 %v4379_v15, %v4375_v26  ;;  %v4310_v26 = vld [vmem:[%s5363_s13 + $0xc0] sm:$0xff]  }
0x1450   :  { %v2592_v50 = vpack.c.bf16 %v2590_v49, %v2590_v49 }
0x1452   :  { %4157 = vmatmul.mubr.msk.bf16.vlgmr.msra.gmra.mrb[56].mxu0 %vm641_vm4, %v2592_v50 }
0x1453   :  { %4170 = vmatprep.mubr.msk.bf16.mxu0 %vm4425_vm1, %v4424_v44  ;;  %4167 = vmatpush3.bf16.msra.mxu0 %v4296_v61 }
0x1454   :  { %4168 = vmatprep.subr.bf16.mxu0 %v4424_v44 }
0x1455   :  { %v4381_v51 = vpop.eup %4380 }
0x1456   :  { %v2591_v52 = vmul.f32 %v4381_v51, %v4377_v58  ;;  %v4312_v58 = vld [vmem:[%s5363_s13 + $0xc8] sm:$0xff]  }
0x1457   :  { %4169 = vmatpush3.bf16.msra.mxu0 %v4297_v62 }
0x1458   :  { %v2593_v57 = vpack.c.bf16 %v2591_v52, %v2591_v52  ;;  %2930 = vmatprep.subr.bf16.mxu0 %v4300_v35 }
0x145a   :  { %4163 = vmatmul.mubr.msk.bf16.vlgmr.msra.gmra.mrb[68].mxu1 %vm641_vm4, %v2593_v57 }
0x145b   :  { %4175 = vmatpush3.bf16.msra.mxu1 %v4294_v55  ;;  %4178 = vmatprep.mubr.msk.bf16.mxu1 %vm4425_vm1, %v4424_v44  ;;  %v3655_v55 = vld [vmem:[%s5359_s9 + $0x1] ss:$0 sm:$0xff] }
0x145c   :  { %4176 = vmatprep.subr.bf16.mxu1 %v4424_v44 }
0x145f   :  { %4177 = vmatpush3.bf16.msra.mxu1 %v4295_v59 }
0x1460   :  { %3883 = vmatprep.subr.bf16.mxu1 %v4310_v26 }
0x1462   :  { %4179 = vmatmul.mubr.msk.bf16.vlgmr.msra.gmra.mrb[72].mxu1 %vm546_vm3, %v2220_v45 }
0x1463   :  { %3884 = vmatpush3.bf16.msra.mxu1 %v4311_v46 }
0x1464   :  { %3885 = vmatprep.subr.bf16.mxu1 %v4312_v58 }
0x1467   :  { %3886 = vmatpush3.bf16.msra.mxu1 %v4313_v47 }
0x1525   :  { %v2636_v63 = vpop.f32.mrb[56].mxu0 }
0x1526   :  { %v4158_v0 = vpop.f32.mrb[57].mxu0 }
0x1527   :  { %v2639_v1 = vpop.f32.mrb[58].mxu0 }
0x1528   :  { %v4159_v28 = vpop.f32.mrb[59].mxu0 }
0x152d   :  { %v2682_v2 = vpop.f32.mrb[68].mxu1 }
0x152e   :  { %v2688_v43 = vpack.c.bf16 %v2682_v2, %v2636_v63  ;;  %v4164_v27 = vpop.f32.mrb[69].mxu1  ;;  %v3656_v63 = vld [vmem:[%s5360_s10 + $0x1] ss:$0 sm:$0xff] }
0x152f   :  { %v2685_v45 = vpop.f32.mrb[70].mxu1  ;;  %v4315_v27 = vld [vmem:[%s5363_s13 + $0x90] sm:$0xff]  }
0x1530   :  { %v4165_v3 = vpop.f32.mrb[71].mxu1  ;;  %4171 = vmatmul.mubr.msk.bf16.vlgmr.msra.gmra.mrb[60].mxu0 %vm546_vm3, %v2688_v43  ;;  %v4314_v43 = vld [vmem:[%s5363_s13 + $0xd0] sm:$0xff]   ;;  %v4316_v45 = vld [vmem:[%s5363_s13 + $0xd8] sm:$0xff]  }
0x1531   :  { %2962 = vmatprep.mubr.bf16.mxu0 %v4426_v16  ;;  %2931 = vmatpush1.bf16.msra.mxu0 %v4298_v5  ;;  %v4317_v3 = vld [vmem:[%s5363_s13 + $0x98] sm:$0xff]  }
0x1532   :  { %2932 = vmatprep.subr.bf16.mxu0 %v4303_v36  ;;  %3887 = vmatprep.subr.bf16.mxu1 %v4314_v43 }
0x1533   :  { %3888 = vmatpush3.bf16.msra.mxu1 %v4315_v27 }
0x1534   :  { %3889 = vmatprep.subr.bf16.mxu1 %v4316_v45 }
0x1535   :  { %v2799_v4 = vpop.f32.mrb[72].mxu1  ;;  %2933 = vmatpush1.bf16.msra.mxu0 %v4301_v37 }
0x1536   :  { %v4180_v30 = vpop.f32.mrb[73].mxu1  ;;  %2934 = vmatprep.subr.bf16.mxu0 %v4306_v38 }
0x1537   :  { %v2802_v6 = vpop.f32.mrb[74].mxu1  ;;  %3890 = vmatpush3.bf16.msra.mxu1 %v4317_v3  ;;  %v4319_v30 = vld [vmem:[%s5363_s13 + $0xa0] sm:$0xff]  }
0x1538   :  { %v4181_v7 = vpop.f32.mrb[75].mxu1 }
0x1539   :  { %2935 = vmatpush1.bf16.msra.mxu0 %v4304_v40  ;;  %v4321_v7 = vld [vmem:[%s5363_s13 + $0xa8] sm:$0xff]  }
0x153a   :  { %2936 = vmatprep.subr.bf16.mxu0 %v4309_v22 }
0x153d   :  { %2937 = vmatpush1.bf16.msra.mxu0 %v4307_v42 }
0x153e   :  { %4182 = vmatprep.subr.bf16.mxu0 %v4424_v44 }
0x1603   :  { %v2743_v8 = vpop.f32.mrb[60].mxu0 }
0x1604   :  { %v2800_v9 = vadd.f32 %v2799_v4, %v2743_v8  ;;  %v4172_v10 = vpop.f32.mrb[61].mxu0  ;;  %v4318_v4 = vld [vmem:[%s5363_s13 + $0xe0] sm:$0xff]   ;;  %v4322_v8 = vld [vmem:[%s5363_s13 + $0xf0] sm:$0xff]  }
0x1605   :  { %v2746_v12 = vpop.f32.mrb[62].mxu0  ;;  %3891 = vmatprep.subr.bf16.mxu1 %v4318_v4  ;;  %v4324_v10 = vld [vmem:[%s5363_s13 + $0xf8] sm:$0xff]  }
0x1606   :  { %v2806_v13 = vadd.f32 %v2800_v9, %v4956_v39  ;;  %v2803_v14 = vadd.f32 %v2802_v6, %v2746_v12  ;;  %v4173_v17 = vpop.f32.mrb[63].mxu0  ;;  %3892 = vmatpush3.bf16.msra.mxu1 %v4319_v30  ;;  %v4320_v6 = vld [vmem:[%s5363_s13 + $0xe8] sm:$0xff]   ;;  %v4323_v9 = vld [vmem:[%s5363_s13 + $0xb0] sm:$0xff]   ;;  %v3665_v12 = vld [vmem:[%s5362_s12 + $0x2] sm:$0x3] }
0x1607   :  { %3893 = vmatprep.subr.bf16.mxu1 %v4320_v6 }
0x1608   :  { %v5193_v18 = vadd.f32 %v3652_v11, %v2806_v13  ;;  %v2807_v16 = vadd.f32 %v2803_v14, %v4959_v41  ;;  %v2880_v13 = vrot.slane %v3665_v12, %v1414_v54  ;;  %v2884_v14 = vrot.slane %v3665_v12, %v1418_v56  ;;  %v3725_v12 = vld [vmem:[%s5365_s15] ss:$0 sm:$0xff] }
0x160a   :  { %v5196_v19 = vadd.f32 %v3652_v11, %v2807_v16  ;;  %v2822_v20 = vsel %vm250_vm0, %v5193_v18, 0.0  ;;  %3894 = vmatpush3.bf16.msra.mxu1 %v4321_v7  ;;  %v4325_v11 = vld [vmem:[%s5363_s13 + $0xb8] sm:$0xff]  }
0x160b   :  { %2823 = vadd.xlane.f32.xlu0 %v2822_v20  ;;  %3895 = vmatprep.subr.bf16.mxu1 %v4322_v8 }
0x160c   :  { %v2825_v21 = vsel %vm250_vm0, %v5196_v19, 0.0 }
0x160d   :  { %2826 = vadd.xlane.f32.xlu1 %v2825_v21 }
0x160e   :  { %3896 = vmatpush3.bf16.msra.mxu1 %v4323_v9 }
0x160f   :  { %3897 = vmatprep.subr.bf16.mxu1 %v4324_v10 }
0x1612   :  { %3898 = vmatpush3.bf16.msra.mxu1 %v4325_v11 }
0x1698   :  { %v2824_v23 = vpop.xlane.xlu0 %2823 }
0x1699   :  { %v2828_v24 = vmul.f32 0.015625, %v2824_v23 }
0x169a   :  { %v2827_v25 = vpop.xlane.xlu1 %2826 }
0x169b   :  { %v2830_v39 = vsub.f32 %v5193_v18, %v2828_v24  ;;  %v2829_v29 = vmul.f32 0.015625, %v2827_v25 }
0x169d   :  { %v2831_v31 = vsub.f32 %v5196_v19, %v2829_v29  ;;  %v2832_v32 = vmul.f32 %v2830_v39, %v2830_v39 }
0x169f   :  { %v2834_v41 = vsel %vm250_vm0, %v2832_v32, 0.0  ;;  %v2833_v33 = vmul.f32 %v2831_v31, %v2831_v31 }
0x16a0   :  { %2835 = vadd.xlane.f32.xlu0 %v2834_v41 }
0x16a1   :  { %v2837_v34 = vsel %vm250_vm0, %v2833_v33, 0.0 }
0x16a2   :  { %2838 = vadd.xlane.f32.xlu1 %v2837_v34 }
0x172d   :  { %v2836_v60 = vpop.xlane.xlu0 %2835 }
0x172e   :  { %v2840_v48 = vmul.f32 0.015625, %v2836_v60 }
0x172f   :  { %v2839_v15 = vpop.xlane.xlu1 %2838 }
0x1730   :  { %v2842_v49 = vadd.f32 1e-06, %v2840_v48  ;;  %v2841_v50 = vmul.f32 0.015625, %v2839_v15  ;;  %v3708_v15 = vld [vmem:[%s5364_s14 + $0x1] ss:$0 sm:$0xff] }
0x1732   :  { %4382 = vrsqrt.f32 %v2842_v49  ;;  %v2843_v51 = vadd.f32 1e-06, %v2841_v50 }
0x1734   :  { %4384 = vrsqrt.f32 %v2843_v51 }
0x173c   :  { %v4383_v52 = vpop.eup %4382 }
0x173d   :  { %v2846_v57 = vmul.f32 %v4383_v52, %v2830_v39 }
0x173e   :  { %v4385_v59 = vpop.eup %4384 }
0x173f   :  { %v2854_v61 = vmul.f32 %v3655_v55, %v2846_v57  ;;  %v2847_v62 = vmul.f32 %v4385_v59, %v2831_v31 }
0x1741   :  { %v2855_v0 = vmul.f32 %v3655_v55, %v2847_v62  ;;  %v2862_v1 = vadd.f32 %v3656_v63, %v2854_v61 }
0x1743   :  { %v2863_v28 = vadd.f32 %v3656_v63, %v2855_v0 }
0x1745   :  { %v2873_v2 = vpack.c.bf16 %v2863_v28, %v2862_v1 }
0x1747   :  { %3674 = vmatmul.mubr.msk.bf16.vlgmr.msra.gmra.mrb[64].mxu0 %vm250_vm0, %v2873_v2 }
0x1748   :  { %4190 = vmatprep.mubr.msk.bf16.mxu0 %vm4425_vm1, %v4424_v44 }
0x181a   :  { %v2964_v17 = vpop.f32.mrb[64].mxu0 }
0x181b   :  { %v2965_v16 = vadd.f32 %v2964_v17, %v2880_v13  ;;  %v2966_v20 = vpop.f32.mrb[65].mxu0  ;;  %v3726_v17 = vld [vmem:[%s5366_s16] ss:$0 sm:$0xff] }
0x181c   :  { %v2967_v21 = vadd.f32 %v2966_v20, %v2884_v14  ;;  %v2968_v23 = vpop.f32.mrb[66].mxu0 }
0x181d   :  { %v2977_v24 = vmul.f32 0.70710677, %v2965_v16  ;;  %v2969_v25 = vadd.f32 %v2968_v23, %v2880_v13  ;;  %v2970_v39 = vpop.f32.mrb[67].mxu0  ;;  %v2973_v5 = vmul.f32 0.5, %v2965_v16 }
0x181e   :  { %v2978_v29 = vmul.f32 0.70710677, %v2967_v21  ;;  %v2971_v31 = vadd.f32 %v2970_v39, %v2884_v14  ;;  %v2974_v38 = vmul.f32 0.5, %v2967_v21 }
0x181f   :  { %4386 = verf.f32 %v2977_v24  ;;  %v2979_v32 = vmul.f32 0.70710677, %v2969_v25  ;;  %v2975_v36 = vmul.f32 0.5, %v2969_v25 }
0x1820   :  { %4388 = verf.f32 %v2978_v29  ;;  %v2980_v41 = vmul.f32 0.70710677, %v2971_v31  ;;  %v2976_v40 = vmul.f32 0.5, %v2971_v31 }
0x1821   :  { %4390 = verf.f32 %v2979_v32 }
0x1822   :  { %4392 = verf.f32 %v2980_v41 }
0x1829   :  { %v4387_v54 = vpop.eup %4386 }
0x182a   :  { %v4389_v33 = vpop.eup %4388  ;;  %v2985_v53 = vadd.f32 1.0, %v4387_v54 }
0x182b   :  { %v4391_v56 = vpop.eup %4390  ;;  %v2986_v34 = vadd.f32 1.0, %v4389_v33 }
0x182c   :  { %v4393_v35 = vpop.eup %4392  ;;  %v2987_v37 = vadd.f32 1.0, %v4391_v56  ;;  %v2989_v22 = vmul.f32 %v2985_v53, %v2973_v5 }
0x182d   :  { %v2988_v42 = vadd.f32 1.0, %v4393_v35  ;;  %v2990_v46 = vmul.f32 %v2986_v34, %v2974_v38 }
0x182e   :  { %v2991_v26 = vmul.f32 %v2987_v37, %v2975_v36 }
0x182f   :  { %v2992_v58 = vmul.f32 %v2988_v42, %v2976_v40 }
0x1830   :  { %v3026_v47 = vpack.c.bf16 %v2991_v26, %v2989_v22  ;;  %v4326_v26 = vld [vmem:[%s5369_s19] sm:$0xff]  }
0x1831   :  { %v3027_v60 = vpack.c.bf16 %v2992_v58, %v2990_v46  ;;  %4183 = vmatpush3.bf16.msra.mxu0 %v4326_v26  ;;  %v4327_v46 = vld [vmem:[%s5369_s19 + $0x8] sm:$0xff]   ;;  %v4328_v58 = vld [vmem:[%s5369_s19 + $0x10] sm:$0xff]  }
0x1832   :  { %4184 = vmatprep.subr.bf16.mxu0 %v4424_v44 }
0x1833   :  { %3164 = vmatprep.mubr.bf16.mxu1 %v3027_v60 }
0x1834   :  { %3165 = vmatmul.mubr.bf16.vlgmr.msra.gmra.mrb[76].mxu1 %v3026_v47  ;;  %v4329_v47 = vld [vmem:[%s5369_s19 + $0x18] sm:$0xff]  }
0x1835   :  { %4185 = vmatpush3.bf16.msra.mxu0 %v4327_v46 }
0x1836   :  { %4186 = vmatprep.subr.bf16.mxu0 %v4424_v44 }
0x1839   :  { %4187 = vmatpush3.bf16.msra.mxu0 %v4328_v58 }
0x183a   :  { %4188 = vmatprep.subr.bf16.mxu0 %v4424_v44 }
0x183d   :  { %4189 = vmatpush3.bf16.msra.mxu0 %v4329_v47 }
0x1907   :  { %v3899_v48 = vpop.f32.mrb[76].mxu1 }
0x1908   :  { %v3900_v49 = vpop.f32.mrb[77].mxu1 }
0x1909   :  { %v3901_v50 = vadd.f32 %v3900_v49, %v3899_v48  ;;  %v3902_v51 = vpop.f32.mrb[78].mxu1 }
0x190a   :  { %v3903_v52 = vpop.f32.mrb[79].mxu1 }
0x190b   :  { %v3167_v55 = vadd.f32 %v3901_v50, %v3708_v15  ;;  %v3904_v57 = vadd.f32 %v3903_v52, %v3902_v51  ;;  %v3727_v50 = vld [vmem:[%s5367_s17] ss:$0 sm:$0xff] }
0x190d   :  { %v3170_v59 = vadd.f32 %v3904_v57, %v3708_v15  ;;  %v3173_v61 = vadd.f32 %v3167_v55, %v5193_v18  ;;  %v3728_v55 = vld [vmem:[%s5368_s18] ss:$0 sm:$0xff]  ;;  %s4427_s18 = smov [#allocation2]  }
0x190e   :  { %s3381_s29 = sshll.u32 %s4427_s18, 4  ;;  %s3382_s29 = int_to_ptr.vmem [resolvable:$true] %s3381_s29 }
0x190f   :  { %v3177_v62 = vsel %vm250_vm0, %v3173_v61, 0.0  ;;  %v3174_v63 = vadd.f32 %v3170_v59, %v5196_v19  ;;  %s4400_s4 = scalar_lea.vmem %s3382_s29, 32  ;;  %p4405_p1 = scmp.lt.s32.totalorder %s3382_s29, %s3382_s29 }
0x1910   :  { %3178 = vadd.xlane.f32.xlu1 %v3177_v62  ;;  %p4401_p0 = scmp.ne.s32.totalorder %s3382_s29, %s4400_s4  ;;  %p4406_p2 = scmp.lt.s32.totalorder %s4400_s4, %s4400_s4 }
0x1911   :  { %v3180_v0 = vsel %vm250_vm0, %v3174_v63, 0.0 }
0x1912   :  { %3181 = vadd.xlane.f32.xlu0 %v3180_v0  ;;  %p4407_p3 = por %p4406_p2, %p4405_p1 }
0x1914   :  { %p4408_p4 = pnand %p4407_p3, %p4401_p0 }
0x199d   :  { %v3179_v1 = vpop.xlane.xlu1 %3178 }
0x199e   :  { %v3183_v28 = vmul.f32 0.015625, %v3179_v1 }
0x199f   :  { %v3182_v2 = vpop.xlane.xlu0 %3181 }
0x19a0   :  { %v3185_v43 = vsub.f32 %v3173_v61, %v3183_v28  ;;  %v3184_v27 = vmul.f32 0.015625, %v3182_v2 }
0x19a2   :  { %v3186_v45 = vsub.f32 %v3174_v63, %v3184_v27  ;;  %v3187_v3 = vmul.f32 %v3185_v43, %v3185_v43 }
0x19a4   :  { %v3189_v4 = vsel %vm250_vm0, %v3187_v3, 0.0  ;;  %v3188_v30 = vmul.f32 %v3186_v45, %v3186_v45 }
0x19a5   :  { %3190 = vadd.xlane.f32.xlu1 %v3189_v4 }
0x19a6   :  { %v3192_v18 = vsel %vm250_vm0, %v3188_v30, 0.0 }
0x19a7   :  { %3193 = vadd.xlane.f32.xlu0 %v3192_v18 }
0x1a32   :  { %v3191_v6 = vpop.xlane.xlu1 %3190 }
0x1a33   :  { %v3195_v19 = vmul.f32 0.015625, %v3191_v6 }
0x1a34   :  { %v3194_v7 = vpop.xlane.xlu0 %3193 }
0x1a35   :  { %v3197_v8 = vadd.f32 1e-06, %v3195_v19  ;;  %v3196_v9 = vmul.f32 0.015625, %v3194_v7 }
0x1a37   :  { %4394 = vrsqrt.f32 %v3197_v8  ;;  %v3198_v10 = vadd.f32 1e-06, %v3196_v9 }
0x1a39   :  { %4396 = vrsqrt.f32 %v3198_v10 }
0x1a41   :  { %v4395_v11 = vpop.eup %4394 }
0x1a42   :  { %v3201_v13 = vmul.f32 %v4395_v11, %v3185_v43 }
0x1a43   :  { %v4397_v14 = vpop.eup %4396 }
0x1a44   :  { %v3202_v16 = vmul.f32 %v4397_v14, %v3186_v45  ;;  %v3209_v20 = vmul.f32 %v3725_v12, %v3201_v13  ;;  %v3729_v45 = vld [vmem:[%s5370_s20] ss:$0 sm:$0xff] }
0x1a46   :  { %v3210_v21 = vmul.f32 %v3725_v12, %v3202_v16  ;;  %v3217_v23 = vadd.f32 %v3726_v17, %v3209_v20 }
0x1a48   :  { %v3218_v24 = vadd.f32 %v3726_v17, %v3210_v21  ;;  %v3221_v25 = vrot.slane %v3217_v23, 1 }
0x1a4a   :  { %v3222_v39 = vrot.slane %v3218_v24, 1  ;;  %v3225_v29 = vadd.f32 %v3221_v25, %v3217_v23 }
0x1a4c   :  { %v3226_v31 = vadd.f32 %v3222_v39, %v3218_v24  ;;  %v3227_v41 = vmul.f32 0.5, %v3225_v29 }
0x1a4e   :  { %v3228_v32 = vmul.f32 0.5, %v3226_v31 }
0x1a50   :  { %v3233_v54 = vrot.slane %v3228_v32, 7 }
0x1a52   :  { %v3235_v33 = vsel %vm3234_vm5, %v3233_v54, %v3227_v41 }
0x1a53   :  { %v3238_v53 = vsel %vm3237_vm6, %v3235_v33, 0.0 }
0x1a54   :  { %3239 = vadd.xlane.f32.xlu0 %v3238_v53 }
0x1ae1   :  { %v3240_v56 = vpop.xlane.xlu0 %3239 }
0x1ae2   :  { %v3241_v34 = vmul.f32 0.015625, %v3240_v56 }
0x1ae4   :  { %v3243_v35 = vrot.slane %v3241_v34, 1  ;;  %v3246_v5 = vsub.f32 %v3227_v41, %v3241_v34 }
0x1ae6   :  { %v3247_v36 = vsub.f32 %v3228_v32, %v3243_v35  ;;  %v3248_v38 = vmul.f32 %v3246_v5, %v3246_v5 }
0x1ae8   :  { %v3249_v37 = vmul.f32 %v3247_v36, %v3247_v36 }
0x1aea   :  { %v3252_v40 = vrot.slane %v3249_v37, 7 }
0x1aec   :  { %v3253_v42 = vsel %vm3234_vm5, %v3252_v40, %v3248_v38 }
0x1aed   :  { %v3255_v22 = vsel %vm3237_vm6, %v3253_v42, 0.0 }
0x1aee   :  { %3256 = vadd.xlane.f32.xlu1 %v3255_v22 }
0x1b7b   :  { %v3257_v60 = vpop.xlane.xlu1 %3256 }
0x1b7c   :  { %v3258_v48 = vmul.f32 0.015625, %v3257_v60 }
0x1b7e   :  { %v3259_v15 = vadd.f32 1e-05, %v3258_v48 }
0x1b80   :  { %4398 = vrsqrt.f32 %v3259_v15 }
0x1b8a   :  { %v4399_v49 = vpop.eup %4398 }
0x1b8b   :  { %v3262_v51 = vrot.slane %v4399_v49, 1  ;;  %v3265_v52 = vmul.f32 %v4399_v49, %v3246_v5 }
0x1b8d   :  { %v3266_v57 = vmul.f32 %v3262_v51, %v3247_v36  ;;  %v3273_v59 = vmul.f32 %v3727_v50, %v3265_v52 }
0x1b8f   :  { %v3274_v61 = vmul.f32 %v3727_v50, %v3266_v57  ;;  %v3281_v44 = vadd.f32 %v3728_v55, %v3273_v59 }
0x1b91   :  { %v3282_v62 = vadd.f32 %v3728_v55, %v3274_v61  ;;  %v3291_v63 = vpack.c.bf16 %v3281_v44, %v3281_v44 }
0x1b93   :  { %v3292_v0 = vpack.c.bf16 %v3282_v62, %v3282_v62  ;;  %v3302_v28 = vunpack.c.l.b16 %v3291_v63 }
0x1b95   :  { %v3303_v1 = vunpack.c.l.b16 %v3292_v0 }
0x1b97   :  { %v3304_v2 = vrot.slane %v3303_v1, 7 }
0x1b99   :  { %v3305_v43 = vsel %vm3234_vm5, %v3304_v2, %v3302_v28 }
0x1b9a   :  { %v3306_v27 = vpack.c.b16 %v3305_v43, %v3305_v43 }
0x1b9c   :  { %4191 = vmatmul.mubr.msk.bf16.vlgmr.msra.gmra.mrb[68].mxu0 %vm250_vm0, %v3306_v27 }
0x1c6f   :  { %v3368_v3 = vpop.f32.mrb[68].mxu0 }
0x1c70   :  { %v3369_v4 = vadd.f32 %v3729_v45, %v3368_v3  ;;  %v4192_v30 = vpop.f32.mrb[69].mxu0 }
0x1c71   :  { %v3371_v18 = vpop.f32.mrb[70].mxu0 }
0x1c72   :  { %3374 = vst [vmem:[#allocation2] sm:$0x3] %v3369_v4  ;;  %v4193_v6 = vpop.f32.mrb[71].mxu0 }
0x1c73   :  { %4411 = shalt.err (!%p4408_p4)
}
0x1c74   :  { %s4412_s20 = scalar_lea.hbm %s5371_s21, 32 }
0x1c75   :  { %p4413_p5 = scmp.ne.s32.totalorder %s5371_s21, %s4412_s20  ;;  %p4416_p6 = scmp.lt.u32.totalorder %s4412_s20, %s5371_s21 }
0x1c77   :  { %p4418_p7 = pnand %p4416_p6, %p4413_p5 }
0x1c79   :  { %4421 = shalt.err (!%p4418_p7)
}
0x1c7a   :  { %3384 = dma.vmem_to_hbm [thread:$0]  %s3382_s29, 32, %s5371_s21, [#allocation3]  }
0x1c7b   :  { %4422 = dma.done.wait [#allocation3], 32  }
0x1c7c   :  { %4423 = vsyncadd [#allocation3], 4294967264 }
0x1c7d   :  { %3388 = vsyncpa [#allocation3], 1 }

</bundles_post_ra>
